<compile_context>
chip_gen: v6e
topology: v6e:2x2x1
jax: 0.10.0
libtpu: 0.0.40
codegen_flags: <defaults>
</compile_context>

<pallas_src>
import functools

import jax
import jax.numpy as jnp
from jax import lax
from jax.experimental import pallas as pl
from jax.experimental.pallas import tpu as pltpu

KSIZE = 7
PAD = 3
EPS = 1e-5


def sam_kernel(x1_ref, x2_ref, w_ref, gb_ref, r_ref, i_ref, *, N, C, H, W):
    # x1_ref, x2_ref : (N*C, H*W) f32 VMEM   lane-dense input slabs
    # w_ref          : (2*7*7,)   f32 SMEM   conv weight, [cin, ky, kx] flat
    # gb_ref         : (2,)       f32 SMEM   (gamma, beta) of BatchNorm2d(1)
    # r_ref, i_ref   : (N*C, H*W) f32 VMEM   outputs (full-slab stores)
    HW = H * W

    x1 = x1_ref[...]
    x2 = x2_ref[...]
    f1 = x1 - x2                                        # (N*C, HW), lane dense

    # Channel max / mean pooling: reduce each (C, HW) row group, keep (N, HW).
    mx_rows, av_rows = [], []
    for n in range(N):
        fn = f1[n * C:(n + 1) * C, :]                   # (C, HW) value view
        mx_rows.append(jnp.max(fn, axis=0, keepdims=True))
        av_rows.append(jnp.mean(fn, axis=0, keepdims=True))
    mx = jnp.concatenate(mx_rows, axis=0) if N > 1 else mx_rows[0]   # (N, HW)
    av = jnp.concatenate(av_rows, axis=0) if N > 1 else av_rows[0]   # (N, HW)

    # Border-validity masks for the 7x7 taps, built once from a 2-D iota.
    idx = lax.broadcasted_iota(jnp.int32, (N, HW), 1)
    if (W & (W - 1)) == 0:                              # power-of-two fast path
        col = idx & (W - 1)
        row = idx >> (W.bit_length() - 1)
    else:
        col = idx % W
        row = idx // W
    col_ok = [(col + (kx - PAD) >= 0) & (col + (kx - PAD) < W)
              for kx in range(KSIZE)]
    row_ok = [(row + (ky - PAD) >= 0) & (row + (ky - PAD) < H)
              for ky in range(KSIZE)]

    # 7x7 conv (2 -> 1 channels, padding=3) in the flattened layout: tap
    # (ky, kx) is a lane-roll by (ky-3)*W + (kx-3) plus the border mask.
    # The conv bias is omitted: it is exactly removed by the BN mean
    # subtraction below (training-mode BatchNorm).
    zero = jnp.zeros((N, HW), jnp.float32)              # hoisted broadcast
    acc = zero
    for ky in range(KSIZE):
        for kx in range(KSIZE):
            t = ky * KSIZE + kx
            s = (ky - PAD) * W + (kx - PAD)             # flat shift
            amt = (-s) % HW
            if amt == 0:
                sm, sa = mx, av
            else:
                sm = pltpu.roll(mx, amt, axis=1)        # XLU lane rotate
                sa = pltpu.roll(av, amt, axis=1)
            tap = w_ref[t] * sm + w_ref[KSIZE * KSIZE + t] * sa
            acc = acc + jnp.where(row_ok[ky] & col_ok[kx], tap, zero)

    # BatchNorm2d(1), training mode: single-pass biased stats over (N, H, W).
    cnt = float(N * HW)
    s1 = jnp.sum(acc)
    s2 = jnp.sum(acc * acc)
    mean = s1 / cnt
    var = s2 / cnt - mean * mean
    scale = gb_ref[0] * lax.rsqrt(var + EPS)
    f = (acc - mean) * scale + gb_ref[1]                # (N, HW)

    # Broadcast over channels, residual adds, one full-slab store per output.
    reps = [jnp.broadcast_to(f[n:n + 1, :], (C, HW)) for n in range(N)]
    f_bc = jnp.concatenate(reps, axis=0) if N > 1 else reps[0]       # (N*C, HW)
    r_ref[...] = (x1 + f_bc).astype(r_ref.dtype)
    i_ref[...] = (x2 + f_bc).astype(i_ref.dtype)


@jax.jit
def sam_forward(x1, x2, conv_w, conv_b, gamma, beta):
    del conv_b  # a uniform bias is exactly cancelled by the BN mean subtraction
    N, C, H, W = x1.shape
    HW = H * W
    x1f = x1.reshape(N * C, HW).astype(jnp.float32)
    x2f = x2.reshape(N * C, HW).astype(jnp.float32)
    w_flat = conv_w.reshape(-1).astype(jnp.float32)            # (2*7*7,)
    gb = jnp.concatenate([gamma, beta]).astype(jnp.float32)    # (2,)

    kernel = functools.partial(sam_kernel, N=N, C=C, H=H, W=W)
    out_shape = (jax.ShapeDtypeStruct((N * C, HW), jnp.float32),
                 jax.ShapeDtypeStruct((N * C, HW), jnp.float32))
    r, i = pl.pallas_call(
        kernel,
        out_shape=out_shape,
        in_specs=[
            pl.BlockSpec(memory_space=pltpu.MemorySpace.VMEM),  # x1 slab
            pl.BlockSpec(memory_space=pltpu.MemorySpace.VMEM),  # x2 slab
            pl.BlockSpec(memory_space=pltpu.MemorySpace.SMEM),  # conv weight
            pl.BlockSpec(memory_space=pltpu.MemorySpace.SMEM),  # gamma/beta
        ],
        out_specs=(
            pl.BlockSpec(memory_space=pltpu.MemorySpace.VMEM),
            pl.BlockSpec(memory_space=pltpu.MemorySpace.VMEM),
        ),
    )(x1f, x2f, w_flat, gb)
    return (r.reshape(N, C, H, W).astype(x1.dtype),
            i.reshape(N, C, H, W).astype(x2.dtype))


def sam_reference(x1, x2, conv_w, conv_b, gamma, beta):
    """Pure-JAX reference mirroring the PyTorch forward (training-mode BN)."""
    f1 = x1 - x2
    mx = jnp.max(f1, axis=1, keepdims=True)
    av = jnp.mean(f1, axis=1, keepdims=True)
    pooled = jnp.concatenate([mx, av], axis=1)
    conv = lax.conv_general_dilated(
        pooled, conv_w, window_strides=(1, 1),
        padding=((PAD, PAD), (PAD, PAD)),
        dimension_numbers=("NCHW", "OIHW", "NCHW"),
    ) + conv_b.reshape(1, -1, 1, 1)
    mean = jnp.mean(conv, axis=(0, 2, 3), keepdims=True)
    var = jnp.mean((conv - mean) ** 2, axis=(0, 2, 3), keepdims=True)
    xhat = (conv - mean) / jnp.sqrt(var + EPS)
    f = gamma.reshape(1, -1, 1, 1) * xhat + beta.reshape(1, -1, 1, 1)
    return x1 + f, x2 + f


if __name__ == "__main__":
    key = jax.random.PRNGKey(0)
    k_w, k_b, k_x1, k_x2 = jax.random.split(key, 4)

    N, C, H, W = 2, 4, 16, 16
    x1 = jax.random.normal(k_x1, (N, C, H, W), jnp.float32)
    x2 = jax.random.normal(k_x2, (N, C, H, W), jnp.float32)

    # Deterministic synthetic parameters (shapes from nn.Conv2d(2,1,7) / BN2d(1)).
    conv_w = jax.random.normal(k_w, (1, 2, KSIZE, KSIZE), jnp.float32) * 0.1
    conv_b = jax.random.normal(k_b, (1,), jnp.float32) * 0.1
    gamma = jnp.ones((1,), jnp.float32)
    beta = jnp.zeros((1,), jnp.float32)

    res_r, res_i = sam_forward(x1, x2, conv_w, conv_b, gamma, beta)
    jax.block_until_ready((res_r, res_i))

    ref_r, ref_i = sam_reference(x1, x2, conv_w, conv_b, gamma, beta)
    assert jnp.allclose(res_r, ref_r, atol=1e-4, rtol=1e-4)
    assert jnp.allclose(res_i, ref_i, atol=1e-4, rtol=1e-4)

    print("KERNEL_OK")
</pallas_src>

<mosaic_0001>
module attributes {stable_mosaic.version = 11 : i64} {
  func.func @sam_kernel(%arg0: memref<8x256xf32, #tpu.memory_space<vmem>>, %arg1: memref<8x256xf32, #tpu.memory_space<vmem>>, %arg2: memref<98xf32, #tpu.memory_space<smem>>, %arg3: memref<2xf32, #tpu.memory_space<smem>>, %arg4: memref<8x256xf32, #tpu.memory_space<vmem>>, %arg5: memref<8x256xf32, #tpu.memory_space<vmem>>) attributes {dimension_semantics = [], scalar_prefetch = 0 : i64, scratch_operands = 0 : i64, tpu.core_type = #tpu.core_type<tc>} {
    %c0 = arith.constant 0 : index
    %c0_0 = arith.constant 0 : index
    %0 = vector.load %arg0[%c0, %c0_0] : memref<8x256xf32, #tpu.memory_space<vmem>>, vector<8x256xf32>
    %c0_1 = arith.constant 0 : index
    %c0_2 = arith.constant 0 : index
    %1 = vector.load %arg1[%c0_1, %c0_2] : memref<8x256xf32, #tpu.memory_space<vmem>>, vector<8x256xf32>
    %2 = arith.subf %0, %1 : vector<8x256xf32>
    %3 = vector.extract_strided_slice %2 {offsets = [0, 0], sizes = [4, 256], strides = [1, 1]} : vector<8x256xf32> to vector<4x256xf32>
    %cst = arith.constant dense<0xFF800000> : vector<256xf32>
    %4 = vector.multi_reduction <maximumf>, %3, %cst [0] : vector<4x256xf32> to vector<256xf32>
    %5 = vector.shape_cast %4 : vector<256xf32> to vector<1x256xf32>
    %cst_3 = arith.constant dense<0.000000e+00> : vector<256xf32>
    %6 = vector.multi_reduction <add>, %3, %cst_3 [0] : vector<4x256xf32> to vector<256xf32>
    %7 = vector.shape_cast %6 : vector<256xf32> to vector<1x256xf32>
    %cst_4 = arith.constant 4.000000e+00 : f32
    %8 = vector.broadcast %cst_4 : f32 to vector<1x256xf32>
    %9 = arith.divf %7, %8 : vector<1x256xf32>
    %10 = vector.extract_strided_slice %2 {offsets = [4, 0], sizes = [4, 256], strides = [1, 1]} : vector<8x256xf32> to vector<4x256xf32>
    %cst_5 = arith.constant dense<0xFF800000> : vector<256xf32>
    %11 = vector.multi_reduction <maximumf>, %10, %cst_5 [0] : vector<4x256xf32> to vector<256xf32>
    %12 = vector.shape_cast %11 : vector<256xf32> to vector<1x256xf32>
    %cst_6 = arith.constant dense<0.000000e+00> : vector<256xf32>
    %13 = vector.multi_reduction <add>, %10, %cst_6 [0] : vector<4x256xf32> to vector<256xf32>
    %14 = vector.shape_cast %13 : vector<256xf32> to vector<1x256xf32>
    %cst_7 = arith.constant 4.000000e+00 : f32
    %15 = vector.broadcast %cst_7 : f32 to vector<1x256xf32>
    %16 = arith.divf %14, %15 : vector<1x256xf32>
    %17 = tpu.concatenate %5, %12 in 0 : vector<1x256xf32>, vector<1x256xf32> -> vector<2x256xf32>
    %18 = tpu.concatenate %9, %16 in 0 : vector<1x256xf32>, vector<1x256xf32> -> vector<2x256xf32>
    %19 = tpu.iota {dimensions = array<i32: 1>} : vector<2x256xi32>
    %c15_i32 = arith.constant 15 : i32
    %20 = vector.broadcast %c15_i32 : i32 to vector<2x256xi32>
    %21 = arith.andi %19, %20 : vector<2x256xi32>
    %c4_i32 = arith.constant 4 : i32
    %22 = vector.broadcast %c4_i32 : i32 to vector<2x256xi32>
    %23 = arith.shrsi %19, %22 : vector<2x256xi32>
    %c-3_i32 = arith.constant -3 : i32
    %24 = vector.broadcast %c-3_i32 : i32 to vector<2x256xi32>
    %25 = arith.addi %21, %24 : vector<2x256xi32>
    %c0_i32 = arith.constant 0 : i32
    %26 = vector.broadcast %c0_i32 : i32 to vector<2x256xi32>
    %27 = arith.cmpi sge, %25, %26 : vector<2x256xi32>
    %c-3_i32_8 = arith.constant -3 : i32
    %28 = vector.broadcast %c-3_i32_8 : i32 to vector<2x256xi32>
    %29 = arith.addi %21, %28 : vector<2x256xi32>
    %c16_i32 = arith.constant 16 : i32
    %30 = vector.broadcast %c16_i32 : i32 to vector<2x256xi32>
    %31 = arith.cmpi slt, %29, %30 : vector<2x256xi32>
    %32 = arith.andi %27, %31 : vector<2x256xi1>
    %c-2_i32 = arith.constant -2 : i32
    %33 = vector.broadcast %c-2_i32 : i32 to vector<2x256xi32>
    %34 = arith.addi %21, %33 : vector<2x256xi32>
    %c0_i32_9 = arith.constant 0 : i32
    %35 = vector.broadcast %c0_i32_9 : i32 to vector<2x256xi32>
    %36 = arith.cmpi sge, %34, %35 : vector<2x256xi32>
    %c-2_i32_10 = arith.constant -2 : i32
    %37 = vector.broadcast %c-2_i32_10 : i32 to vector<2x256xi32>
    %38 = arith.addi %21, %37 : vector<2x256xi32>
    %c16_i32_11 = arith.constant 16 : i32
    %39 = vector.broadcast %c16_i32_11 : i32 to vector<2x256xi32>
    %40 = arith.cmpi slt, %38, %39 : vector<2x256xi32>
    %41 = arith.andi %36, %40 : vector<2x256xi1>
    %c-1_i32 = arith.constant -1 : i32
    %42 = vector.broadcast %c-1_i32 : i32 to vector<2x256xi32>
    %43 = arith.addi %21, %42 : vector<2x256xi32>
    %c0_i32_12 = arith.constant 0 : i32
    %44 = vector.broadcast %c0_i32_12 : i32 to vector<2x256xi32>
    %45 = arith.cmpi sge, %43, %44 : vector<2x256xi32>
    %c-1_i32_13 = arith.constant -1 : i32
    %46 = vector.broadcast %c-1_i32_13 : i32 to vector<2x256xi32>
    %47 = arith.addi %21, %46 : vector<2x256xi32>
    %c16_i32_14 = arith.constant 16 : i32
    %48 = vector.broadcast %c16_i32_14 : i32 to vector<2x256xi32>
    %49 = arith.cmpi slt, %47, %48 : vector<2x256xi32>
    %50 = arith.andi %45, %49 : vector<2x256xi1>
    %c0_i32_15 = arith.constant 0 : i32
    %51 = vector.broadcast %c0_i32_15 : i32 to vector<2x256xi32>
    %52 = arith.addi %21, %51 : vector<2x256xi32>
    %c0_i32_16 = arith.constant 0 : i32
    %53 = vector.broadcast %c0_i32_16 : i32 to vector<2x256xi32>
    %54 = arith.cmpi sge, %52, %53 : vector<2x256xi32>
    %c0_i32_17 = arith.constant 0 : i32
    %55 = vector.broadcast %c0_i32_17 : i32 to vector<2x256xi32>
    %56 = arith.addi %21, %55 : vector<2x256xi32>
    %c16_i32_18 = arith.constant 16 : i32
    %57 = vector.broadcast %c16_i32_18 : i32 to vector<2x256xi32>
    %58 = arith.cmpi slt, %56, %57 : vector<2x256xi32>
    %59 = arith.andi %54, %58 : vector<2x256xi1>
    %c1_i32 = arith.constant 1 : i32
    %60 = vector.broadcast %c1_i32 : i32 to vector<2x256xi32>
    %61 = arith.addi %21, %60 : vector<2x256xi32>
    %c0_i32_19 = arith.constant 0 : i32
    %62 = vector.broadcast %c0_i32_19 : i32 to vector<2x256xi32>
    %63 = arith.cmpi sge, %61, %62 : vector<2x256xi32>
    %c1_i32_20 = arith.constant 1 : i32
    %64 = vector.broadcast %c1_i32_20 : i32 to vector<2x256xi32>
    %65 = arith.addi %21, %64 : vector<2x256xi32>
    %c16_i32_21 = arith.constant 16 : i32
    %66 = vector.broadcast %c16_i32_21 : i32 to vector<2x256xi32>
    %67 = arith.cmpi slt, %65, %66 : vector<2x256xi32>
    %68 = arith.andi %63, %67 : vector<2x256xi1>
    %c2_i32 = arith.constant 2 : i32
    %69 = vector.broadcast %c2_i32 : i32 to vector<2x256xi32>
    %70 = arith.addi %21, %69 : vector<2x256xi32>
    %c0_i32_22 = arith.constant 0 : i32
    %71 = vector.broadcast %c0_i32_22 : i32 to vector<2x256xi32>
    %72 = arith.cmpi sge, %70, %71 : vector<2x256xi32>
    %c2_i32_23 = arith.constant 2 : i32
    %73 = vector.broadcast %c2_i32_23 : i32 to vector<2x256xi32>
    %74 = arith.addi %21, %73 : vector<2x256xi32>
    %c16_i32_24 = arith.constant 16 : i32
    %75 = vector.broadcast %c16_i32_24 : i32 to vector<2x256xi32>
    %76 = arith.cmpi slt, %74, %75 : vector<2x256xi32>
    %77 = arith.andi %72, %76 : vector<2x256xi1>
    %c3_i32 = arith.constant 3 : i32
    %78 = vector.broadcast %c3_i32 : i32 to vector<2x256xi32>
    %79 = arith.addi %21, %78 : vector<2x256xi32>
    %c0_i32_25 = arith.constant 0 : i32
    %80 = vector.broadcast %c0_i32_25 : i32 to vector<2x256xi32>
    %81 = arith.cmpi sge, %79, %80 : vector<2x256xi32>
    %c3_i32_26 = arith.constant 3 : i32
    %82 = vector.broadcast %c3_i32_26 : i32 to vector<2x256xi32>
    %83 = arith.addi %21, %82 : vector<2x256xi32>
    %c16_i32_27 = arith.constant 16 : i32
    %84 = vector.broadcast %c16_i32_27 : i32 to vector<2x256xi32>
    %85 = arith.cmpi slt, %83, %84 : vector<2x256xi32>
    %86 = arith.andi %81, %85 : vector<2x256xi1>
    %c-3_i32_28 = arith.constant -3 : i32
    %87 = vector.broadcast %c-3_i32_28 : i32 to vector<2x256xi32>
    %88 = arith.addi %23, %87 : vector<2x256xi32>
    %c0_i32_29 = arith.constant 0 : i32
    %89 = vector.broadcast %c0_i32_29 : i32 to vector<2x256xi32>
    %90 = arith.cmpi sge, %88, %89 : vector<2x256xi32>
    %c-3_i32_30 = arith.constant -3 : i32
    %91 = vector.broadcast %c-3_i32_30 : i32 to vector<2x256xi32>
    %92 = arith.addi %23, %91 : vector<2x256xi32>
    %c16_i32_31 = arith.constant 16 : i32
    %93 = vector.broadcast %c16_i32_31 : i32 to vector<2x256xi32>
    %94 = arith.cmpi slt, %92, %93 : vector<2x256xi32>
    %95 = arith.andi %90, %94 : vector<2x256xi1>
    %c-2_i32_32 = arith.constant -2 : i32
    %96 = vector.broadcast %c-2_i32_32 : i32 to vector<2x256xi32>
    %97 = arith.addi %23, %96 : vector<2x256xi32>
    %c0_i32_33 = arith.constant 0 : i32
    %98 = vector.broadcast %c0_i32_33 : i32 to vector<2x256xi32>
    %99 = arith.cmpi sge, %97, %98 : vector<2x256xi32>
    %c-2_i32_34 = arith.constant -2 : i32
    %100 = vector.broadcast %c-2_i32_34 : i32 to vector<2x256xi32>
    %101 = arith.addi %23, %100 : vector<2x256xi32>
    %c16_i32_35 = arith.constant 16 : i32
    %102 = vector.broadcast %c16_i32_35 : i32 to vector<2x256xi32>
    %103 = arith.cmpi slt, %101, %102 : vector<2x256xi32>
    %104 = arith.andi %99, %103 : vector<2x256xi1>
    %c-1_i32_36 = arith.constant -1 : i32
    %105 = vector.broadcast %c-1_i32_36 : i32 to vector<2x256xi32>
    %106 = arith.addi %23, %105 : vector<2x256xi32>
    %c0_i32_37 = arith.constant 0 : i32
    %107 = vector.broadcast %c0_i32_37 : i32 to vector<2x256xi32>
    %108 = arith.cmpi sge, %106, %107 : vector<2x256xi32>
    %c-1_i32_38 = arith.constant -1 : i32
    %109 = vector.broadcast %c-1_i32_38 : i32 to vector<2x256xi32>
    %110 = arith.addi %23, %109 : vector<2x256xi32>
    %c16_i32_39 = arith.constant 16 : i32
    %111 = vector.broadcast %c16_i32_39 : i32 to vector<2x256xi32>
    %112 = arith.cmpi slt, %110, %111 : vector<2x256xi32>
    %113 = arith.andi %108, %112 : vector<2x256xi1>
    %c0_i32_40 = arith.constant 0 : i32
    %114 = vector.broadcast %c0_i32_40 : i32 to vector<2x256xi32>
    %115 = arith.addi %23, %114 : vector<2x256xi32>
    %c0_i32_41 = arith.constant 0 : i32
    %116 = vector.broadcast %c0_i32_41 : i32 to vector<2x256xi32>
    %117 = arith.cmpi sge, %115, %116 : vector<2x256xi32>
    %c0_i32_42 = arith.constant 0 : i32
    %118 = vector.broadcast %c0_i32_42 : i32 to vector<2x256xi32>
    %119 = arith.addi %23, %118 : vector<2x256xi32>
    %c16_i32_43 = arith.constant 16 : i32
    %120 = vector.broadcast %c16_i32_43 : i32 to vector<2x256xi32>
    %121 = arith.cmpi slt, %119, %120 : vector<2x256xi32>
    %122 = arith.andi %117, %121 : vector<2x256xi1>
    %c1_i32_44 = arith.constant 1 : i32
    %123 = vector.broadcast %c1_i32_44 : i32 to vector<2x256xi32>
    %124 = arith.addi %23, %123 : vector<2x256xi32>
    %c0_i32_45 = arith.constant 0 : i32
    %125 = vector.broadcast %c0_i32_45 : i32 to vector<2x256xi32>
    %126 = arith.cmpi sge, %124, %125 : vector<2x256xi32>
    %c1_i32_46 = arith.constant 1 : i32
    %127 = vector.broadcast %c1_i32_46 : i32 to vector<2x256xi32>
    %128 = arith.addi %23, %127 : vector<2x256xi32>
    %c16_i32_47 = arith.constant 16 : i32
    %129 = vector.broadcast %c16_i32_47 : i32 to vector<2x256xi32>
    %130 = arith.cmpi slt, %128, %129 : vector<2x256xi32>
    %131 = arith.andi %126, %130 : vector<2x256xi1>
    %c2_i32_48 = arith.constant 2 : i32
    %132 = vector.broadcast %c2_i32_48 : i32 to vector<2x256xi32>
    %133 = arith.addi %23, %132 : vector<2x256xi32>
    %c0_i32_49 = arith.constant 0 : i32
    %134 = vector.broadcast %c0_i32_49 : i32 to vector<2x256xi32>
    %135 = arith.cmpi sge, %133, %134 : vector<2x256xi32>
    %c2_i32_50 = arith.constant 2 : i32
    %136 = vector.broadcast %c2_i32_50 : i32 to vector<2x256xi32>
    %137 = arith.addi %23, %136 : vector<2x256xi32>
    %c16_i32_51 = arith.constant 16 : i32
    %138 = vector.broadcast %c16_i32_51 : i32 to vector<2x256xi32>
    %139 = arith.cmpi slt, %137, %138 : vector<2x256xi32>
    %140 = arith.andi %135, %139 : vector<2x256xi1>
    %c3_i32_52 = arith.constant 3 : i32
    %141 = vector.broadcast %c3_i32_52 : i32 to vector<2x256xi32>
    %142 = arith.addi %23, %141 : vector<2x256xi32>
    %c0_i32_53 = arith.constant 0 : i32
    %143 = vector.broadcast %c0_i32_53 : i32 to vector<2x256xi32>
    %144 = arith.cmpi sge, %142, %143 : vector<2x256xi32>
    %c3_i32_54 = arith.constant 3 : i32
    %145 = vector.broadcast %c3_i32_54 : i32 to vector<2x256xi32>
    %146 = arith.addi %23, %145 : vector<2x256xi32>
    %c16_i32_55 = arith.constant 16 : i32
    %147 = vector.broadcast %c16_i32_55 : i32 to vector<2x256xi32>
    %148 = arith.cmpi slt, %146, %147 : vector<2x256xi32>
    %149 = arith.andi %144, %148 : vector<2x256xi1>
    %cst_56 = arith.constant 0.000000e+00 : f32
    %150 = vector.broadcast %cst_56 : f32 to vector<2x256xf32>
    %c51_i32 = arith.constant 51 : i32
    %151 = tpu.dynamic_rotate %17 by %c51_i32 dim 1 : vector<2x256xf32>, i32 -> vector<2x256xf32>
    %c51_i32_57 = arith.constant 51 : i32
    %152 = tpu.dynamic_rotate %18 by %c51_i32_57 dim 1 : vector<2x256xf32>, i32 -> vector<2x256xf32>
    %c0_58 = arith.constant 0 : index
    %153 = memref.load %arg2[%c0_58] : memref<98xf32, #tpu.memory_space<smem>>
    %154 = vector.broadcast %153 : f32 to vector<2x256xf32>
    %155 = arith.mulf %154, %151 : vector<2x256xf32>
    %c49 = arith.constant 49 : index
    %156 = memref.load %arg2[%c49] : memref<98xf32, #tpu.memory_space<smem>>
    %157 = vector.broadcast %156 : f32 to vector<2x256xf32>
    %158 = arith.mulf %157, %152 : vector<2x256xf32>
    %159 = arith.addf %155, %158 : vector<2x256xf32>
    %160 = arith.andi %95, %32 : vector<2x256xi1>
    %161 = arith.select %160, %159, %150 : vector<2x256xi1>, vector<2x256xf32>
    %162 = arith.addf %150, %161 : vector<2x256xf32>
    %c50_i32 = arith.constant 50 : i32
    %163 = tpu.dynamic_rotate %17 by %c50_i32 dim 1 : vector<2x256xf32>, i32 -> vector<2x256xf32>
    %c50_i32_59 = arith.constant 50 : i32
    %164 = tpu.dynamic_rotate %18 by %c50_i32_59 dim 1 : vector<2x256xf32>, i32 -> vector<2x256xf32>
    %c1 = arith.constant 1 : index
    %165 = memref.load %arg2[%c1] : memref<98xf32, #tpu.memory_space<smem>>
    %166 = vector.broadcast %165 : f32 to vector<2x256xf32>
    %167 = arith.mulf %166, %163 : vector<2x256xf32>
    %c50 = arith.constant 50 : index
    %168 = memref.load %arg2[%c50] : memref<98xf32, #tpu.memory_space<smem>>
    %169 = vector.broadcast %168 : f32 to vector<2x256xf32>
    %170 = arith.mulf %169, %164 : vector<2x256xf32>
    %171 = arith.addf %167, %170 : vector<2x256xf32>
    %172 = arith.andi %95, %41 : vector<2x256xi1>
    %173 = arith.select %172, %171, %150 : vector<2x256xi1>, vector<2x256xf32>
    %174 = arith.addf %162, %173 : vector<2x256xf32>
    %c49_i32 = arith.constant 49 : i32
    %175 = tpu.dynamic_rotate %17 by %c49_i32 dim 1 : vector<2x256xf32>, i32 -> vector<2x256xf32>
    %c49_i32_60 = arith.constant 49 : i32
    %176 = tpu.dynamic_rotate %18 by %c49_i32_60 dim 1 : vector<2x256xf32>, i32 -> vector<2x256xf32>
    %c2 = arith.constant 2 : index
    %177 = memref.load %arg2[%c2] : memref<98xf32, #tpu.memory_space<smem>>
    %178 = vector.broadcast %177 : f32 to vector<2x256xf32>
    %179 = arith.mulf %178, %175 : vector<2x256xf32>
    %c51 = arith.constant 51 : index
    %180 = memref.load %arg2[%c51] : memref<98xf32, #tpu.memory_space<smem>>
    %181 = vector.broadcast %180 : f32 to vector<2x256xf32>
    %182 = arith.mulf %181, %176 : vector<2x256xf32>
    %183 = arith.addf %179, %182 : vector<2x256xf32>
    %184 = arith.andi %95, %50 : vector<2x256xi1>
    %185 = arith.select %184, %183, %150 : vector<2x256xi1>, vector<2x256xf32>
    %186 = arith.addf %174, %185 : vector<2x256xf32>
    %c48_i32 = arith.constant 48 : i32
    %187 = tpu.dynamic_rotate %17 by %c48_i32 dim 1 : vector<2x256xf32>, i32 -> vector<2x256xf32>
    %c48_i32_61 = arith.constant 48 : i32
    %188 = tpu.dynamic_rotate %18 by %c48_i32_61 dim 1 : vector<2x256xf32>, i32 -> vector<2x256xf32>
    %c3 = arith.constant 3 : index
    %189 = memref.load %arg2[%c3] : memref<98xf32, #tpu.memory_space<smem>>
    %190 = vector.broadcast %189 : f32 to vector<2x256xf32>
    %191 = arith.mulf %190, %187 : vector<2x256xf32>
    %c52 = arith.constant 52 : index
    %192 = memref.load %arg2[%c52] : memref<98xf32, #tpu.memory_space<smem>>
    %193 = vector.broadcast %192 : f32 to vector<2x256xf32>
    %194 = arith.mulf %193, %188 : vector<2x256xf32>
    %195 = arith.addf %191, %194 : vector<2x256xf32>
    %196 = arith.andi %95, %59 : vector<2x256xi1>
    %197 = arith.select %196, %195, %150 : vector<2x256xi1>, vector<2x256xf32>
    %198 = arith.addf %186, %197 : vector<2x256xf32>
    %c47_i32 = arith.constant 47 : i32
    %199 = tpu.dynamic_rotate %17 by %c47_i32 dim 1 : vector<2x256xf32>, i32 -> vector<2x256xf32>
    %c47_i32_62 = arith.constant 47 : i32
    %200 = tpu.dynamic_rotate %18 by %c47_i32_62 dim 1 : vector<2x256xf32>, i32 -> vector<2x256xf32>
    %c4 = arith.constant 4 : index
    %201 = memref.load %arg2[%c4] : memref<98xf32, #tpu.memory_space<smem>>
    %202 = vector.broadcast %201 : f32 to vector<2x256xf32>
    %203 = arith.mulf %202, %199 : vector<2x256xf32>
    %c53 = arith.constant 53 : index
    %204 = memref.load %arg2[%c53] : memref<98xf32, #tpu.memory_space<smem>>
    %205 = vector.broadcast %204 : f32 to vector<2x256xf32>
    %206 = arith.mulf %205, %200 : vector<2x256xf32>
    %207 = arith.addf %203, %206 : vector<2x256xf32>
    %208 = arith.andi %95, %68 : vector<2x256xi1>
    %209 = arith.select %208, %207, %150 : vector<2x256xi1>, vector<2x256xf32>
    %210 = arith.addf %198, %209 : vector<2x256xf32>
    %c46_i32 = arith.constant 46 : i32
    %211 = tpu.dynamic_rotate %17 by %c46_i32 dim 1 : vector<2x256xf32>, i32 -> vector<2x256xf32>
    %c46_i32_63 = arith.constant 46 : i32
    %212 = tpu.dynamic_rotate %18 by %c46_i32_63 dim 1 : vector<2x256xf32>, i32 -> vector<2x256xf32>
    %c5 = arith.constant 5 : index
    %213 = memref.load %arg2[%c5] : memref<98xf32, #tpu.memory_space<smem>>
    %214 = vector.broadcast %213 : f32 to vector<2x256xf32>
    %215 = arith.mulf %214, %211 : vector<2x256xf32>
    %c54 = arith.constant 54 : index
    %216 = memref.load %arg2[%c54] : memref<98xf32, #tpu.memory_space<smem>>
    %217 = vector.broadcast %216 : f32 to vector<2x256xf32>
    %218 = arith.mulf %217, %212 : vector<2x256xf32>
    %219 = arith.addf %215, %218 : vector<2x256xf32>
    %220 = arith.andi %95, %77 : vector<2x256xi1>
    %221 = arith.select %220, %219, %150 : vector<2x256xi1>, vector<2x256xf32>
    %222 = arith.addf %210, %221 : vector<2x256xf32>
    %c45_i32 = arith.constant 45 : i32
    %223 = tpu.dynamic_rotate %17 by %c45_i32 dim 1 : vector<2x256xf32>, i32 -> vector<2x256xf32>
    %c45_i32_64 = arith.constant 45 : i32
    %224 = tpu.dynamic_rotate %18 by %c45_i32_64 dim 1 : vector<2x256xf32>, i32 -> vector<2x256xf32>
    %c6 = arith.constant 6 : index
    %225 = memref.load %arg2[%c6] : memref<98xf32, #tpu.memory_space<smem>>
    %226 = vector.broadcast %225 : f32 to vector<2x256xf32>
    %227 = arith.mulf %226, %223 : vector<2x256xf32>
    %c55 = arith.constant 55 : index
    %228 = memref.load %arg2[%c55] : memref<98xf32, #tpu.memory_space<smem>>
    %229 = vector.broadcast %228 : f32 to vector<2x256xf32>
    %230 = arith.mulf %229, %224 : vector<2x256xf32>
    %231 = arith.addf %227, %230 : vector<2x256xf32>
    %232 = arith.andi %95, %86 : vector<2x256xi1>
    %233 = arith.select %232, %231, %150 : vector<2x256xi1>, vector<2x256xf32>
    %234 = arith.addf %222, %233 : vector<2x256xf32>
    %c35_i32 = arith.constant 35 : i32
    %235 = tpu.dynamic_rotate %17 by %c35_i32 dim 1 : vector<2x256xf32>, i32 -> vector<2x256xf32>
    %c35_i32_65 = arith.constant 35 : i32
    %236 = tpu.dynamic_rotate %18 by %c35_i32_65 dim 1 : vector<2x256xf32>, i32 -> vector<2x256xf32>
    %c7 = arith.constant 7 : index
    %237 = memref.load %arg2[%c7] : memref<98xf32, #tpu.memory_space<smem>>
    %238 = vector.broadcast %237 : f32 to vector<2x256xf32>
    %239 = arith.mulf %238, %235 : vector<2x256xf32>
    %c56 = arith.constant 56 : index
    %240 = memref.load %arg2[%c56] : memref<98xf32, #tpu.memory_space<smem>>
    %241 = vector.broadcast %240 : f32 to vector<2x256xf32>
    %242 = arith.mulf %241, %236 : vector<2x256xf32>
    %243 = arith.addf %239, %242 : vector<2x256xf32>
    %244 = arith.andi %104, %32 : vector<2x256xi1>
    %245 = arith.select %244, %243, %150 : vector<2x256xi1>, vector<2x256xf32>
    %246 = arith.addf %234, %245 : vector<2x256xf32>
    %c34_i32 = arith.constant 34 : i32
    %247 = tpu.dynamic_rotate %17 by %c34_i32 dim 1 : vector<2x256xf32>, i32 -> vector<2x256xf32>
    %c34_i32_66 = arith.constant 34 : i32
    %248 = tpu.dynamic_rotate %18 by %c34_i32_66 dim 1 : vector<2x256xf32>, i32 -> vector<2x256xf32>
    %c8 = arith.constant 8 : index
    %249 = memref.load %arg2[%c8] : memref<98xf32, #tpu.memory_space<smem>>
    %250 = vector.broadcast %249 : f32 to vector<2x256xf32>
    %251 = arith.mulf %250, %247 : vector<2x256xf32>
    %c57 = arith.constant 57 : index
    %252 = memref.load %arg2[%c57] : memref<98xf32, #tpu.memory_space<smem>>
    %253 = vector.broadcast %252 : f32 to vector<2x256xf32>
    %254 = arith.mulf %253, %248 : vector<2x256xf32>
    %255 = arith.addf %251, %254 : vector<2x256xf32>
    %256 = arith.andi %104, %41 : vector<2x256xi1>
    %257 = arith.select %256, %255, %150 : vector<2x256xi1>, vector<2x256xf32>
    %258 = arith.addf %246, %257 : vector<2x256xf32>
    %c33_i32 = arith.constant 33 : i32
    %259 = tpu.dynamic_rotate %17 by %c33_i32 dim 1 : vector<2x256xf32>, i32 -> vector<2x256xf32>
    %c33_i32_67 = arith.constant 33 : i32
    %260 = tpu.dynamic_rotate %18 by %c33_i32_67 dim 1 : vector<2x256xf32>, i32 -> vector<2x256xf32>
    %c9 = arith.constant 9 : index
    %261 = memref.load %arg2[%c9] : memref<98xf32, #tpu.memory_space<smem>>
    %262 = vector.broadcast %261 : f32 to vector<2x256xf32>
    %263 = arith.mulf %262, %259 : vector<2x256xf32>
    %c58 = arith.constant 58 : index
    %264 = memref.load %arg2[%c58] : memref<98xf32, #tpu.memory_space<smem>>
    %265 = vector.broadcast %264 : f32 to vector<2x256xf32>
    %266 = arith.mulf %265, %260 : vector<2x256xf32>
    %267 = arith.addf %263, %266 : vector<2x256xf32>
    %268 = arith.andi %104, %50 : vector<2x256xi1>
    %269 = arith.select %268, %267, %150 : vector<2x256xi1>, vector<2x256xf32>
    %270 = arith.addf %258, %269 : vector<2x256xf32>
    %c32_i32 = arith.constant 32 : i32
    %271 = tpu.dynamic_rotate %17 by %c32_i32 dim 1 : vector<2x256xf32>, i32 -> vector<2x256xf32>
    %c32_i32_68 = arith.constant 32 : i32
    %272 = tpu.dynamic_rotate %18 by %c32_i32_68 dim 1 : vector<2x256xf32>, i32 -> vector<2x256xf32>
    %c10 = arith.constant 10 : index
    %273 = memref.load %arg2[%c10] : memref<98xf32, #tpu.memory_space<smem>>
    %274 = vector.broadcast %273 : f32 to vector<2x256xf32>
    %275 = arith.mulf %274, %271 : vector<2x256xf32>
    %c59 = arith.constant 59 : index
    %276 = memref.load %arg2[%c59] : memref<98xf32, #tpu.memory_space<smem>>
    %277 = vector.broadcast %276 : f32 to vector<2x256xf32>
    %278 = arith.mulf %277, %272 : vector<2x256xf32>
    %279 = arith.addf %275, %278 : vector<2x256xf32>
    %280 = arith.andi %104, %59 : vector<2x256xi1>
    %281 = arith.select %280, %279, %150 : vector<2x256xi1>, vector<2x256xf32>
    %282 = arith.addf %270, %281 : vector<2x256xf32>
    %c31_i32 = arith.constant 31 : i32
    %283 = tpu.dynamic_rotate %17 by %c31_i32 dim 1 : vector<2x256xf32>, i32 -> vector<2x256xf32>
    %c31_i32_69 = arith.constant 31 : i32
    %284 = tpu.dynamic_rotate %18 by %c31_i32_69 dim 1 : vector<2x256xf32>, i32 -> vector<2x256xf32>
    %c11 = arith.constant 11 : index
    %285 = memref.load %arg2[%c11] : memref<98xf32, #tpu.memory_space<smem>>
    %286 = vector.broadcast %285 : f32 to vector<2x256xf32>
    %287 = arith.mulf %286, %283 : vector<2x256xf32>
    %c60 = arith.constant 60 : index
    %288 = memref.load %arg2[%c60] : memref<98xf32, #tpu.memory_space<smem>>
    %289 = vector.broadcast %288 : f32 to vector<2x256xf32>
    %290 = arith.mulf %289, %284 : vector<2x256xf32>
    %291 = arith.addf %287, %290 : vector<2x256xf32>
    %292 = arith.andi %104, %68 : vector<2x256xi1>
    %293 = arith.select %292, %291, %150 : vector<2x256xi1>, vector<2x256xf32>
    %294 = arith.addf %282, %293 : vector<2x256xf32>
    %c30_i32 = arith.constant 30 : i32
    %295 = tpu.dynamic_rotate %17 by %c30_i32 dim 1 : vector<2x256xf32>, i32 -> vector<2x256xf32>
    %c30_i32_70 = arith.constant 30 : i32
    %296 = tpu.dynamic_rotate %18 by %c30_i32_70 dim 1 : vector<2x256xf32>, i32 -> vector<2x256xf32>
    %c12 = arith.constant 12 : index
    %297 = memref.load %arg2[%c12] : memref<98xf32, #tpu.memory_space<smem>>
    %298 = vector.broadcast %297 : f32 to vector<2x256xf32>
    %299 = arith.mulf %298, %295 : vector<2x256xf32>
    %c61 = arith.constant 61 : index
    %300 = memref.load %arg2[%c61] : memref<98xf32, #tpu.memory_space<smem>>
    %301 = vector.broadcast %300 : f32 to vector<2x256xf32>
    %302 = arith.mulf %301, %296 : vector<2x256xf32>
    %303 = arith.addf %299, %302 : vector<2x256xf32>
    %304 = arith.andi %104, %77 : vector<2x256xi1>
    %305 = arith.select %304, %303, %150 : vector<2x256xi1>, vector<2x256xf32>
    %306 = arith.addf %294, %305 : vector<2x256xf32>
    %c29_i32 = arith.constant 29 : i32
    %307 = tpu.dynamic_rotate %17 by %c29_i32 dim 1 : vector<2x256xf32>, i32 -> vector<2x256xf32>
    %c29_i32_71 = arith.constant 29 : i32
    %308 = tpu.dynamic_rotate %18 by %c29_i32_71 dim 1 : vector<2x256xf32>, i32 -> vector<2x256xf32>
    %c13 = arith.constant 13 : index
    %309 = memref.load %arg2[%c13] : memref<98xf32, #tpu.memory_space<smem>>
    %310 = vector.broadcast %309 : f32 to vector<2x256xf32>
    %311 = arith.mulf %310, %307 : vector<2x256xf32>
    %c62 = arith.constant 62 : index
    %312 = memref.load %arg2[%c62] : memref<98xf32, #tpu.memory_space<smem>>
    %313 = vector.broadcast %312 : f32 to vector<2x256xf32>
    %314 = arith.mulf %313, %308 : vector<2x256xf32>
    %315 = arith.addf %311, %314 : vector<2x256xf32>
    %316 = arith.andi %104, %86 : vector<2x256xi1>
    %317 = arith.select %316, %315, %150 : vector<2x256xi1>, vector<2x256xf32>
    %318 = arith.addf %306, %317 : vector<2x256xf32>
    %c19_i32 = arith.constant 19 : i32
    %319 = tpu.dynamic_rotate %17 by %c19_i32 dim 1 : vector<2x256xf32>, i32 -> vector<2x256xf32>
    %c19_i32_72 = arith.constant 19 : i32
    %320 = tpu.dynamic_rotate %18 by %c19_i32_72 dim 1 : vector<2x256xf32>, i32 -> vector<2x256xf32>
    %c14 = arith.constant 14 : index
    %321 = memref.load %arg2[%c14] : memref<98xf32, #tpu.memory_space<smem>>
    %322 = vector.broadcast %321 : f32 to vector<2x256xf32>
    %323 = arith.mulf %322, %319 : vector<2x256xf32>
    %c63 = arith.constant 63 : index
    %324 = memref.load %arg2[%c63] : memref<98xf32, #tpu.memory_space<smem>>
    %325 = vector.broadcast %324 : f32 to vector<2x256xf32>
    %326 = arith.mulf %325, %320 : vector<2x256xf32>
    %327 = arith.addf %323, %326 : vector<2x256xf32>
    %328 = arith.andi %113, %32 : vector<2x256xi1>
    %329 = arith.select %328, %327, %150 : vector<2x256xi1>, vector<2x256xf32>
    %330 = arith.addf %318, %329 : vector<2x256xf32>
    %c18_i32 = arith.constant 18 : i32
    %331 = tpu.dynamic_rotate %17 by %c18_i32 dim 1 : vector<2x256xf32>, i32 -> vector<2x256xf32>
    %c18_i32_73 = arith.constant 18 : i32
    %332 = tpu.dynamic_rotate %18 by %c18_i32_73 dim 1 : vector<2x256xf32>, i32 -> vector<2x256xf32>
    %c15 = arith.constant 15 : index
    %333 = memref.load %arg2[%c15] : memref<98xf32, #tpu.memory_space<smem>>
    %334 = vector.broadcast %333 : f32 to vector<2x256xf32>
    %335 = arith.mulf %334, %331 : vector<2x256xf32>
    %c64 = arith.constant 64 : index
    %336 = memref.load %arg2[%c64] : memref<98xf32, #tpu.memory_space<smem>>
    %337 = vector.broadcast %336 : f32 to vector<2x256xf32>
    %338 = arith.mulf %337, %332 : vector<2x256xf32>
    %339 = arith.addf %335, %338 : vector<2x256xf32>
    %340 = arith.andi %113, %41 : vector<2x256xi1>
    %341 = arith.select %340, %339, %150 : vector<2x256xi1>, vector<2x256xf32>
    %342 = arith.addf %330, %341 : vector<2x256xf32>
    %c17_i32 = arith.constant 17 : i32
    %343 = tpu.dynamic_rotate %17 by %c17_i32 dim 1 : vector<2x256xf32>, i32 -> vector<2x256xf32>
    %c17_i32_74 = arith.constant 17 : i32
    %344 = tpu.dynamic_rotate %18 by %c17_i32_74 dim 1 : vector<2x256xf32>, i32 -> vector<2x256xf32>
    %c16 = arith.constant 16 : index
    %345 = memref.load %arg2[%c16] : memref<98xf32, #tpu.memory_space<smem>>
    %346 = vector.broadcast %345 : f32 to vector<2x256xf32>
    %347 = arith.mulf %346, %343 : vector<2x256xf32>
    %c65 = arith.constant 65 : index
    %348 = memref.load %arg2[%c65] : memref<98xf32, #tpu.memory_space<smem>>
    %349 = vector.broadcast %348 : f32 to vector<2x256xf32>
    %350 = arith.mulf %349, %344 : vector<2x256xf32>
    %351 = arith.addf %347, %350 : vector<2x256xf32>
    %352 = arith.andi %113, %50 : vector<2x256xi1>
    %353 = arith.select %352, %351, %150 : vector<2x256xi1>, vector<2x256xf32>
    %354 = arith.addf %342, %353 : vector<2x256xf32>
    %c16_i32_75 = arith.constant 16 : i32
    %355 = tpu.dynamic_rotate %17 by %c16_i32_75 dim 1 : vector<2x256xf32>, i32 -> vector<2x256xf32>
    %c16_i32_76 = arith.constant 16 : i32
    %356 = tpu.dynamic_rotate %18 by %c16_i32_76 dim 1 : vector<2x256xf32>, i32 -> vector<2x256xf32>
    %c17 = arith.constant 17 : index
    %357 = memref.load %arg2[%c17] : memref<98xf32, #tpu.memory_space<smem>>
    %358 = vector.broadcast %357 : f32 to vector<2x256xf32>
    %359 = arith.mulf %358, %355 : vector<2x256xf32>
    %c66 = arith.constant 66 : index
    %360 = memref.load %arg2[%c66] : memref<98xf32, #tpu.memory_space<smem>>
    %361 = vector.broadcast %360 : f32 to vector<2x256xf32>
    %362 = arith.mulf %361, %356 : vector<2x256xf32>
    %363 = arith.addf %359, %362 : vector<2x256xf32>
    %364 = arith.andi %113, %59 : vector<2x256xi1>
    %365 = arith.select %364, %363, %150 : vector<2x256xi1>, vector<2x256xf32>
    %366 = arith.addf %354, %365 : vector<2x256xf32>
    %c15_i32_77 = arith.constant 15 : i32
    %367 = tpu.dynamic_rotate %17 by %c15_i32_77 dim 1 : vector<2x256xf32>, i32 -> vector<2x256xf32>
    %c15_i32_78 = arith.constant 15 : i32
    %368 = tpu.dynamic_rotate %18 by %c15_i32_78 dim 1 : vector<2x256xf32>, i32 -> vector<2x256xf32>
    %c18 = arith.constant 18 : index
    %369 = memref.load %arg2[%c18] : memref<98xf32, #tpu.memory_space<smem>>
    %370 = vector.broadcast %369 : f32 to vector<2x256xf32>
    %371 = arith.mulf %370, %367 : vector<2x256xf32>
    %c67 = arith.constant 67 : index
    %372 = memref.load %arg2[%c67] : memref<98xf32, #tpu.memory_space<smem>>
    %373 = vector.broadcast %372 : f32 to vector<2x256xf32>
    %374 = arith.mulf %373, %368 : vector<2x256xf32>
    %375 = arith.addf %371, %374 : vector<2x256xf32>
    %376 = arith.andi %113, %68 : vector<2x256xi1>
    %377 = arith.select %376, %375, %150 : vector<2x256xi1>, vector<2x256xf32>
    %378 = arith.addf %366, %377 : vector<2x256xf32>
    %c14_i32 = arith.constant 14 : i32
    %379 = tpu.dynamic_rotate %17 by %c14_i32 dim 1 : vector<2x256xf32>, i32 -> vector<2x256xf32>
    %c14_i32_79 = arith.constant 14 : i32
    %380 = tpu.dynamic_rotate %18 by %c14_i32_79 dim 1 : vector<2x256xf32>, i32 -> vector<2x256xf32>
    %c19 = arith.constant 19 : index
    %381 = memref.load %arg2[%c19] : memref<98xf32, #tpu.memory_space<smem>>
    %382 = vector.broadcast %381 : f32 to vector<2x256xf32>
    %383 = arith.mulf %382, %379 : vector<2x256xf32>
    %c68 = arith.constant 68 : index
    %384 = memref.load %arg2[%c68] : memref<98xf32, #tpu.memory_space<smem>>
    %385 = vector.broadcast %384 : f32 to vector<2x256xf32>
    %386 = arith.mulf %385, %380 : vector<2x256xf32>
    %387 = arith.addf %383, %386 : vector<2x256xf32>
    %388 = arith.andi %113, %77 : vector<2x256xi1>
    %389 = arith.select %388, %387, %150 : vector<2x256xi1>, vector<2x256xf32>
    %390 = arith.addf %378, %389 : vector<2x256xf32>
    %c13_i32 = arith.constant 13 : i32
    %391 = tpu.dynamic_rotate %17 by %c13_i32 dim 1 : vector<2x256xf32>, i32 -> vector<2x256xf32>
    %c13_i32_80 = arith.constant 13 : i32
    %392 = tpu.dynamic_rotate %18 by %c13_i32_80 dim 1 : vector<2x256xf32>, i32 -> vector<2x256xf32>
    %c20 = arith.constant 20 : index
    %393 = memref.load %arg2[%c20] : memref<98xf32, #tpu.memory_space<smem>>
    %394 = vector.broadcast %393 : f32 to vector<2x256xf32>
    %395 = arith.mulf %394, %391 : vector<2x256xf32>
    %c69 = arith.constant 69 : index
    %396 = memref.load %arg2[%c69] : memref<98xf32, #tpu.memory_space<smem>>
    %397 = vector.broadcast %396 : f32 to vector<2x256xf32>
    %398 = arith.mulf %397, %392 : vector<2x256xf32>
    %399 = arith.addf %395, %398 : vector<2x256xf32>
    %400 = arith.andi %113, %86 : vector<2x256xi1>
    %401 = arith.select %400, %399, %150 : vector<2x256xi1>, vector<2x256xf32>
    %402 = arith.addf %390, %401 : vector<2x256xf32>
    %c3_i32_81 = arith.constant 3 : i32
    %403 = tpu.dynamic_rotate %17 by %c3_i32_81 dim 1 : vector<2x256xf32>, i32 -> vector<2x256xf32>
    %c3_i32_82 = arith.constant 3 : i32
    %404 = tpu.dynamic_rotate %18 by %c3_i32_82 dim 1 : vector<2x256xf32>, i32 -> vector<2x256xf32>
    %c21 = arith.constant 21 : index
    %405 = memref.load %arg2[%c21] : memref<98xf32, #tpu.memory_space<smem>>
    %406 = vector.broadcast %405 : f32 to vector<2x256xf32>
    %407 = arith.mulf %406, %403 : vector<2x256xf32>
    %c70 = arith.constant 70 : index
    %408 = memref.load %arg2[%c70] : memref<98xf32, #tpu.memory_space<smem>>
    %409 = vector.broadcast %408 : f32 to vector<2x256xf32>
    %410 = arith.mulf %409, %404 : vector<2x256xf32>
    %411 = arith.addf %407, %410 : vector<2x256xf32>
    %412 = arith.andi %122, %32 : vector<2x256xi1>
    %413 = arith.select %412, %411, %150 : vector<2x256xi1>, vector<2x256xf32>
    %414 = arith.addf %402, %413 : vector<2x256xf32>
    %c2_i32_83 = arith.constant 2 : i32
    %415 = tpu.dynamic_rotate %17 by %c2_i32_83 dim 1 : vector<2x256xf32>, i32 -> vector<2x256xf32>
    %c2_i32_84 = arith.constant 2 : i32
    %416 = tpu.dynamic_rotate %18 by %c2_i32_84 dim 1 : vector<2x256xf32>, i32 -> vector<2x256xf32>
    %c22 = arith.constant 22 : index
    %417 = memref.load %arg2[%c22] : memref<98xf32, #tpu.memory_space<smem>>
    %418 = vector.broadcast %417 : f32 to vector<2x256xf32>
    %419 = arith.mulf %418, %415 : vector<2x256xf32>
    %c71 = arith.constant 71 : index
    %420 = memref.load %arg2[%c71] : memref<98xf32, #tpu.memory_space<smem>>
    %421 = vector.broadcast %420 : f32 to vector<2x256xf32>
    %422 = arith.mulf %421, %416 : vector<2x256xf32>
    %423 = arith.addf %419, %422 : vector<2x256xf32>
    %424 = arith.andi %122, %41 : vector<2x256xi1>
    %425 = arith.select %424, %423, %150 : vector<2x256xi1>, vector<2x256xf32>
    %426 = arith.addf %414, %425 : vector<2x256xf32>
    %c1_i32_85 = arith.constant 1 : i32
    %427 = tpu.dynamic_rotate %17 by %c1_i32_85 dim 1 : vector<2x256xf32>, i32 -> vector<2x256xf32>
    %c1_i32_86 = arith.constant 1 : i32
    %428 = tpu.dynamic_rotate %18 by %c1_i32_86 dim 1 : vector<2x256xf32>, i32 -> vector<2x256xf32>
    %c23 = arith.constant 23 : index
    %429 = memref.load %arg2[%c23] : memref<98xf32, #tpu.memory_space<smem>>
    %430 = vector.broadcast %429 : f32 to vector<2x256xf32>
    %431 = arith.mulf %430, %427 : vector<2x256xf32>
    %c72 = arith.constant 72 : index
    %432 = memref.load %arg2[%c72] : memref<98xf32, #tpu.memory_space<smem>>
    %433 = vector.broadcast %432 : f32 to vector<2x256xf32>
    %434 = arith.mulf %433, %428 : vector<2x256xf32>
    %435 = arith.addf %431, %434 : vector<2x256xf32>
    %436 = arith.andi %122, %50 : vector<2x256xi1>
    %437 = arith.select %436, %435, %150 : vector<2x256xi1>, vector<2x256xf32>
    %438 = arith.addf %426, %437 : vector<2x256xf32>
    %c24 = arith.constant 24 : index
    %439 = memref.load %arg2[%c24] : memref<98xf32, #tpu.memory_space<smem>>
    %440 = vector.broadcast %439 : f32 to vector<2x256xf32>
    %441 = arith.mulf %440, %17 : vector<2x256xf32>
    %c73 = arith.constant 73 : index
    %442 = memref.load %arg2[%c73] : memref<98xf32, #tpu.memory_space<smem>>
    %443 = vector.broadcast %442 : f32 to vector<2x256xf32>
    %444 = arith.mulf %443, %18 : vector<2x256xf32>
    %445 = arith.addf %441, %444 : vector<2x256xf32>
    %446 = arith.andi %122, %59 : vector<2x256xi1>
    %447 = arith.select %446, %445, %150 : vector<2x256xi1>, vector<2x256xf32>
    %448 = arith.addf %438, %447 : vector<2x256xf32>
    %c255_i32 = arith.constant 255 : i32
    %449 = tpu.dynamic_rotate %17 by %c255_i32 dim 1 : vector<2x256xf32>, i32 -> vector<2x256xf32>
    %c255_i32_87 = arith.constant 255 : i32
    %450 = tpu.dynamic_rotate %18 by %c255_i32_87 dim 1 : vector<2x256xf32>, i32 -> vector<2x256xf32>
    %c25 = arith.constant 25 : index
    %451 = memref.load %arg2[%c25] : memref<98xf32, #tpu.memory_space<smem>>
    %452 = vector.broadcast %451 : f32 to vector<2x256xf32>
    %453 = arith.mulf %452, %449 : vector<2x256xf32>
    %c74 = arith.constant 74 : index
    %454 = memref.load %arg2[%c74] : memref<98xf32, #tpu.memory_space<smem>>
    %455 = vector.broadcast %454 : f32 to vector<2x256xf32>
    %456 = arith.mulf %455, %450 : vector<2x256xf32>
    %457 = arith.addf %453, %456 : vector<2x256xf32>
    %458 = arith.andi %122, %68 : vector<2x256xi1>
    %459 = arith.select %458, %457, %150 : vector<2x256xi1>, vector<2x256xf32>
    %460 = arith.addf %448, %459 : vector<2x256xf32>
    %c254_i32 = arith.constant 254 : i32
    %461 = tpu.dynamic_rotate %17 by %c254_i32 dim 1 : vector<2x256xf32>, i32 -> vector<2x256xf32>
    %c254_i32_88 = arith.constant 254 : i32
    %462 = tpu.dynamic_rotate %18 by %c254_i32_88 dim 1 : vector<2x256xf32>, i32 -> vector<2x256xf32>
    %c26 = arith.constant 26 : index
    %463 = memref.load %arg2[%c26] : memref<98xf32, #tpu.memory_space<smem>>
    %464 = vector.broadcast %463 : f32 to vector<2x256xf32>
    %465 = arith.mulf %464, %461 : vector<2x256xf32>
    %c75 = arith.constant 75 : index
    %466 = memref.load %arg2[%c75] : memref<98xf32, #tpu.memory_space<smem>>
    %467 = vector.broadcast %466 : f32 to vector<2x256xf32>
    %468 = arith.mulf %467, %462 : vector<2x256xf32>
    %469 = arith.addf %465, %468 : vector<2x256xf32>
    %470 = arith.andi %122, %77 : vector<2x256xi1>
    %471 = arith.select %470, %469, %150 : vector<2x256xi1>, vector<2x256xf32>
    %472 = arith.addf %460, %471 : vector<2x256xf32>
    %c253_i32 = arith.constant 253 : i32
    %473 = tpu.dynamic_rotate %17 by %c253_i32 dim 1 : vector<2x256xf32>, i32 -> vector<2x256xf32>
    %c253_i32_89 = arith.constant 253 : i32
    %474 = tpu.dynamic_rotate %18 by %c253_i32_89 dim 1 : vector<2x256xf32>, i32 -> vector<2x256xf32>
    %c27 = arith.constant 27 : index
    %475 = memref.load %arg2[%c27] : memref<98xf32, #tpu.memory_space<smem>>
    %476 = vector.broadcast %475 : f32 to vector<2x256xf32>
    %477 = arith.mulf %476, %473 : vector<2x256xf32>
    %c76 = arith.constant 76 : index
    %478 = memref.load %arg2[%c76] : memref<98xf32, #tpu.memory_space<smem>>
    %479 = vector.broadcast %478 : f32 to vector<2x256xf32>
    %480 = arith.mulf %479, %474 : vector<2x256xf32>
    %481 = arith.addf %477, %480 : vector<2x256xf32>
    %482 = arith.andi %122, %86 : vector<2x256xi1>
    %483 = arith.select %482, %481, %150 : vector<2x256xi1>, vector<2x256xf32>
    %484 = arith.addf %472, %483 : vector<2x256xf32>
    %c243_i32 = arith.constant 243 : i32
    %485 = tpu.dynamic_rotate %17 by %c243_i32 dim 1 : vector<2x256xf32>, i32 -> vector<2x256xf32>
    %c243_i32_90 = arith.constant 243 : i32
    %486 = tpu.dynamic_rotate %18 by %c243_i32_90 dim 1 : vector<2x256xf32>, i32 -> vector<2x256xf32>
    %c28 = arith.constant 28 : index
    %487 = memref.load %arg2[%c28] : memref<98xf32, #tpu.memory_space<smem>>
    %488 = vector.broadcast %487 : f32 to vector<2x256xf32>
    %489 = arith.mulf %488, %485 : vector<2x256xf32>
    %c77 = arith.constant 77 : index
    %490 = memref.load %arg2[%c77] : memref<98xf32, #tpu.memory_space<smem>>
    %491 = vector.broadcast %490 : f32 to vector<2x256xf32>
    %492 = arith.mulf %491, %486 : vector<2x256xf32>
    %493 = arith.addf %489, %492 : vector<2x256xf32>
    %494 = arith.andi %131, %32 : vector<2x256xi1>
    %495 = arith.select %494, %493, %150 : vector<2x256xi1>, vector<2x256xf32>
    %496 = arith.addf %484, %495 : vector<2x256xf32>
    %c242_i32 = arith.constant 242 : i32
    %497 = tpu.dynamic_rotate %17 by %c242_i32 dim 1 : vector<2x256xf32>, i32 -> vector<2x256xf32>
    %c242_i32_91 = arith.constant 242 : i32
    %498 = tpu.dynamic_rotate %18 by %c242_i32_91 dim 1 : vector<2x256xf32>, i32 -> vector<2x256xf32>
    %c29 = arith.constant 29 : index
    %499 = memref.load %arg2[%c29] : memref<98xf32, #tpu.memory_space<smem>>
    %500 = vector.broadcast %499 : f32 to vector<2x256xf32>
    %501 = arith.mulf %500, %497 : vector<2x256xf32>
    %c78 = arith.constant 78 : index
    %502 = memref.load %arg2[%c78] : memref<98xf32, #tpu.memory_space<smem>>
    %503 = vector.broadcast %502 : f32 to vector<2x256xf32>
    %504 = arith.mulf %503, %498 : vector<2x256xf32>
    %505 = arith.addf %501, %504 : vector<2x256xf32>
    %506 = arith.andi %131, %41 : vector<2x256xi1>
    %507 = arith.select %506, %505, %150 : vector<2x256xi1>, vector<2x256xf32>
    %508 = arith.addf %496, %507 : vector<2x256xf32>
    %c241_i32 = arith.constant 241 : i32
    %509 = tpu.dynamic_rotate %17 by %c241_i32 dim 1 : vector<2x256xf32>, i32 -> vector<2x256xf32>
    %c241_i32_92 = arith.constant 241 : i32
    %510 = tpu.dynamic_rotate %18 by %c241_i32_92 dim 1 : vector<2x256xf32>, i32 -> vector<2x256xf32>
    %c30 = arith.constant 30 : index
    %511 = memref.load %arg2[%c30] : memref<98xf32, #tpu.memory_space<smem>>
    %512 = vector.broadcast %511 : f32 to vector<2x256xf32>
    %513 = arith.mulf %512, %509 : vector<2x256xf32>
    %c79 = arith.constant 79 : index
    %514 = memref.load %arg2[%c79] : memref<98xf32, #tpu.memory_space<smem>>
    %515 = vector.broadcast %514 : f32 to vector<2x256xf32>
    %516 = arith.mulf %515, %510 : vector<2x256xf32>
    %517 = arith.addf %513, %516 : vector<2x256xf32>
    %518 = arith.andi %131, %50 : vector<2x256xi1>
    %519 = arith.select %518, %517, %150 : vector<2x256xi1>, vector<2x256xf32>
    %520 = arith.addf %508, %519 : vector<2x256xf32>
    %c240_i32 = arith.constant 240 : i32
    %521 = tpu.dynamic_rotate %17 by %c240_i32 dim 1 : vector<2x256xf32>, i32 -> vector<2x256xf32>
    %c240_i32_93 = arith.constant 240 : i32
    %522 = tpu.dynamic_rotate %18 by %c240_i32_93 dim 1 : vector<2x256xf32>, i32 -> vector<2x256xf32>
    %c31 = arith.constant 31 : index
    %523 = memref.load %arg2[%c31] : memref<98xf32, #tpu.memory_space<smem>>
    %524 = vector.broadcast %523 : f32 to vector<2x256xf32>
    %525 = arith.mulf %524, %521 : vector<2x256xf32>
    %c80 = arith.constant 80 : index
    %526 = memref.load %arg2[%c80] : memref<98xf32, #tpu.memory_space<smem>>
    %527 = vector.broadcast %526 : f32 to vector<2x256xf32>
    %528 = arith.mulf %527, %522 : vector<2x256xf32>
    %529 = arith.addf %525, %528 : vector<2x256xf32>
    %530 = arith.andi %131, %59 : vector<2x256xi1>
    %531 = arith.select %530, %529, %150 : vector<2x256xi1>, vector<2x256xf32>
    %532 = arith.addf %520, %531 : vector<2x256xf32>
    %c239_i32 = arith.constant 239 : i32
    %533 = tpu.dynamic_rotate %17 by %c239_i32 dim 1 : vector<2x256xf32>, i32 -> vector<2x256xf32>
    %c239_i32_94 = arith.constant 239 : i32
    %534 = tpu.dynamic_rotate %18 by %c239_i32_94 dim 1 : vector<2x256xf32>, i32 -> vector<2x256xf32>
    %c32 = arith.constant 32 : index
    %535 = memref.load %arg2[%c32] : memref<98xf32, #tpu.memory_space<smem>>
    %536 = vector.broadcast %535 : f32 to vector<2x256xf32>
    %537 = arith.mulf %536, %533 : vector<2x256xf32>
    %c81 = arith.constant 81 : index
    %538 = memref.load %arg2[%c81] : memref<98xf32, #tpu.memory_space<smem>>
    %539 = vector.broadcast %538 : f32 to vector<2x256xf32>
    %540 = arith.mulf %539, %534 : vector<2x256xf32>
    %541 = arith.addf %537, %540 : vector<2x256xf32>
    %542 = arith.andi %131, %68 : vector<2x256xi1>
    %543 = arith.select %542, %541, %150 : vector<2x256xi1>, vector<2x256xf32>
    %544 = arith.addf %532, %543 : vector<2x256xf32>
    %c238_i32 = arith.constant 238 : i32
    %545 = tpu.dynamic_rotate %17 by %c238_i32 dim 1 : vector<2x256xf32>, i32 -> vector<2x256xf32>
    %c238_i32_95 = arith.constant 238 : i32
    %546 = tpu.dynamic_rotate %18 by %c238_i32_95 dim 1 : vector<2x256xf32>, i32 -> vector<2x256xf32>
    %c33 = arith.constant 33 : index
    %547 = memref.load %arg2[%c33] : memref<98xf32, #tpu.memory_space<smem>>
    %548 = vector.broadcast %547 : f32 to vector<2x256xf32>
    %549 = arith.mulf %548, %545 : vector<2x256xf32>
    %c82 = arith.constant 82 : index
    %550 = memref.load %arg2[%c82] : memref<98xf32, #tpu.memory_space<smem>>
    %551 = vector.broadcast %550 : f32 to vector<2x256xf32>
    %552 = arith.mulf %551, %546 : vector<2x256xf32>
    %553 = arith.addf %549, %552 : vector<2x256xf32>
    %554 = arith.andi %131, %77 : vector<2x256xi1>
    %555 = arith.select %554, %553, %150 : vector<2x256xi1>, vector<2x256xf32>
    %556 = arith.addf %544, %555 : vector<2x256xf32>
    %c237_i32 = arith.constant 237 : i32
    %557 = tpu.dynamic_rotate %17 by %c237_i32 dim 1 : vector<2x256xf32>, i32 -> vector<2x256xf32>
    %c237_i32_96 = arith.constant 237 : i32
    %558 = tpu.dynamic_rotate %18 by %c237_i32_96 dim 1 : vector<2x256xf32>, i32 -> vector<2x256xf32>
    %c34 = arith.constant 34 : index
    %559 = memref.load %arg2[%c34] : memref<98xf32, #tpu.memory_space<smem>>
    %560 = vector.broadcast %559 : f32 to vector<2x256xf32>
    %561 = arith.mulf %560, %557 : vector<2x256xf32>
    %c83 = arith.constant 83 : index
    %562 = memref.load %arg2[%c83] : memref<98xf32, #tpu.memory_space<smem>>
    %563 = vector.broadcast %562 : f32 to vector<2x256xf32>
    %564 = arith.mulf %563, %558 : vector<2x256xf32>
    %565 = arith.addf %561, %564 : vector<2x256xf32>
    %566 = arith.andi %131, %86 : vector<2x256xi1>
    %567 = arith.select %566, %565, %150 : vector<2x256xi1>, vector<2x256xf32>
    %568 = arith.addf %556, %567 : vector<2x256xf32>
    %c227_i32 = arith.constant 227 : i32
    %569 = tpu.dynamic_rotate %17 by %c227_i32 dim 1 : vector<2x256xf32>, i32 -> vector<2x256xf32>
    %c227_i32_97 = arith.constant 227 : i32
    %570 = tpu.dynamic_rotate %18 by %c227_i32_97 dim 1 : vector<2x256xf32>, i32 -> vector<2x256xf32>
    %c35 = arith.constant 35 : index
    %571 = memref.load %arg2[%c35] : memref<98xf32, #tpu.memory_space<smem>>
    %572 = vector.broadcast %571 : f32 to vector<2x256xf32>
    %573 = arith.mulf %572, %569 : vector<2x256xf32>
    %c84 = arith.constant 84 : index
    %574 = memref.load %arg2[%c84] : memref<98xf32, #tpu.memory_space<smem>>
    %575 = vector.broadcast %574 : f32 to vector<2x256xf32>
    %576 = arith.mulf %575, %570 : vector<2x256xf32>
    %577 = arith.addf %573, %576 : vector<2x256xf32>
    %578 = arith.andi %140, %32 : vector<2x256xi1>
    %579 = arith.select %578, %577, %150 : vector<2x256xi1>, vector<2x256xf32>
    %580 = arith.addf %568, %579 : vector<2x256xf32>
    %c226_i32 = arith.constant 226 : i32
    %581 = tpu.dynamic_rotate %17 by %c226_i32 dim 1 : vector<2x256xf32>, i32 -> vector<2x256xf32>
    %c226_i32_98 = arith.constant 226 : i32
    %582 = tpu.dynamic_rotate %18 by %c226_i32_98 dim 1 : vector<2x256xf32>, i32 -> vector<2x256xf32>
    %c36 = arith.constant 36 : index
    %583 = memref.load %arg2[%c36] : memref<98xf32, #tpu.memory_space<smem>>
    %584 = vector.broadcast %583 : f32 to vector<2x256xf32>
    %585 = arith.mulf %584, %581 : vector<2x256xf32>
    %c85 = arith.constant 85 : index
    %586 = memref.load %arg2[%c85] : memref<98xf32, #tpu.memory_space<smem>>
    %587 = vector.broadcast %586 : f32 to vector<2x256xf32>
    %588 = arith.mulf %587, %582 : vector<2x256xf32>
    %589 = arith.addf %585, %588 : vector<2x256xf32>
    %590 = arith.andi %140, %41 : vector<2x256xi1>
    %591 = arith.select %590, %589, %150 : vector<2x256xi1>, vector<2x256xf32>
    %592 = arith.addf %580, %591 : vector<2x256xf32>
    %c225_i32 = arith.constant 225 : i32
    %593 = tpu.dynamic_rotate %17 by %c225_i32 dim 1 : vector<2x256xf32>, i32 -> vector<2x256xf32>
    %c225_i32_99 = arith.constant 225 : i32
    %594 = tpu.dynamic_rotate %18 by %c225_i32_99 dim 1 : vector<2x256xf32>, i32 -> vector<2x256xf32>
    %c37 = arith.constant 37 : index
    %595 = memref.load %arg2[%c37] : memref<98xf32, #tpu.memory_space<smem>>
    %596 = vector.broadcast %595 : f32 to vector<2x256xf32>
    %597 = arith.mulf %596, %593 : vector<2x256xf32>
    %c86 = arith.constant 86 : index
    %598 = memref.load %arg2[%c86] : memref<98xf32, #tpu.memory_space<smem>>
    %599 = vector.broadcast %598 : f32 to vector<2x256xf32>
    %600 = arith.mulf %599, %594 : vector<2x256xf32>
    %601 = arith.addf %597, %600 : vector<2x256xf32>
    %602 = arith.andi %140, %50 : vector<2x256xi1>
    %603 = arith.select %602, %601, %150 : vector<2x256xi1>, vector<2x256xf32>
    %604 = arith.addf %592, %603 : vector<2x256xf32>
    %c224_i32 = arith.constant 224 : i32
    %605 = tpu.dynamic_rotate %17 by %c224_i32 dim 1 : vector<2x256xf32>, i32 -> vector<2x256xf32>
    %c224_i32_100 = arith.constant 224 : i32
    %606 = tpu.dynamic_rotate %18 by %c224_i32_100 dim 1 : vector<2x256xf32>, i32 -> vector<2x256xf32>
    %c38 = arith.constant 38 : index
    %607 = memref.load %arg2[%c38] : memref<98xf32, #tpu.memory_space<smem>>
    %608 = vector.broadcast %607 : f32 to vector<2x256xf32>
    %609 = arith.mulf %608, %605 : vector<2x256xf32>
    %c87 = arith.constant 87 : index
    %610 = memref.load %arg2[%c87] : memref<98xf32, #tpu.memory_space<smem>>
    %611 = vector.broadcast %610 : f32 to vector<2x256xf32>
    %612 = arith.mulf %611, %606 : vector<2x256xf32>
    %613 = arith.addf %609, %612 : vector<2x256xf32>
    %614 = arith.andi %140, %59 : vector<2x256xi1>
    %615 = arith.select %614, %613, %150 : vector<2x256xi1>, vector<2x256xf32>
    %616 = arith.addf %604, %615 : vector<2x256xf32>
    %c223_i32 = arith.constant 223 : i32
    %617 = tpu.dynamic_rotate %17 by %c223_i32 dim 1 : vector<2x256xf32>, i32 -> vector<2x256xf32>
    %c223_i32_101 = arith.constant 223 : i32
    %618 = tpu.dynamic_rotate %18 by %c223_i32_101 dim 1 : vector<2x256xf32>, i32 -> vector<2x256xf32>
    %c39 = arith.constant 39 : index
    %619 = memref.load %arg2[%c39] : memref<98xf32, #tpu.memory_space<smem>>
    %620 = vector.broadcast %619 : f32 to vector<2x256xf32>
    %621 = arith.mulf %620, %617 : vector<2x256xf32>
    %c88 = arith.constant 88 : index
    %622 = memref.load %arg2[%c88] : memref<98xf32, #tpu.memory_space<smem>>
    %623 = vector.broadcast %622 : f32 to vector<2x256xf32>
    %624 = arith.mulf %623, %618 : vector<2x256xf32>
    %625 = arith.addf %621, %624 : vector<2x256xf32>
    %626 = arith.andi %140, %68 : vector<2x256xi1>
    %627 = arith.select %626, %625, %150 : vector<2x256xi1>, vector<2x256xf32>
    %628 = arith.addf %616, %627 : vector<2x256xf32>
    %c222_i32 = arith.constant 222 : i32
    %629 = tpu.dynamic_rotate %17 by %c222_i32 dim 1 : vector<2x256xf32>, i32 -> vector<2x256xf32>
    %c222_i32_102 = arith.constant 222 : i32
    %630 = tpu.dynamic_rotate %18 by %c222_i32_102 dim 1 : vector<2x256xf32>, i32 -> vector<2x256xf32>
    %c40 = arith.constant 40 : index
    %631 = memref.load %arg2[%c40] : memref<98xf32, #tpu.memory_space<smem>>
    %632 = vector.broadcast %631 : f32 to vector<2x256xf32>
    %633 = arith.mulf %632, %629 : vector<2x256xf32>
    %c89 = arith.constant 89 : index
    %634 = memref.load %arg2[%c89] : memref<98xf32, #tpu.memory_space<smem>>
    %635 = vector.broadcast %634 : f32 to vector<2x256xf32>
    %636 = arith.mulf %635, %630 : vector<2x256xf32>
    %637 = arith.addf %633, %636 : vector<2x256xf32>
    %638 = arith.andi %140, %77 : vector<2x256xi1>
    %639 = arith.select %638, %637, %150 : vector<2x256xi1>, vector<2x256xf32>
    %640 = arith.addf %628, %639 : vector<2x256xf32>
    %c221_i32 = arith.constant 221 : i32
    %641 = tpu.dynamic_rotate %17 by %c221_i32 dim 1 : vector<2x256xf32>, i32 -> vector<2x256xf32>
    %c221_i32_103 = arith.constant 221 : i32
    %642 = tpu.dynamic_rotate %18 by %c221_i32_103 dim 1 : vector<2x256xf32>, i32 -> vector<2x256xf32>
    %c41 = arith.constant 41 : index
    %643 = memref.load %arg2[%c41] : memref<98xf32, #tpu.memory_space<smem>>
    %644 = vector.broadcast %643 : f32 to vector<2x256xf32>
    %645 = arith.mulf %644, %641 : vector<2x256xf32>
    %c90 = arith.constant 90 : index
    %646 = memref.load %arg2[%c90] : memref<98xf32, #tpu.memory_space<smem>>
    %647 = vector.broadcast %646 : f32 to vector<2x256xf32>
    %648 = arith.mulf %647, %642 : vector<2x256xf32>
    %649 = arith.addf %645, %648 : vector<2x256xf32>
    %650 = arith.andi %140, %86 : vector<2x256xi1>
    %651 = arith.select %650, %649, %150 : vector<2x256xi1>, vector<2x256xf32>
    %652 = arith.addf %640, %651 : vector<2x256xf32>
    %c211_i32 = arith.constant 211 : i32
    %653 = tpu.dynamic_rotate %17 by %c211_i32 dim 1 : vector<2x256xf32>, i32 -> vector<2x256xf32>
    %c211_i32_104 = arith.constant 211 : i32
    %654 = tpu.dynamic_rotate %18 by %c211_i32_104 dim 1 : vector<2x256xf32>, i32 -> vector<2x256xf32>
    %c42 = arith.constant 42 : index
    %655 = memref.load %arg2[%c42] : memref<98xf32, #tpu.memory_space<smem>>
    %656 = vector.broadcast %655 : f32 to vector<2x256xf32>
    %657 = arith.mulf %656, %653 : vector<2x256xf32>
    %c91 = arith.constant 91 : index
    %658 = memref.load %arg2[%c91] : memref<98xf32, #tpu.memory_space<smem>>
    %659 = vector.broadcast %658 : f32 to vector<2x256xf32>
    %660 = arith.mulf %659, %654 : vector<2x256xf32>
    %661 = arith.addf %657, %660 : vector<2x256xf32>
    %662 = arith.andi %149, %32 : vector<2x256xi1>
    %663 = arith.select %662, %661, %150 : vector<2x256xi1>, vector<2x256xf32>
    %664 = arith.addf %652, %663 : vector<2x256xf32>
    %c210_i32 = arith.constant 210 : i32
    %665 = tpu.dynamic_rotate %17 by %c210_i32 dim 1 : vector<2x256xf32>, i32 -> vector<2x256xf32>
    %c210_i32_105 = arith.constant 210 : i32
    %666 = tpu.dynamic_rotate %18 by %c210_i32_105 dim 1 : vector<2x256xf32>, i32 -> vector<2x256xf32>
    %c43 = arith.constant 43 : index
    %667 = memref.load %arg2[%c43] : memref<98xf32, #tpu.memory_space<smem>>
    %668 = vector.broadcast %667 : f32 to vector<2x256xf32>
    %669 = arith.mulf %668, %665 : vector<2x256xf32>
    %c92 = arith.constant 92 : index
    %670 = memref.load %arg2[%c92] : memref<98xf32, #tpu.memory_space<smem>>
    %671 = vector.broadcast %670 : f32 to vector<2x256xf32>
    %672 = arith.mulf %671, %666 : vector<2x256xf32>
    %673 = arith.addf %669, %672 : vector<2x256xf32>
    %674 = arith.andi %149, %41 : vector<2x256xi1>
    %675 = arith.select %674, %673, %150 : vector<2x256xi1>, vector<2x256xf32>
    %676 = arith.addf %664, %675 : vector<2x256xf32>
    %c209_i32 = arith.constant 209 : i32
    %677 = tpu.dynamic_rotate %17 by %c209_i32 dim 1 : vector<2x256xf32>, i32 -> vector<2x256xf32>
    %c209_i32_106 = arith.constant 209 : i32
    %678 = tpu.dynamic_rotate %18 by %c209_i32_106 dim 1 : vector<2x256xf32>, i32 -> vector<2x256xf32>
    %c44 = arith.constant 44 : index
    %679 = memref.load %arg2[%c44] : memref<98xf32, #tpu.memory_space<smem>>
    %680 = vector.broadcast %679 : f32 to vector<2x256xf32>
    %681 = arith.mulf %680, %677 : vector<2x256xf32>
    %c93 = arith.constant 93 : index
    %682 = memref.load %arg2[%c93] : memref<98xf32, #tpu.memory_space<smem>>
    %683 = vector.broadcast %682 : f32 to vector<2x256xf32>
    %684 = arith.mulf %683, %678 : vector<2x256xf32>
    %685 = arith.addf %681, %684 : vector<2x256xf32>
    %686 = arith.andi %149, %50 : vector<2x256xi1>
    %687 = arith.select %686, %685, %150 : vector<2x256xi1>, vector<2x256xf32>
    %688 = arith.addf %676, %687 : vector<2x256xf32>
    %c208_i32 = arith.constant 208 : i32
    %689 = tpu.dynamic_rotate %17 by %c208_i32 dim 1 : vector<2x256xf32>, i32 -> vector<2x256xf32>
    %c208_i32_107 = arith.constant 208 : i32
    %690 = tpu.dynamic_rotate %18 by %c208_i32_107 dim 1 : vector<2x256xf32>, i32 -> vector<2x256xf32>
    %c45 = arith.constant 45 : index
    %691 = memref.load %arg2[%c45] : memref<98xf32, #tpu.memory_space<smem>>
    %692 = vector.broadcast %691 : f32 to vector<2x256xf32>
    %693 = arith.mulf %692, %689 : vector<2x256xf32>
    %c94 = arith.constant 94 : index
    %694 = memref.load %arg2[%c94] : memref<98xf32, #tpu.memory_space<smem>>
    %695 = vector.broadcast %694 : f32 to vector<2x256xf32>
    %696 = arith.mulf %695, %690 : vector<2x256xf32>
    %697 = arith.addf %693, %696 : vector<2x256xf32>
    %698 = arith.andi %149, %59 : vector<2x256xi1>
    %699 = arith.select %698, %697, %150 : vector<2x256xi1>, vector<2x256xf32>
    %700 = arith.addf %688, %699 : vector<2x256xf32>
    %c207_i32 = arith.constant 207 : i32
    %701 = tpu.dynamic_rotate %17 by %c207_i32 dim 1 : vector<2x256xf32>, i32 -> vector<2x256xf32>
    %c207_i32_108 = arith.constant 207 : i32
    %702 = tpu.dynamic_rotate %18 by %c207_i32_108 dim 1 : vector<2x256xf32>, i32 -> vector<2x256xf32>
    %c46 = arith.constant 46 : index
    %703 = memref.load %arg2[%c46] : memref<98xf32, #tpu.memory_space<smem>>
    %704 = vector.broadcast %703 : f32 to vector<2x256xf32>
    %705 = arith.mulf %704, %701 : vector<2x256xf32>
    %c95 = arith.constant 95 : index
    %706 = memref.load %arg2[%c95] : memref<98xf32, #tpu.memory_space<smem>>
    %707 = vector.broadcast %706 : f32 to vector<2x256xf32>
    %708 = arith.mulf %707, %702 : vector<2x256xf32>
    %709 = arith.addf %705, %708 : vector<2x256xf32>
    %710 = arith.andi %149, %68 : vector<2x256xi1>
    %711 = arith.select %710, %709, %150 : vector<2x256xi1>, vector<2x256xf32>
    %712 = arith.addf %700, %711 : vector<2x256xf32>
    %c206_i32 = arith.constant 206 : i32
    %713 = tpu.dynamic_rotate %17 by %c206_i32 dim 1 : vector<2x256xf32>, i32 -> vector<2x256xf32>
    %c206_i32_109 = arith.constant 206 : i32
    %714 = tpu.dynamic_rotate %18 by %c206_i32_109 dim 1 : vector<2x256xf32>, i32 -> vector<2x256xf32>
    %c47 = arith.constant 47 : index
    %715 = memref.load %arg2[%c47] : memref<98xf32, #tpu.memory_space<smem>>
    %716 = vector.broadcast %715 : f32 to vector<2x256xf32>
    %717 = arith.mulf %716, %713 : vector<2x256xf32>
    %c96 = arith.constant 96 : index
    %718 = memref.load %arg2[%c96] : memref<98xf32, #tpu.memory_space<smem>>
    %719 = vector.broadcast %718 : f32 to vector<2x256xf32>
    %720 = arith.mulf %719, %714 : vector<2x256xf32>
    %721 = arith.addf %717, %720 : vector<2x256xf32>
    %722 = arith.andi %149, %77 : vector<2x256xi1>
    %723 = arith.select %722, %721, %150 : vector<2x256xi1>, vector<2x256xf32>
    %724 = arith.addf %712, %723 : vector<2x256xf32>
    %c205_i32 = arith.constant 205 : i32
    %725 = tpu.dynamic_rotate %17 by %c205_i32 dim 1 : vector<2x256xf32>, i32 -> vector<2x256xf32>
    %c205_i32_110 = arith.constant 205 : i32
    %726 = tpu.dynamic_rotate %18 by %c205_i32_110 dim 1 : vector<2x256xf32>, i32 -> vector<2x256xf32>
    %c48 = arith.constant 48 : index
    %727 = memref.load %arg2[%c48] : memref<98xf32, #tpu.memory_space<smem>>
    %728 = vector.broadcast %727 : f32 to vector<2x256xf32>
    %729 = arith.mulf %728, %725 : vector<2x256xf32>
    %c97 = arith.constant 97 : index
    %730 = memref.load %arg2[%c97] : memref<98xf32, #tpu.memory_space<smem>>
    %731 = vector.broadcast %730 : f32 to vector<2x256xf32>
    %732 = arith.mulf %731, %726 : vector<2x256xf32>
    %733 = arith.addf %729, %732 : vector<2x256xf32>
    %734 = arith.andi %149, %86 : vector<2x256xi1>
    %735 = arith.select %734, %733, %150 : vector<2x256xi1>, vector<2x256xf32>
    %736 = arith.addf %724, %735 : vector<2x256xf32>
    %737 = vector.shape_cast %736 : vector<2x256xf32> to vector<1x2x256xf32>
    %cst_111 = arith.constant dense<0.000000e+00> : vector<1xf32>
    %738 = vector.multi_reduction <add>, %737, %cst_111 [1, 2] : vector<1x2x256xf32> to vector<1xf32>
    %739 = vector.shape_cast %738 : vector<1xf32> to vector<1x1x1xf32>
    %740 = vector.extract %739[0, 0, 0] : f32 from vector<1x1x1xf32>
    %741 = arith.mulf %736, %736 : vector<2x256xf32>
    %742 = vector.shape_cast %741 : vector<2x256xf32> to vector<1x2x256xf32>
    %cst_112 = arith.constant dense<0.000000e+00> : vector<1xf32>
    %743 = vector.multi_reduction <add>, %742, %cst_112 [1, 2] : vector<1x2x256xf32> to vector<1xf32>
    %744 = vector.shape_cast %743 : vector<1xf32> to vector<1x1x1xf32>
    %745 = vector.extract %744[0, 0, 0] : f32 from vector<1x1x1xf32>
    %cst_113 = arith.constant 5.120000e+02 : f32
    %746 = arith.divf %740, %cst_113 : f32
    %cst_114 = arith.constant 5.120000e+02 : f32
    %747 = arith.divf %745, %cst_114 : f32
    %748 = arith.mulf %746, %746 : f32
    %749 = arith.subf %747, %748 : f32
    %c0_115 = arith.constant 0 : index
    %750 = memref.load %arg3[%c0_115] : memref<2xf32, #tpu.memory_space<smem>>
    %cst_116 = arith.constant 9.99999974E-6 : f32
    %751 = arith.addf %749, %cst_116 : f32
    %752 = math.rsqrt %751 : f32
    %753 = arith.mulf %750, %752 : f32
    %754 = vector.broadcast %746 : f32 to vector<2x256xf32>
    %755 = arith.subf %736, %754 : vector<2x256xf32>
    %756 = vector.broadcast %753 : f32 to vector<2x256xf32>
    %757 = arith.mulf %755, %756 : vector<2x256xf32>
    %c1_117 = arith.constant 1 : index
    %758 = memref.load %arg3[%c1_117] : memref<2xf32, #tpu.memory_space<smem>>
    %759 = vector.broadcast %758 : f32 to vector<2x256xf32>
    %760 = arith.addf %757, %759 : vector<2x256xf32>
    %761 = vector.extract_strided_slice %760 {offsets = [0, 0], sizes = [1, 256], strides = [1, 1]} : vector<2x256xf32> to vector<1x256xf32>
    %762 = vector.shape_cast %761 : vector<1x256xf32> to vector<1x256xf32>
    %763 = vector.broadcast %762 : vector<1x256xf32> to vector<4x256xf32>
    %764 = vector.extract_strided_slice %760 {offsets = [1, 0], sizes = [1, 256], strides = [1, 1]} : vector<2x256xf32> to vector<1x256xf32>
    %765 = vector.shape_cast %764 : vector<1x256xf32> to vector<1x256xf32>
    %766 = vector.broadcast %765 : vector<1x256xf32> to vector<4x256xf32>
    %767 = tpu.concatenate %763, %766 in 0 : vector<4x256xf32>, vector<4x256xf32> -> vector<8x256xf32>
    %768 = arith.addf %0, %767 : vector<8x256xf32>
    %c0_118 = arith.constant 0 : index
    %c0_119 = arith.constant 0 : index
    %769 = vector.load %arg4[%c0_118, %c0_119] : memref<8x256xf32, #tpu.memory_space<vmem>>, vector<8x256xf32>
    tpu.vector_store %arg4[%c0_118, %c0_119], %768 {strides = array<i32>} : memref<8x256xf32, #tpu.memory_space<vmem>>, vector<8x256xf32>,
    %770 = arith.addf %1, %767 : vector<8x256xf32>
    %c0_120 = arith.constant 0 : index
    %c0_121 = arith.constant 0 : index
    %771 = vector.load %arg5[%c0_120, %c0_121] : memref<8x256xf32, #tpu.memory_space<vmem>>, vector<8x256xf32>
    tpu.vector_store %arg5[%c0_120, %c0_121], %770 {strides = array<i32>} : memref<8x256xf32, #tpu.memory_space<vmem>>, vector<8x256xf32>,
    return
  }
}

</mosaic_0001>

<bundles_post_ra>
// kernel: sam_forward.1
= control target key start
LH: loop header
LB: loop body
LE: loop exit
PB: predicated region body
PF: predicated region fallthrough
CT: control target
= control target key end

     0   :  { %s4699_s0 = inlined_call_operand.vmem [shape: f32[8,256], index: 0, kind: input, shape index: {}]   ;;  %s4700_s1 = inlined_call_operand.vmem [shape: f32[8,256], index: 1, kind: input, shape index: {}]   ;;  %s4701_s2 = inlined_call_operand.vmem [shape: f32[98], index: 2, kind: input, shape index: {}]   ;;  %s4702_s3 = inlined_call_operand.vmem [shape: f32[2], index: 3, kind: input, shape index: {}]   ;;  %s4703_s4 = inlined_call_operand.vmem [shape: f32[8,256], index: 4, kind: output, shape index: {0}]   ;;  %s4704_s5 = inlined_call_operand.vmem [shape: f32[8,256], index: 5, kind: output, shape index: {1}]  }
   0x1   :  { %4784 = sst [smem:[#allocation51_spill]] %s4699_s0 }
   0x2   :  { %4785 = sst [smem:[#allocation52_spill]] %s4700_s1 }
   0x3   :  { %4786 = sst [smem:[#allocation53_spill]] %s4703_s4 }
   0x4   :  { %4787 = sst [smem:[#allocation54_spill]] %s4704_s5 }
   0x5   :  { %11 = vsyncpa [#allocation3], 0  ;;  %s23_s20 = sshll.u32 %s4701_s2, 4  ;;  %s24_s20 = int_to_ptr.vmem [resolvable:$true] %s23_s20 }
   0x6   :  { %12 = vsyncpa [#allocation5], 0  ;;  %s33_s23 = sshll.u32 %s4702_s3, 4  ;;  %s1894_s24 = scalar_lea.vmem %s24_s20, 16  ;;  %s34_s23 = int_to_ptr.vmem [resolvable:$true] %s33_s23 }
   0x7   :  { %p1895_p0 = scmp.ne.s32.totalorder %s24_s20, %s1894_s24  ;;  %p1899_p1 = scmp.lt.s32.totalorder %s24_s20, %s24_s20 }
   0x8   :  { %p1900_p2 = scmp.lt.s32.totalorder %s1894_s24, %s1894_s24 }
   0xa   :  { %p1901_p3 = por %p1900_p2, %p1899_p1 }
   0xc   :  { %p1902_p4 = pnand %p1901_p3, %p1895_p0 }
   0xe   :  { %1905 = shalt.err (!%p1902_p4)
}
   0xf   :  { %s1922_s25 = smov [#allocation2]   ;;  %s1906_s26 = scalar_lea.vmem %s34_s23, 16 }
  0x10   :  { %26 = dma.vmem_to_smem %s24_s20, 16, %s1922_s25, [#allocation3]  }
  0x11   :  { %p1907_p5 = scmp.ne.s32.totalorder %s34_s23, %s1906_s26  ;;  %p1911_p6 = scmp.lt.s32.totalorder %s34_s23, %s34_s23 }
  0x12   :  { %p1912_p7 = scmp.lt.s32.totalorder %s1906_s26, %s1906_s26 }
  0x14   :  { %p1913_p8 = por %p1912_p7, %p1911_p6 }
  0x16   :  { %p1914_p9 = pnand %p1913_p8, %p1907_p5 }
  0x18   :  { %1917 = shalt.err (!%p1914_p9)
}
  0x19   :  { %s1923_s2 = smov [#allocation4]  }
  0x1a   :  { %36 = dma.vmem_to_smem %s34_s23, 16, %s1923_s2, [#allocation5]  }
  0x1b   :  { %1918 = dma.done.wait [#allocation3], 16  }
  0x1c   :  { %1919 = vsyncadd [#allocation3], 4294967280 }
  0x1d   :  { %1920 = dma.done.wait [#allocation5], 16  }
  0x1e   :  { %1921 = vsyncadd [#allocation5], 4294967280 }
  0x1f   :  { %43 = sfence }
  0x20   :  { %v45_v0 = vld [vmem:[%s4699_s0 + $0x8] sm:$0xff]  ;;  %vm4757_vm0 = vcmask 1043456   ;;  %vm82_vm1 = vcmask 1047556   ;;  %v44_v3 = vld [vmem:[%s4699_s0] sm:$0xff]  ;;  %vm119_vm2 = vcmask 1040384   ;;  %s1924_s9 = smov 50  }
  0x21   :  { %v47_v1 = vld [vmem:[%s4700_s1 + $0x8] sm:$0xff]  ;;  %v46_v4 = vld [vmem:[%s4700_s1] sm:$0xff]  ;;  %s1925_s10 = smov 51   ;;  %s1926_s11 = smov 49  }
  0x22   :  { %v49_v2 = vsub.f32 %v45_v0, %v47_v1  ;;  %v48_v5 = vsub.f32 %v44_v3, %v46_v4  ;;  %s1927_s12 = smov 48   ;;  %s1928_s13 = smov 47  }
  0x23   :  { %s1929_s14 = smov 46   ;;  %s1930_s15 = smov 45  }
  0x24   :  { %v58_v6 = vsel %vm4757_vm0, %v49_v2, -inf  ;;  %v90_v7 = vsel %vm82_vm1, %v49_v2, -inf  ;;  %v72_v8 = vsel %vm4757_vm0, %v49_v2, 0.0  ;;  %v100_v9 = vrot.slane %v49_v2, 4  ;;  %s1931_s16 = smov 35   ;;  %s1932_s17 = smov 34  }
  0x25   :  { %v59_v10 = vrot.slane %v58_v6, 4  ;;  %v91_v11 = vrot.slane %v90_v7, 4  ;;  %v51_v12 = vsel %vm4757_vm0, %v48_v5, -inf  ;;  %v83_v13 = vsel %vm82_vm1, %v48_v5, -inf  ;;  %s1933_s18 = smov 33   ;;  %s1934_s19 = smov 32  }
  0x26   :  { %v52_v14 = vrot.slane %v51_v12, 4  ;;  %v84_v15 = vrot.slane %v83_v13, 4  ;;  %v65_v16 = vsel %vm4757_vm0, %v48_v5, 0.0  ;;  %v99_v17 = vrot.slane %v48_v5, 4  ;;  %s1935_s20 = smov 31   ;;  %s1936_s21 = smov 30  }
  0x27   :  { %v60_v18 = vmax.f32 %v58_v6, %v59_v10  ;;  %v92_v19 = vmax.f32 %v90_v7, %v91_v11  ;;  %v66_v20 = vrot.slane %v65_v16, 4  ;;  %v73_v21 = vrot.slane %v72_v8, 4  ;;  %s1937_s22 = smov 29   ;;  %s1938_s23 = smov 19  }
  0x28   :  { %v53_v22 = vmax.f32 %v51_v12, %v52_v14  ;;  %v85_v23 = vmax.f32 %v83_v13, %v84_v15  ;;  %v103_v24 = vsel %vm4757_vm0, %v99_v17, 0.0  ;;  %v110_v25 = vsel %vm4757_vm0, %v100_v9, 0.0  ;;  %s1939_s24 = smov 18   ;;  %s1940_s25 = smov 17  }
  0x29   :  { %v61_v26 = vrot.slane %v60_v18, 2  ;;  %v93_v27 = vrot.slane %v92_v19, 2  ;;  %v67_v28 = vadd.f32 %v66_v20, %v65_v16  ;;  %v104_v29 = vrot.slane %v103_v24, 4  ;;  %s1941_s26 = smov 16   ;;  %s1942_s2 = smov 15  }
  0x2a   :  { %v54_v30 = vrot.slane %v53_v22, 2  ;;  %v86_v31 = vrot.slane %v85_v23, 2  ;;  %v74_v32 = vadd.f32 %v73_v21, %v72_v8  ;;  %v111_v33 = vrot.slane %v110_v25, 4  ;;  %s1943_s3 = smov 14   ;;  %s1944_s27 = smov 13  }
  0x2b   :  { %v62_v34 = vmax.f32 %v60_v18, %v61_v26  ;;  %v94_v35 = vmax.f32 %v92_v19, %v93_v27  ;;  %v68_v36 = vrot.slane %v67_v28, 2  ;;  %v105_v37 = vadd.f32 %v104_v29, %v103_v24  ;;  %s1945_s28 = smov 3   ;;  %s1946_s29 = smov 2  }
  0x2c   :  { %v55_v38 = vmax.f32 %v53_v22, %v54_v30  ;;  %v87_v39 = vmax.f32 %v85_v23, %v86_v31  ;;  %v75_v40 = vrot.slane %v74_v32, 2  ;;  %v112_v41 = vadd.f32 %v111_v33, %v110_v25  ;;  %s1947_s30 = smov 1   ;;  %s2204_s6 = sld [smem:[#allocation2]] }
  0x2d   :  { %v63_v42 = vrot.slane %v62_v34, 1  ;;  %v95_v43 = vrot.slane %v94_v35, 1  ;;  %v69_v44 = vadd.f32 %v68_v36, %v67_v28  ;;  %v106_v45 = vrot.slane %v105_v37, 2  ;;  %s2208_s7 = sld [smem:[#allocation2 + $0x1]]  ;;  %s1951_s0 = smov 115  }
  0x2e   :  { %v56_v46 = vrot.slane %v55_v38, 1  ;;  %v88_v47 = vrot.slane %v87_v39, 1  ;;  %v76_v48 = vadd.f32 %v75_v40, %v74_v32  ;;  %v113_v49 = vrot.slane %v112_v41, 2  ;;  %s2212_s8 = sld [smem:[#allocation2 + $0x31]] }
  0x2f   :  { %v64_v50 = vmax.f32 %v62_v34, %v63_v42  ;;  %v96_v51 = vmax.f32 %v94_v35, %v95_v43  ;;  %v70_v52 = vrot.slane %v69_v44, 1  ;;  %v107_v53 = vadd.f32 %v106_v45, %v105_v37  ;;  %s2316_s5 = sld [smem:[#allocation2 + $0xd]] }
  0x30   :  { %v57_v54 = vmax.f32 %v55_v38, %v56_v46  ;;  %v89_v55 = vmax.f32 %v87_v39, %v88_v47  ;;  %v77_v56 = vrot.slane %v76_v48, 1  ;;  %v114_v57 = vadd.f32 %v113_v49, %v112_v41  ;;  %s2325_s4 = sld [smem:[#allocation2 + $0x3e]] }
  0x31   :  { %v2027_v58 = vsel %vm119_vm2, %v64_v50, %v96_v51  ;;  %v71_v59 = vadd.f32 %v70_v52, %v69_v44  ;;  %v108_v60 = vrot.slane %v107_v53, 1  ;;  %v4705_v50 = vlaneseq  ;;  %s2339_s1 = sld [smem:[#allocation2 + $0xe]] }
  0x32   :  { %270 = vrot.lane.b32.xlu1 %v2027_v58, %s1924_s9  ;;  %v2031_v61 = vsel %vm119_vm2, %v57_v54, %v89_v55  ;;  %v115_v62 = vrot.slane %v114_v57, 1  ;;  %v78_v1 = vadd.f32 %v77_v56, %v76_v48 }
  0x33   :  { %239 = vrot.lane.b32.xlu0 %v2031_v61, %s1925_s10  ;;  %v80_v63 = vmul.f32 0.25, %v71_v59  ;;  %v109_v0 = vadd.f32 %v108_v60, %v107_v53  ;;  %v2261_v53 = vand.u32 127, %v4705_v50 }
  0x34   :  { %v116_v2 = vadd.f32 %v115_v62, %v114_v57  ;;  %v81_v5 = vmul.f32 0.25, %v78_v1 }
  0x35   :  { %v117_v3 = vmul.f32 0.25, %v109_v0  ;;  %v126_v56 = vadd.s32 128, %v2261_v53  ;;  %v2283_v59 = vshra.s32 %v2261_v53, 4  ;;  %4814 = sst [smem:[#allocation34_spill]] %s2316_s5  ;;  %vm243_vm3 = vcmp.lt.s32.totalorder %v2261_v53, 51 }
  0x36   :  { %299 = vrot.lane.b32.xlu1 %v2027_v58, %s1926_s11  ;;  %v118_v6 = vmul.f32 0.25, %v116_v2  ;;  %vm272_vm4 = vcmp.lt.s32.totalorder %v2261_v53, 50  ;;  %vm301_vm9 = vcmp.lt.s32.totalorder %v2261_v53, 49  ;;  %vm330_vm13 = vcmp.lt.s32.totalorder %v2261_v53, 48  ;;  %s2447_s5 = sld [smem:[#allocation2 + $0x41]] }
  0x37   :  { %241 = vrot.lane.b32.xlu0 %v2027_v58, %s1925_s10  ;;  %v2037_v4 = vsel %vm119_vm2, %v80_v63, %v117_v3  ;;  %4809 = vst [vmem:[#allocation29_spill] sm:$0xff] %v2283_v59  ;;  %v2289_v62 = vshra.s32 %v126_v56, 4  ;;  %v127_v63 = vand.u32 15, %v2261_v53  ;;  %v128_v0 = vand.u32 15, %v126_v56  ;;  %4818 = sst [smem:[#allocation38_spill]] %s2339_s1  ;;  %s1952_s1 = smov 114  }
  0x38   :  { %v2042_v7 = vsel %vm119_vm2, %v81_v5, %v118_v6  ;;  %v2303_v2 = vadd.s32 4294967293, %v2283_v59  ;;  %vm359_vm2 = vcmp.lt.s32.totalorder %v2261_v53, 47 }
  0x39   :  { %4811 = vst [vmem:[#allocation31_spill] sm:$0xff] %v2289_v62  ;;  %v2312_v50 = vadd.s32 4294967293, %v2289_v62  ;;  %v2318_v56 = vadd.s32 4294967293, %v127_v63  ;;  %v2329_v6 = vadd.s32 4294967293, %v128_v0  ;;  %v2331_v5 = vadd.s32 4294967294, %v128_v0 }
  0x3a   :  { %246 = vrot.lane.b32.xlu1 %v2037_v4, %s1925_s10  ;;  %vm187_vm5 = vcmp.ge.s32.totalorder %v2303_v2, 0  ;;  %vm189_vm6 = vcmp.lt.s32.totalorder %v2303_v2, 16 }
  0x3b   :  { %268 = vrot.lane.b32.xlu0 %v2031_v61, %s1924_s9  ;;  %vm188_vm7 = vcmp.ge.s32.totalorder %v2312_v50, 0  ;;  %vm190_vm8 = vcmp.lt.s32.totalorder %v2312_v50, 16  ;;  %vm4766_vm10 = vcmp.ge.s32.totalorder %v2318_v56, 0  ;;  %vm4765_vm11 = vcmp.ge.s32.totalorder %v2329_v6, 0 }
  0x3c   :  { %vm4759_vm14 = vcmp.ge.s32.totalorder %v2331_v5, 0  ;;  %v4839_v50 = vstv %s2204_s6  ;;  %s2546_s6 = sld [smem:[#allocation2 + $0x42]] }
  0x3e   :  { %248 = vrot.lane.b32.xlu1 %v2042_v7, %s1925_s10  ;;  %s2218_s10 = sld [smem:[#allocation2 + $0x32]] }
  0x3f   :  { %297 = vrot.lane.b32.xlu0 %v2031_v61, %s1926_s11 }
  0x42   :  { %277 = vrot.lane.b32.xlu1 %v2042_v7, %s1924_s9 }
  0x43   :  { %275 = vrot.lane.b32.xlu0 %v2037_v4, %s1924_s9  ;;  %s2215_s9 = sld [smem:[#allocation2 + $0x2]] }
  0x46   :  { %306 = vrot.lane.b32.xlu1 %v2042_v7, %s1926_s11 }
  0x47   :  { %304 = vrot.lane.b32.xlu0 %v2037_v4, %s1926_s11  ;;  %s2222_s11 = sld [smem:[#allocation2 + $0x33]] }
  0x4a   :  { %328 = vrot.lane.b32.xlu1 %v2027_v58, %s1927_s12 }
  0x4b   :  { %326 = vrot.lane.b32.xlu0 %v2031_v61, %s1927_s12 }
  0x4e   :  { %335 = vrot.lane.b32.xlu1 %v2042_v7, %s1927_s12 }
  0x4f   :  { %333 = vrot.lane.b32.xlu0 %v2037_v4, %s1927_s12  ;;  %s2226_s12 = sld [smem:[#allocation2 + $0x3]] }
  0x52   :  { %357 = vrot.lane.b32.xlu1 %v2027_v58, %s1928_s13 }
  0x53   :  { %355 = vrot.lane.b32.xlu0 %v2031_v61, %s1928_s13 }
  0x56   :  { %364 = vrot.lane.b32.xlu1 %v2042_v7, %s1928_s13 }
  0x57   :  { %362 = vrot.lane.b32.xlu0 %v2037_v4, %s1928_s13  ;;  %s1948_s13 = smov 127  }
  0x5a   :  { %386 = vrot.lane.b32.xlu1 %v2027_v58, %s1929_s14 }
  0x5b   :  { %384 = vrot.lane.b32.xlu0 %v2031_v61, %s1929_s14 }
  0x5e   :  { %393 = vrot.lane.b32.xlu1 %v2042_v7, %s1929_s14 }
  0x5f   :  { %391 = vrot.lane.b32.xlu0 %v2037_v4, %s1929_s14  ;;  %s2229_s14 = sld [smem:[#allocation2 + $0x34]] }
  0x62   :  { %415 = vrot.lane.b32.xlu1 %v2027_v58, %s1930_s15 }
  0x63   :  { %413 = vrot.lane.b32.xlu0 %v2031_v61, %s1930_s15 }
  0x66   :  { %422 = vrot.lane.b32.xlu1 %v2042_v7, %s1930_s15 }
  0x67   :  { %420 = vrot.lane.b32.xlu0 %v2037_v4, %s1930_s15  ;;  %s2232_s15 = sld [smem:[#allocation2 + $0x4]] }
  0x6a   :  { %444 = vrot.lane.b32.xlu1 %v2027_v58, %s1931_s16 }
  0x6b   :  { %442 = vrot.lane.b32.xlu0 %v2031_v61, %s1931_s16 }
  0x6d   :  { %4800 = sst [smem:[#allocation20_spill]] %s2232_s15 }
  0x6e   :  { %451 = vrot.lane.b32.xlu1 %v2042_v7, %s1931_s16  ;;  %s2362_s15 = sld [smem:[#allocation2 + $0xf]] }
  0x6f   :  { %449 = vrot.lane.b32.xlu0 %v2037_v4, %s1931_s16  ;;  %s2236_s16 = sld [smem:[#allocation2 + $0x35]] }
  0x72   :  { %473 = vrot.lane.b32.xlu1 %v2027_v58, %s1932_s17 }
  0x73   :  { %471 = vrot.lane.b32.xlu0 %v2031_v61, %s1932_s17 }
  0x74   :  { %4822 = sst [smem:[#allocation42_spill]] %s2362_s15 }
  0x75   :  { %s2468_s15 = sld [smem:[#allocation2 + $0x11]] }
  0x76   :  { %480 = vrot.lane.b32.xlu1 %v2042_v7, %s1932_s17 }
  0x77   :  { %478 = vrot.lane.b32.xlu0 %v2037_v4, %s1932_s17  ;;  %s2240_s17 = sld [smem:[#allocation2 + $0x5]] }
  0x7a   :  { %502 = vrot.lane.b32.xlu1 %v2027_v58, %s1933_s18 }
  0x7b   :  { %500 = vrot.lane.b32.xlu0 %v2031_v61, %s1933_s18  ;;  %4829 = sst [smem:[#allocation49_spill]] %s2468_s15 }
  0x7c   :  { %s2678_s15 = sld [smem:[#allocation2 + $0x15]] }
  0x7e   :  { %509 = vrot.lane.b32.xlu1 %v2042_v7, %s1933_s18 }
  0x7f   :  { %507 = vrot.lane.b32.xlu0 %v2037_v4, %s1933_s18  ;;  %s2243_s18 = sld [smem:[#allocation2 + $0x36]] }
  0x82   :  { %531 = vrot.lane.b32.xlu1 %v2027_v58, %s1934_s19 }
  0x83   :  { %529 = vrot.lane.b32.xlu0 %v2031_v61, %s1934_s19 }
  0x86   :  { %538 = vrot.lane.b32.xlu1 %v2042_v7, %s1934_s19 }
  0x87   :  { %536 = vrot.lane.b32.xlu0 %v2037_v4, %s1934_s19  ;;  %s2246_s19 = sld [smem:[#allocation2 + $0x6]] }
  0x8a   :  { %560 = vrot.lane.b32.xlu1 %v2027_v58, %s1935_s20 }
  0x8b   :  { %558 = vrot.lane.b32.xlu0 %v2031_v61, %s1935_s20 }
  0x8e   :  { %567 = vrot.lane.b32.xlu1 %v2042_v7, %s1935_s20 }
  0x8f   :  { %565 = vrot.lane.b32.xlu0 %v2037_v4, %s1935_s20  ;;  %s2250_s20 = sld [smem:[#allocation2 + $0x37]] }
  0x92   :  { %589 = vrot.lane.b32.xlu1 %v2027_v58, %s1936_s21 }
  0x93   :  { %587 = vrot.lane.b32.xlu0 %v2031_v61, %s1936_s21 }
  0x96   :  { %596 = vrot.lane.b32.xlu1 %v2042_v7, %s1936_s21 }
  0x97   :  { %594 = vrot.lane.b32.xlu0 %v2037_v4, %s1936_s21  ;;  %s2254_s21 = sld [smem:[#allocation2 + $0x7]] }
  0x9a   :  { %618 = vrot.lane.b32.xlu1 %v2027_v58, %s1937_s22 }
  0x9b   :  { %616 = vrot.lane.b32.xlu0 %v2031_v61, %s1937_s22 }
  0x9e   :  { %625 = vrot.lane.b32.xlu1 %v2042_v7, %s1937_s22 }
  0x9f   :  { %623 = vrot.lane.b32.xlu0 %v2037_v4, %s1937_s22  ;;  %s1949_s22 = smov 126  }
  0xa2   :  { %647 = vrot.lane.b32.xlu1 %v2027_v58, %s1938_s23 }
  0xa3   :  { %645 = vrot.lane.b32.xlu0 %v2031_v61, %s1938_s23 }
  0xa4   :  { %v2096_v8 = vpop.permute.xlu1 %270 }
  0xa5   :  { %v2098_v9 = vpop.permute.xlu0 %239 }
  0xa6   :  { %654 = vrot.lane.b32.xlu1 %v2042_v7, %s1938_s23 }
  0xa7   :  { %652 = vrot.lane.b32.xlu0 %v2037_v4, %s1938_s23  ;;  %s2257_s23 = sld [smem:[#allocation2 + $0x38]] }
  0xa8   :  { %v2102_v10 = vpop.permute.xlu1 %299 }
  0xa9   :  { %v2104_v11 = vpop.permute.xlu0 %241 }
  0xaa   :  { %676 = vrot.lane.b32.xlu1 %v2027_v58, %s1939_s24 }
  0xab   :  { %674 = vrot.lane.b32.xlu0 %v2031_v61, %s1939_s24 }
  0xac   :  { %v2108_v12 = vpop.permute.xlu1 %246 }
  0xad   :  { %v2110_v13 = vpop.permute.xlu0 %268 }
  0xae   :  { %683 = vrot.lane.b32.xlu1 %v2042_v7, %s1939_s24 }
  0xaf   :  { %681 = vrot.lane.b32.xlu0 %v2037_v4, %s1939_s24  ;;  %s2263_s24 = sld [smem:[#allocation2 + $0x8]] }
  0xb0   :  { %v2114_v14 = vpop.permute.xlu1 %248 }
  0xb1   :  { %v2116_v15 = vpop.permute.xlu0 %297 }
  0xb2   :  { %705 = vrot.lane.b32.xlu1 %v2027_v58, %s1940_s25 }
  0xb3   :  { %703 = vrot.lane.b32.xlu0 %v2031_v61, %s1940_s25 }
  0xb4   :  { %v2120_v16 = vpop.permute.xlu1 %277 }
  0xb5   :  { %v2122_v17 = vpop.permute.xlu0 %275 }
  0xb6   :  { %712 = vrot.lane.b32.xlu1 %v2042_v7, %s1940_s25 }
  0xb7   :  { %710 = vrot.lane.b32.xlu0 %v2037_v4, %s1940_s25  ;;  %s2267_s25 = sld [smem:[#allocation2 + $0x39]] }
  0xb8   :  { %v2126_v18 = vpop.permute.xlu1 %306 }
  0xb9   :  { %v2128_v19 = vpop.permute.xlu0 %304 }
  0xba   :  { %734 = vrot.lane.b32.xlu1 %v2027_v58, %s1941_s26  ;;  %v309_v2 = vsel %vm301_vm9, %v2126_v18, %v2128_v19 }
  0xbb   :  { %732 = vrot.lane.b32.xlu0 %v2031_v61, %s1941_s26 }
  0xbc   :  { %v2132_v20 = vpop.permute.xlu1 %328 }
  0xbd   :  { %v2134_v21 = vpop.permute.xlu0 %326 }
  0xbe   :  { %741 = vrot.lane.b32.xlu1 %v2042_v7, %s1941_s26 }
  0xbf   :  { %739 = vrot.lane.b32.xlu0 %v2037_v4, %s1941_s26  ;;  %s2272_s26 = sld [smem:[#allocation2 + $0x9]] }
  0xc0   :  { %v2138_v22 = vpop.permute.xlu1 %335 }
  0xc1   :  { %v2140_v23 = vpop.permute.xlu0 %333 }
  0xc2   :  { %763 = vrot.lane.b32.xlu1 %v2027_v58, %s1942_s2 }
  0xc3   :  { %761 = vrot.lane.b32.xlu0 %v2031_v61, %s1942_s2 }
  0xc4   :  { %v2144_v24 = vpop.permute.xlu1 %357 }
  0xc5   :  { %v2146_v25 = vpop.permute.xlu0 %355 }
  0xc6   :  { %770 = vrot.lane.b32.xlu1 %v2042_v7, %s1942_s2 }
  0xc7   :  { %768 = vrot.lane.b32.xlu0 %v2037_v4, %s1942_s2  ;;  %s2275_s2 = sld [smem:[#allocation2 + $0x3a]] }
  0xc8   :  { %v2150_v26 = vpop.permute.xlu1 %364 }
  0xc9   :  { %v2152_v27 = vpop.permute.xlu0 %362 }
  0xca   :  { %792 = vrot.lane.b32.xlu1 %v2027_v58, %s1943_s3 }
  0xcb   :  { %790 = vrot.lane.b32.xlu0 %v2031_v61, %s1943_s3 }
  0xcc   :  { %v2156_v28 = vpop.permute.xlu1 %386 }
  0xcd   :  { %v2158_v29 = vpop.permute.xlu0 %384 }
  0xce   :  { %799 = vrot.lane.b32.xlu1 %v2042_v7, %s1943_s3 }
  0xcf   :  { %797 = vrot.lane.b32.xlu0 %v2037_v4, %s1943_s3  ;;  %s2278_s3 = sld [smem:[#allocation2 + $0xa]] }
  0xd0   :  { %v2162_v30 = vpop.permute.xlu1 %393 }
  0xd1   :  { %v2164_v31 = vpop.permute.xlu0 %391 }
  0xd2   :  { %821 = vrot.lane.b32.xlu1 %v2027_v58, %s1944_s27 }
  0xd3   :  { %819 = vrot.lane.b32.xlu0 %v2031_v61, %s1944_s27 }
  0xd4   :  { %v2168_v32 = vpop.permute.xlu1 %415 }
  0xd5   :  { %v2170_v33 = vpop.permute.xlu0 %413  ;;  %4807 = sst [smem:[#allocation27_spill]] %s2278_s3 }
  0xd6   :  { %828 = vrot.lane.b32.xlu1 %v2042_v7, %s1944_s27  ;;  %s2414_s3 = sld [smem:[#allocation2 + $0x40]] }
  0xd7   :  { %826 = vrot.lane.b32.xlu0 %v2037_v4, %s1944_s27  ;;  %s2285_s27 = sld [smem:[#allocation2 + $0x3b]] }
  0xd8   :  { %v2174_v34 = vpop.permute.xlu1 %422 }
  0xd9   :  { %v2176_v35 = vpop.permute.xlu0 %420 }
  0xda   :  { %850 = vrot.lane.b32.xlu1 %v2027_v58, %s1945_s28 }
  0xdb   :  { %848 = vrot.lane.b32.xlu0 %v2031_v61, %s1945_s28 }
  0xdc   :  { %v2180_v36 = vpop.permute.xlu1 %444 }
  0xdd   :  { %4788 = vst [vmem:[#allocation8_spill] sm:$0xff] %v2180_v36  ;;  %v2182_v37 = vpop.permute.xlu0 %442 }
  0xde   :  { %4789 = vst [vmem:[#allocation9_spill] sm:$0xff] %v2182_v37  ;;  %857 = vrot.lane.b32.xlu1 %v2042_v7, %s1945_s28  ;;  %v4841_v37 = vstv %s2208_s7  ;;  %s1953_s7 = smov 113  }
  0xdf   :  { %855 = vrot.lane.b32.xlu0 %v2037_v4, %s1945_s28  ;;  %s2291_s28 = sld [smem:[#allocation2 + $0xb]] }
  0xe0   :  { %v2186_v38 = vpop.permute.xlu1 %451 }
  0xe1   :  { %4790 = vst [vmem:[#allocation10_spill] sm:$0xff] %v2186_v38  ;;  %v2188_v39 = vpop.permute.xlu0 %449 }
  0xe2   :  { %4791 = vst [vmem:[#allocation11_spill] sm:$0xff] %v2188_v39  ;;  %879 = vrot.lane.b32.xlu1 %v2027_v58, %s1946_s29  ;;  %v4842_v39 = vmov %v4841_v37 }
  0xe3   :  { %877 = vrot.lane.b32.xlu0 %v2031_v61, %s1946_s29 }
  0xe4   :  { %v2192_v40 = vpop.permute.xlu1 %473 }
  0xe5   :  { %4792 = vst [vmem:[#allocation12_spill] sm:$0xff] %v2192_v40  ;;  %v2194_v41 = vpop.permute.xlu0 %471  ;;  %v2400_v40 = vadd.s32 4294967294, %v2289_v62 }
  0xe6   :  { %4793 = vst [vmem:[#allocation13_spill] sm:$0xff] %v2194_v41  ;;  %886 = vrot.lane.b32.xlu1 %v2042_v7, %s1946_s29 }
  0xe7   :  { %884 = vrot.lane.b32.xlu0 %v2037_v4, %s1946_s29  ;;  %s1950_s29 = smov 125  }
  0xe8   :  { %v2198_v42 = vpop.permute.xlu1 %480 }
  0xe9   :  { %4794 = vst [vmem:[#allocation14_spill] sm:$0xff] %v2198_v42  ;;  %v2200_v43 = vpop.permute.xlu0 %478 }
  0xea   :  { %4795 = vst [vmem:[#allocation15_spill] sm:$0xff] %v2200_v43  ;;  %908 = vrot.lane.b32.xlu1 %v2027_v58, %s1947_s30 }
  0xeb   :  { %906 = vrot.lane.b32.xlu0 %v2031_v61, %s1947_s30 }
  0xec   :  { %v2206_v44 = vpop.permute.xlu1 %502 }
  0xed   :  { %4796 = vst [vmem:[#allocation16_spill] sm:$0xff] %v2206_v44  ;;  %v2210_v45 = vpop.permute.xlu0 %500  ;;  %v250_v44 = vsel %vm243_vm3, %v2108_v12, %v2114_v14 }
  0xee   :  { %4797 = vst [vmem:[#allocation17_spill] sm:$0xff] %v2210_v45  ;;  %915 = vrot.lane.b32.xlu1 %v2042_v7, %s1947_s30  ;;  %v279_v45 = vsel %vm272_vm4, %v2122_v17, %v2120_v16 }
  0xef   :  { %913 = vrot.lane.b32.xlu0 %v2037_v4, %s1947_s30  ;;  %s2295_s30 = sld [smem:[#allocation2 + $0x3c]] }
  0xf0   :  { %v2220_v46 = vpop.permute.xlu1 %509 }
  0xf1   :  { %4798 = vst [vmem:[#allocation18_spill] sm:$0xff] %v2220_v46  ;;  %v2224_v47 = vpop.permute.xlu0 %507 }
  0xf2   :  { %4799 = vst [vmem:[#allocation19_spill] sm:$0xff] %v2224_v47  ;;  %953 = vrot.lane.b32.xlu1 %v2027_v58, %s1948_s13 }
  0xf3   :  { %951 = vrot.lane.b32.xlu0 %v2031_v61, %s1948_s13 }
  0xf4   :  { %v2234_v48 = vpop.permute.xlu1 %531 }
  0xf5   :  { %4801 = vst [vmem:[#allocation21_spill] sm:$0xff] %v2234_v48  ;;  %v2238_v49 = vpop.permute.xlu0 %529  ;;  %v2364_v48 = vadd.s32 2, %v127_v63 }
  0xf6   :  { %4802 = vst [vmem:[#allocation22_spill] sm:$0xff] %v2238_v49  ;;  %960 = vrot.lane.b32.xlu1 %v2042_v7, %s1948_s13  ;;  %v2373_v49 = vadd.s32 3, %v127_v63 }
  0xf7   :  { %958 = vrot.lane.b32.xlu0 %v2037_v4, %s1948_s13  ;;  %s2300_s13 = sld [smem:[#allocation2 + $0xc]] }
  0xf8   :  { %v2248_v51 = vpop.permute.xlu1 %538 }
  0xf9   :  { %4803 = vst [vmem:[#allocation23_spill] sm:$0xff] %v2248_v51  ;;  %v2252_v52 = vpop.permute.xlu0 %536  ;;  %v251_v51 = vsel %vm243_vm3, %v2114_v14, %v2108_v12  ;;  %v280_v12 = vsel %vm272_vm4, %v2120_v16, %v2122_v17  ;;  %v273_v16 = vsel %vm272_vm4, %v2110_v13, %v2096_v8  ;;  %v274_v17 = vsel %vm272_vm4, %v2096_v8, %v2110_v13  ;;  %vm2496_vm4 = vmand %vm188_vm7, %vm190_vm8 }
  0xfa   :  { %4804 = vst [vmem:[#allocation24_spill] sm:$0xff] %v2252_v52  ;;  %982 = vrot.lane.b32.xlu1 %v2027_v58, %s1949_s22  ;;  %v4832_v8 = vstv %s2212_s8  ;;  %v308_v14 = vsel %vm301_vm9, %v2128_v19, %v2126_v18  ;;  %v303_v18 = vsel %vm301_vm9, %v2102_v10, %v2116_v15  ;;  %v4837_v19 = vstv %s2218_s10  ;;  %s2601_s8 = sld [smem:[#allocation2 + $0x43]] }
  0xfb   :  { %980 = vrot.lane.b32.xlu0 %v2031_v61, %s1949_s22  ;;  %v4833_v13 = vmov %v4832_v8  ;;  %v283_v36 = vmul.f32 %v4841_v37, %v274_v17  ;;  %v284_v38 = vmul.f32 %v4842_v39, %v273_v16  ;;  %v337_v37 = vsel %vm330_vm13, %v2140_v23, %v2138_v22  ;;  %s2639_s10 = sld [smem:[#allocation2 + $0x44]] }
  0xfc   :  { %v2265_v54 = vpop.permute.xlu1 %560  ;;  %v259_v41 = vmul.f32 %v4833_v13, %v250_v44  ;;  %v4838_v13 = vmov %v4837_v19  ;;  %v338_v39 = vsel %vm330_vm13, %v2138_v22, %v2140_v23  ;;  %v4849_v16 = vstv %s2215_s9  ;;  %s2615_s9 = sld [smem:[#allocation2 + $0x13]]  ;;  %v4900_v44 = vld [vmem:[#allocation12_spill] sm:$0xff] }
  0xfd   :  { %4805 = vst [vmem:[#allocation25_spill] sm:$0xff] %v2265_v54  ;;  %v2269_v55 = vpop.permute.xlu0 %558  ;;  %v2321_v54 = vadd.s32 4294967294, %v127_v63  ;;  %v312_v17 = vmul.f32 %v4849_v16, %v303_v18  ;;  %v4850_v22 = vmov %v4849_v16  ;;  %vm388_vm8 = vcmp.lt.s32.totalorder %v2261_v53, 46 }
  0xfe   :  { %4806 = vst [vmem:[#allocation26_spill] sm:$0xff] %v2269_v55  ;;  %989 = vrot.lane.b32.xlu1 %v2042_v7, %s1949_s22  ;;  %v2333_v55 = vadd.s32 4294967295, %v127_v63  ;;  %v4861_v16 = vstv %s2226_s12  ;;  %s4863_s12 = sld [smem:[#allocation20_spill]] }
  0xff   :  { %987 = vrot.lane.b32.xlu0 %v2037_v4, %s1949_s22  ;;  %s2307_s22 = sld [smem:[#allocation2 + $0x3d]]  ;;  %vm4758_vm12 = vcmp.ge.s32.totalorder %v2321_v54, 0 }
 0x100   :  { %v2280_v57 = vpop.permute.xlu1 %567  ;;  %4815 = vst [vmem:[#allocation35_spill] sm:$0xff] %v2333_v55  ;;  %vm4764_vm15 = vcmp.ge.s32.totalorder %v2333_v55, 0 }
 0x101   :  { %4808 = vst [vmem:[#allocation28_spill] sm:$0xff] %v2280_v57  ;;  %v2287_v60 = vpop.permute.xlu0 %565  ;;  %v2375_v57 = vadd.s32 3, %v128_v0 }
 0x102   :  { %4810 = vst [vmem:[#allocation30_spill] sm:$0xff] %v2287_v60  ;;  %1011 = vrot.lane.b32.xlu1 %v2027_v58, %s1950_s29 }
 0x103   :  { %1009 = vrot.lane.b32.xlu0 %v2031_v61, %s1950_s29 }
 0x104   :  { %v2298_v1 = vpop.permute.xlu1 %589 }
 0x105   :  { %4812 = vst [vmem:[#allocation32_spill] sm:$0xff] %v2298_v1  ;;  %v2305_v3 = vpop.permute.xlu0 %587  ;;  %v2335_v1 = vadd.s32 4294967295, %v128_v0 }
 0x106   :  { %4813 = vst [vmem:[#allocation33_spill] sm:$0xff] %v2305_v3  ;;  %1018 = vrot.lane.b32.xlu1 %v2042_v7, %s1950_s29  ;;  %v2356_v3 = vadd.s32 1, %v128_v0 }
 0x107   :  { %1016 = vrot.lane.b32.xlu0 %v2037_v4, %s1950_s29  ;;  %4816 = vst [vmem:[#allocation36_spill] sm:$0xff] %v2335_v1  ;;  %s2349_s29 = sld [smem:[#allocation2 + $0x3f]]  ;;  %vm4760_vm1 = vcmp.ge.s32.totalorder %v2335_v1, 0 }
 0x108   :  { %v2337_v60 = vpop.permute.xlu1 %596  ;;  %4821 = vst [vmem:[#allocation41_spill] sm:$0xff] %v2356_v3  ;;  %vm4767_vm0 = vcmp.lt.s32.totalorder %v2356_v3, 16 }
 0x109   :  { %4817 = vst [vmem:[#allocation37_spill] sm:$0xff] %v2337_v60  ;;  %v2347_v52 = vpop.permute.xlu0 %594  ;;  %v2354_v60 = vadd.s32 1, %v127_v63  ;;  %v2391_v63 = vadd.s32 4294967294, %v2283_v59 }
 0x10a   :  { %4819 = vst [vmem:[#allocation39_spill] sm:$0xff] %v2347_v52  ;;  %1040 = vrot.lane.b32.xlu1 %v2027_v58, %s1951_s0  ;;  %v2366_v52 = vadd.s32 2, %v128_v0 }
 0x10b   :  { %4820 = vst [vmem:[#allocation40_spill] sm:$0xff] %v2354_v60  ;;  %1038 = vrot.lane.b32.xlu0 %v2031_v61, %s1951_s0  ;;  %vm4763_vm7 = vcmp.lt.s32.totalorder %v2354_v60, 16 }
 0x10c   :  { %v2379_v46 = vpop.permute.xlu1 %618 }
 0x10d   :  { %4823 = vst [vmem:[#allocation43_spill] sm:$0xff] %v2379_v46  ;;  %v2386_v43 = vpop.permute.xlu0 %616  ;;  %v2431_v46 = vadd.s32 4294967295, %v2289_v62  ;;  %v244_v62 = vsel %vm243_vm3, %v2098_v9, %v2104_v11 }
 0x10e   :  { %4824 = vst [vmem:[#allocation44_spill] sm:$0xff] %v2386_v43  ;;  %1047 = vrot.lane.b32.xlu1 %v2042_v7, %s1951_s0  ;;  %v2428_v43 = vadd.s32 4294967295, %v2283_v59  ;;  %v245_v59 = vsel %vm243_vm3, %v2104_v11, %v2098_v9  ;;  %vm2474_vm3 = vmand %vm187_vm5, %vm189_vm6  ;;  %v258_v11 = vmul.f32 %v4832_v8, %v251_v51  ;;  %v302_v51 = vsel %vm301_vm9, %v2116_v15, %v2102_v10 }
 0x10f   :  { %1045 = vrot.lane.b32.xlu0 %v2037_v4, %s1951_s0  ;;  %4828 = vst [vmem:[#allocation48_spill] sm:$0xff] %v2431_v46  ;;  %s2433_s0 = sld [smem:[#allocation2 + $0x10]]  ;;  %v287_v8 = vmul.f32 %v4837_v19, %v280_v12  ;;  %vm2528_vm5 = vmand %vm2474_vm3, %vm4766_vm10  ;;  %v4845_v15 = vstv %s2222_s11  ;;  %v313_v23 = vmul.f32 %v4850_v22, %v302_v51  ;;  %v332_v51 = vsel %vm330_vm13, %v2132_v20, %v2134_v21 }
 0x110   :  { %v2410_v47 = vpop.permute.xlu1 %625  ;;  %4827 = vst [vmem:[#allocation47_spill] sm:$0xff] %v2428_v43  ;;  %vm2552_vm6 = vmand %vm2496_vm4, %vm4765_vm11  ;;  %v341_v22 = vmul.f32 %v4861_v16, %v332_v51  ;;  %s2652_s11 = sld [smem:[#allocation2 + $0x14]]  ;;  %vm198_vm10 = vcmp.lt.s32.totalorder %v2400_v40, 16 }
 0x111   :  { %4825 = vst [vmem:[#allocation45_spill] sm:$0xff] %v2410_v47  ;;  %v2425_v0 = vpop.permute.xlu0 %623  ;;  %v4840_v47 = vmov %v4839_v50  ;;  %vm2570_vm9 = vmand %vm2474_vm3, %vm4758_vm12 }
 0x112   :  { %4826 = vst [vmem:[#allocation46_spill] sm:$0xff] %v2425_v0  ;;  %1069 = vrot.lane.b32.xlu1 %v2027_v58, %s1952_s1  ;;  %v254_v0 = vmul.f32 %v4839_v50, %v245_v59  ;;  %v255_v42 = vmul.f32 %v4840_v47, %v244_v62  ;;  %v4846_v59 = vmov %v4845_v15  ;;  %vm2589_vm12 = vmand %vm2496_vm4, %vm4759_vm14  ;;  %v360_v47 = vsel %vm359_vm2, %v2146_v25, %v2144_v24 }
 0x113   :  { %1067 = vrot.lane.b32.xlu0 %v2031_v61, %s1952_s1  ;;  %v317_v12 = vmul.f32 %v4846_v59, %v308_v14  ;;  %vm2621_vm14 = vmand %vm2496_vm4, %vm4760_vm1  ;;  %vm417_vm1 = vcmp.lt.s32.totalorder %v2261_v53, 45 }
 0x114   :  { %v2490_v46 = vpop.permute.xlu1 %647  ;;  %v260_v62 = vadd.f32 %v258_v11, %v254_v0  ;;  %v261_v14 = vadd.f32 %v259_v41, %v255_v42  ;;  %v289_v42 = vadd.f32 %v287_v8, %v283_v36  ;;  %v331_v11 = vsel %vm330_vm13, %v2134_v21, %v2132_v20  ;;  %vm2607_vm13 = vmand %vm2474_vm3, %vm4764_vm15  ;;  %v4914_v21 = vld [vmem:[#allocation17_spill] sm:$0xff] }
 0x115   :  { %4834 = vst [vmem:[#allocation50_spill] sm:$0xff] %v2490_v46  ;;  %v288_v46 = vmul.f32 %v4838_v13, %v279_v45  ;;  %v2512_v43 = vpop.permute.xlu0 %645  ;;  %v316_v45 = vmul.f32 %v4845_v15, %v309_v2  ;;  %v319_v15 = vadd.f32 %v317_v12, %v313_v23  ;;  %v366_v12 = vsel %vm359_vm2, %v2152_v27, %v2150_v26  ;;  %vm2736_vm11 = vmand %vm2496_vm4, %vm4767_vm0  ;;  %v4913_v13 = vld [vmem:[#allocation16_spill] sm:$0xff] }
 0x116   :  { %1076 = vrot.lane.b32.xlu1 %v2042_v7, %s1952_s1  ;;  %v293_v51 = vsel %vm2570_vm9, %v289_v42, 0.0  ;;  %v4864_v42 = vstv %s2236_s16  ;;  %s2700_s16 = sld [smem:[#allocation2 + $0x46]]  ;;  %vm2715_vm9 = vmand %vm2474_vm3, %vm4763_vm7  ;;  %vm197_vm7 = vcmp.lt.s32.totalorder %v2391_v63, 16  ;;  %vm475_vm15 = vcmp.lt.s32.totalorder %v2261_v53, 34 }
 0x117   :  { %1074 = vrot.lane.b32.xlu0 %v2037_v4, %s1952_s1  ;;  %s2564_s1 = sld [smem:[#allocation2 + $0x12]]  ;;  %v290_v0 = vadd.f32 %v288_v46, %v284_v38  ;;  %v4855_v38 = vstv %s2229_s14  ;;  %v318_v50 = vadd.f32 %v316_v45, %v312_v17  ;;  %v367_v17 = vsel %vm359_vm2, %v2150_v26, %v2152_v27 }
 0x118   :  { %v2562_v2 = vpop.permute.xlu1 %654  ;;  %v345_v46 = vmul.f32 %v4855_v38, %v338_v39  ;;  %v4856_v19 = vmov %v4855_v38  ;;  %v4862_v38 = vmov %v4861_v16  ;;  %s2665_s14 = sld [smem:[#allocation2 + $0x45]]  ;;  %v323_v41 = vsel %vm2621_vm14, %v319_v15, 0.0 }
 0x119   :  { %v2583_v18 = vpop.permute.xlu0 %652  ;;  %v346_v8 = vmul.f32 %v4856_v19, %v337_v37  ;;  %v342_v45 = vmul.f32 %v4862_v38, %v331_v11  ;;  %v264_v19 = vsel %vm2528_vm5, %v260_v62, 0.0  ;;  %v265_v11 = vsel %vm2552_vm6, %v261_v14, 0.0 }
 0x11a   :  { %1098 = vrot.lane.b32.xlu1 %v2027_v58, %s1953_s7  ;;  %v294_v16 = vsel %vm2589_vm12, %v290_v0, 0.0  ;;  %v347_v27 = vadd.f32 %v345_v46, %v341_v22  ;;  %v361_v62 = vsel %vm359_vm2, %v2144_v24, %v2146_v25  ;;  %vm4783_vm12 = vcmp.lt.s32.totalorder %v2364_v48, 16 }
 0x11b   :  { %1096 = vrot.lane.b32.xlu0 %v2031_v61, %s1953_s7  ;;  %v348_v10 = vadd.f32 %v346_v8, %v342_v45  ;;  %v322_v14 = vsel %vm2607_vm13, %v318_v50, 0.0  ;;  %v374_v0 = vmul.f32 %v4864_v42, %v367_v17  ;;  %v4865_v36 = vmov %v4864_v42 }
 0x11c   :  { %v2637_v23 = vpop.permute.xlu1 %676  ;;  %v375_v24 = vmul.f32 %v4865_v36, %v366_v12  ;;  %vm4768_vm2 = vcmp.lt.s32.totalorder %v2366_v52, 16  ;;  %v295_v25 = vadd.f32 %v293_v51, %v264_v19  ;;  %v296_v46 = vadd.f32 %v294_v16, %v265_v11 }
 0x11d   :  { %v2650_v26 = vpop.permute.xlu0 %674  ;;  %vm446_vm5 = vcmp.lt.s32.totalorder %v2261_v53, 35  ;;  %v4866_v15 = vstv %s4863_s12  ;;  %v395_v45 = vsel %vm388_vm8, %v2164_v31, %v2162_v30  ;;  %v396_v12 = vsel %vm388_vm8, %v2162_v30, %v2164_v31  ;;  %s2709_s12 = sld [smem:[#allocation2 + $0x16]] }
 0x11e   :  { %1105 = vrot.lane.b32.xlu1 %v2042_v7, %s1953_s7  ;;  %v370_v39 = vmul.f32 %v4866_v15, %v361_v62  ;;  %v4867_v22 = vmov %v4866_v15  ;;  %vm181_vm14 = vcmp.lt.s32.totalorder %v2373_v49, 16  ;;  %v324_v19 = vadd.f32 %v322_v14, %v295_v25 }
 0x11f   :  { %1103 = vrot.lane.b32.xlu0 %v2037_v4, %s1953_s7  ;;  %v371_v38 = vmul.f32 %v4867_v22, %v360_v47  ;;  %v325_v11 = vadd.f32 %v323_v41, %v296_v46  ;;  %v351_v51 = vsel %vm2474_vm3, %v347_v27, 0.0  ;;  %v352_v16 = vsel %vm2496_vm4, %v348_v10, 0.0  ;;  %s1954_s7 = smov 112  }
 0x120   :  { %v2681_v8 = vpop.permute.xlu1 %683  ;;  %vm182_vm6 = vcmp.lt.s32.totalorder %v2375_v57, 16  ;;  %v376_v31 = vadd.f32 %v374_v0, %v370_v39  ;;  %v389_v10 = vsel %vm388_vm8, %v2158_v29, %v2156_v28  ;;  %v390_v47 = vsel %vm388_vm8, %v2156_v28, %v2158_v29 }
 0x121   :  { %v2698_v17 = vpop.permute.xlu0 %681  ;;  %v377_v27 = vadd.f32 %v375_v24, %v371_v38  ;;  %vm195_vm13 = vcmp.ge.s32.totalorder %v2391_v63, 0  ;;  %v4872_v28 = vstv %s2243_s18  ;;  %vm196_vm8 = vcmp.ge.s32.totalorder %v2400_v40, 0  ;;  %s2821_s18 = sld [smem:[#allocation2 + $0x47]] }
 0x122   :  { %1127 = vrot.lane.b32.xlu1 %v2027_v58, %s1954_s7  ;;  %v403_v29 = vmul.f32 %v4872_v28, %v396_v12  ;;  %v4873_v14 = vmov %v4872_v28  ;;  %v353_v24 = vadd.f32 %v351_v51, %v324_v19  ;;  %v354_v25 = vadd.f32 %v352_v16, %v325_v11 }
 0x123   :  { %1125 = vrot.lane.b32.xlu0 %v2031_v61, %s1954_s7  ;;  %v404_v41 = vmul.f32 %v4873_v14, %v395_v45  ;;  %v4874_v22 = vstv %s2240_s17  ;;  %v424_v28 = vsel %vm417_vm1, %v2176_v35, %v2174_v34  ;;  %v425_v19 = vsel %vm417_vm1, %v2174_v34, %v2176_v35  ;;  %s1955_s17 = smov 111  }
 0x124   :  { %v2746_v42 = vpop.permute.xlu1 %705  ;;  %v399_v38 = vmul.f32 %v4874_v22, %v390_v47  ;;  %v4875_v12 = vmov %v4874_v22  ;;  %vm504_vm0 = vcmp.lt.s32.totalorder %v2261_v53, 33  ;;  %v380_v11 = vsel %vm2715_vm9, %v376_v31, 0.0  ;;  %v4880_v22 = vld [vmem:[#allocation10_spill] sm:$0xff] }
 0x125   :  { %v2750_v46 = vpop.permute.xlu0 %703  ;;  %v400_v45 = vmul.f32 %v4875_v12, %v389_v10  ;;  %v381_v51 = vsel %vm2736_vm11, %v377_v27, 0.0  ;;  %v418_v34 = vsel %vm417_vm1, %v2170_v33, %v2168_v32  ;;  %v419_v35 = vsel %vm417_vm1, %v2168_v32, %v2170_v33  ;;  %vm2791_vm11 = vmand %vm2474_vm3, %vm4783_vm12 }
 0x126   :  { %1134 = vrot.lane.b32.xlu1 %v2042_v7, %s1954_s7  ;;  %v405_v47 = vadd.f32 %v403_v29, %v399_v38  ;;  %v4878_v27 = vstv %s2250_s20  ;;  %v4881_v38 = vld [vmem:[#allocation11_spill] sm:$0xff]  ;;  %v383_v10 = vadd.f32 %v381_v51, %v354_v25  ;;  %vm2813_vm1 = vmand %vm2496_vm4, %vm4768_vm2  ;;  %vm533_vm9 = vcmp.lt.s32.totalorder %v2261_v53, 32  ;;  %s2838_s20 = sld [smem:[#allocation2 + $0x17]] }
 0x127   :  { %1132 = vrot.lane.b32.xlu0 %v2037_v4, %s1954_s7  ;;  %v406_v14 = vadd.f32 %v404_v41, %v400_v45  ;;  %v432_v62 = vmul.f32 %v4878_v27, %v425_v19  ;;  %v4879_v29 = vmov %v4878_v27  ;;  %v453_v32 = vsel %vm446_vm5, %v4881_v38, %v4880_v22  ;;  %vm2844_vm2 = vmand %vm2474_vm3, %vm181_vm14  ;;  %v4893_v27 = vld [vmem:[#allocation15_spill] sm:$0xff]  ;;  %s3898_s7 = sld [smem:[#allocation2 + $0x1d]] }
 0x128   :  { %v2785_v30 = vpop.permute.xlu1 %712  ;;  %v433_v41 = vmul.f32 %v4879_v29, %v424_v28  ;;  %v454_v33 = vsel %vm446_vm5, %v4880_v22, %v4881_v38  ;;  %v382_v45 = vadd.f32 %v380_v11, %v353_v24  ;;  %v4884_v24 = vstv %s2246_s19  ;;  %v4886_v29 = vld [vmem:[#allocation8_spill] sm:$0xff]  ;;  %v4887_v22 = vld [vmem:[#allocation9_spill] sm:$0xff]  ;;  %vm2870_vm3 = vmand %vm2496_vm4, %vm182_vm6  ;;  %s2898_s19 = sld [smem:[#allocation2 + $0x48]] }
 0x129   :  { %v2807_v12 = vpop.permute.xlu0 %710  ;;  %v428_v11 = vmul.f32 %v4884_v24, %v419_v35  ;;  %v4885_v25 = vmov %v4884_v24  ;;  %v447_v38 = vsel %vm446_vm5, %v4887_v22, %v4886_v29  ;;  %v448_v39 = vsel %vm446_vm5, %v4886_v29, %v4887_v22  ;;  %v4892_v22 = vld [vmem:[#allocation14_spill] sm:$0xff]  ;;  %vm2884_vm5 = vmand %vm195_vm13, %vm197_vm7 }
 0x12a   :  { %1156 = vrot.lane.b32.xlu1 %v2027_v58, %s1955_s17  ;;  %v429_v51 = vmul.f32 %v4885_v25, %v418_v34  ;;  %v4890_v35 = vstv %s2257_s23  ;;  %v482_v19 = vsel %vm475_vm15, %v4893_v27, %v4892_v22  ;;  %v483_v16 = vsel %vm475_vm15, %v4892_v22, %v4893_v27  ;;  %vm2904_vm4 = vmand %vm196_vm8, %vm198_vm10  ;;  %s1956_s23 = smov 110  }
 0x12b   :  { %1154 = vrot.lane.b32.xlu0 %v2031_v61, %s1955_s17  ;;  %v461_v24 = vmul.f32 %v4890_v35, %v454_v33  ;;  %v4891_v25 = vmov %v4890_v35  ;;  %v409_v36 = vsel %vm2791_vm11, %v405_v47, 0.0  ;;  %v434_v35 = vadd.f32 %v432_v62, %v428_v11 }
 0x12c   :  { %v462_v29 = vmul.f32 %v4891_v25, %v453_v32  ;;  %v2860_v9 = vpop.permute.xlu1 %734  ;;  %v410_v32 = vsel %vm2813_vm1, %v406_v14, 0.0  ;;  %v435_v27 = vadd.f32 %v433_v41, %v429_v51  ;;  %v4896_v22 = vstv %s2254_s21  ;;  %v4901_v14 = vld [vmem:[#allocation13_spill] sm:$0xff]  ;;  %s2923_s21 = sld [smem:[#allocation2 + $0x18]] }
 0x12d   :  { %v2874_v25 = vpop.permute.xlu0 %732  ;;  %v457_v15 = vmul.f32 %v4896_v22, %v448_v39  ;;  %v4897_v31 = vmov %v4896_v22  ;;  %v476_v62 = vsel %vm475_vm15, %v4901_v14, %v4900_v44  ;;  %v477_v39 = vsel %vm475_vm15, %v4900_v44, %v4901_v14  ;;  %v4907_v22 = vld [vmem:[#allocation19_spill] sm:$0xff] }
 0x12e   :  { %v458_v50 = vmul.f32 %v4897_v31, %v447_v38  ;;  %1163 = vrot.lane.b32.xlu1 %v2042_v7, %s1955_s17  ;;  %v4904_v41 = vstv %s2267_s25  ;;  %v4906_v38 = vld [vmem:[#allocation18_spill] sm:$0xff]  ;;  %vm562_vm15 = vcmp.lt.s32.totalorder %v2261_v53, 31  ;;  %v411_v40 = vadd.f32 %v409_v36, %v382_v45  ;;  %s1957_s25 = smov 109  }
 0x12f   :  { %v490_v28 = vmul.f32 %v4904_v41, %v483_v16  ;;  %v4905_v11 = vmov %v4904_v41  ;;  %v511_v31 = vsel %vm504_vm0, %v4907_v22, %v4906_v38  ;;  %v512_v44 = vsel %vm504_vm0, %v4906_v38, %v4907_v22  ;;  %1161 = vrot.lane.b32.xlu0 %v2037_v4, %s1955_s17  ;;  %s1966_s17 = smov 82  }
 0x130   :  { %v491_v51 = vmul.f32 %v4905_v11, %v482_v19  ;;  %v412_v16 = vadd.f32 %v410_v32, %v383_v10  ;;  %v463_v19 = vadd.f32 %v461_v24, %v457_v15  ;;  %v464_v14 = vadd.f32 %v462_v29, %v458_v50  ;;  %v2925_v41 = vpop.permute.xlu1 %741  ;;  %v4937_v11 = vld [vmem:[#allocation22_spill] sm:$0xff] }
 0x131   :  { %vm4908_vm10 = vcmp.ge.s32.totalorder %v2318_v56, 0  ;;  %v4911_v38 = vstv %s2263_s24  ;;  %v505_v50 = vsel %vm504_vm0, %v4914_v21, %v4913_v13  ;;  %v506_v36 = vsel %vm504_vm0, %v4913_v13, %v4914_v21  ;;  %v2947_v15 = vpop.permute.xlu0 %739  ;;  %s4935_s24 = sld [smem:[#allocation27_spill]] }
 0x132   :  { %vm2931_vm7 = vmand %vm2884_vm5, %vm4908_vm10  ;;  %v486_v22 = vmul.f32 %v4911_v38, %v477_v39  ;;  %v4912_v0 = vmov %v4911_v38  ;;  %v438_v10 = vsel %vm2844_vm2, %v434_v35, 0.0  ;;  %vm4915_vm13 = vcmp.ge.s32.totalorder %v2329_v6, 0  ;;  %1185 = vrot.lane.b32.xlu1 %v2027_v58, %s1956_s23 }
 0x133   :  { %v487_v37 = vmul.f32 %v4912_v0, %v476_v62  ;;  %v439_v0 = vsel %vm2870_vm3, %v435_v27, 0.0  ;;  %vm2957_vm8 = vmand %vm2904_vm4, %vm4915_vm13  ;;  %v4918_v24 = vstv %s2275_s2  ;;  %vm591_vm0 = vcmp.lt.s32.totalorder %v2261_v53, 30  ;;  %1183 = vrot.lane.b32.xlu0 %v2031_v61, %s1956_s23  ;;  %s4969_s2 = sld [smem:[#allocation34_spill]] }
 0x134   :  { %v519_v21 = vmul.f32 %v4918_v24, %v512_v44  ;;  %v4919_v13 = vmov %v4918_v24  ;;  %v2967_v34 = vadd.f32 %v490_v28, %v486_v22  ;;  %vm620_vm2 = vcmp.lt.s32.totalorder %v2261_v53, 29  ;;  %v2995_v22 = vpop.permute.xlu1 %763 }
 0x135   :  { %v520_v29 = vmul.f32 %v4919_v13, %v511_v31  ;;  %v2969_v32 = vadd.f32 %v491_v51, %v487_v37  ;;  %vm4920_vm11 = vcmp.ge.s32.totalorder %v2321_v54, 0  ;;  %v4923_v62 = vstv %s2272_s26  ;;  %v4925_v37 = vld [vmem:[#allocation23_spill] sm:$0xff]  ;;  %v4926_v51 = vld [vmem:[#allocation24_spill] sm:$0xff]  ;;  %4927 = vst [vmem:[#allocation10_spill] sm:$0xff] %v2995_v22  ;;  %s3116_s26 = sld [smem:[#allocation2 + $0x49]] }
 0x136   :  { %vm2979_vm1 = vmand %vm2884_vm5, %vm4920_vm11  ;;  %v515_v39 = vmul.f32 %v4923_v62, %v506_v36  ;;  %v4924_v28 = vmov %v4923_v62  ;;  %v540_v44 = vsel %vm533_vm9, %v4926_v51, %v4925_v37  ;;  %v541_v38 = vsel %vm533_vm9, %v4925_v37, %v4926_v51  ;;  %1192 = vrot.lane.b32.xlu1 %v2042_v7, %s1956_s23  ;;  %v4962_v37 = vld [vmem:[#allocation33_spill] sm:$0xff] }
 0x137   :  { %v516_v31 = vmul.f32 %v4924_v28, %v505_v50  ;;  %v440_v24 = vadd.f32 %v438_v10, %v411_v40  ;;  %v441_v13 = vadd.f32 %v439_v0, %v412_v16  ;;  %v467_v50 = vsel %vm2931_vm7, %v463_v19, 0.0  ;;  %v3009_v28 = vpop.permute.xlu0 %761  ;;  %1190 = vrot.lane.b32.xlu0 %v2037_v4, %s1956_s23  ;;  %v4968_v22 = vld [vmem:[#allocation44_spill] sm:$0xff]  ;;  %s3977_s23 = sld [smem:[#allocation2 + $0x50]] }
 0x138   :  { %v468_v36 = vsel %vm2957_vm8, %v464_v14, 0.0  ;;  %vm4928_vm3 = vcmp.ge.s32.totalorder %v2331_v5, 0  ;;  %4931 = vst [vmem:[#allocation11_spill] sm:$0xff] %v3009_v28  ;;  %vm4932_vm13 = vcmp.ge.s32.totalorder %v2333_v55, 0  ;;  %v3019_v16 = vadd.f32 %v519_v21, %v515_v39  ;;  %v4936_v14 = vld [vmem:[#allocation21_spill] sm:$0xff]  ;;  %v3053_v59 = vpop.permute.xlu1 %770  ;;  %v4967_v28 = vld [vmem:[#allocation43_spill] sm:$0xff] }
 0x139   :  { %vm3005_vm10 = vmand %vm2904_vm4, %vm4928_vm3  ;;  %v3021_v19 = vadd.f32 %v520_v29, %v516_v31  ;;  %v534_v10 = vsel %vm533_vm9, %v4937_v11, %v4936_v14  ;;  %v535_v0 = vsel %vm533_vm9, %v4936_v14, %v4937_v11  ;;  %vm4938_vm7 = vcmp.ge.s32.totalorder %v2335_v1, 0  ;;  %4943 = vst [vmem:[#allocation8_spill] sm:$0xff] %v3053_v59  ;;  %v4947_v1 = vld [vmem:[#allocation30_spill] sm:$0xff] }
 0x13a   :  { %vm3015_vm11 = vmand %vm2884_vm5, %vm4932_vm13  ;;  %v4941_v21 = vstv %s2285_s27  ;;  %v469_v35 = vadd.f32 %v467_v50, %v440_v24  ;;  %v470_v14 = vadd.f32 %v468_v36, %v441_v13  ;;  %v496_v11 = vsel %vm2979_vm1, %v2967_v34, 0.0  ;;  %v4949_v13 = vld [vmem:[#allocation25_spill] sm:$0xff]  ;;  %v4950_v50 = vld [vmem:[#allocation26_spill] sm:$0xff]  ;;  %1214 = vrot.lane.b32.xlu1 %v2027_v58, %s1957_s25  ;;  %s4993_s27 = sld [smem:[#allocation38_spill]] }
 0x13b   :  { %vm3036_vm8 = vmand %vm2904_vm4, %vm4938_vm7  ;;  %v548_v29 = vmul.f32 %v4941_v21, %v541_v38  ;;  %v4942_v39 = vmov %v4941_v21  ;;  %v497_v33 = vsel %vm3005_vm10, %v2969_v32, 0.0  ;;  %v4944_v20 = vstv %s4935_s24  ;;  %v3067_v27 = vpop.permute.xlu0 %768  ;;  %1212 = vrot.lane.b32.xlu0 %v2031_v61, %s1957_s25  ;;  %s1968_s24 = smov 80  }
 0x13c   :  { %v549_v31 = vmul.f32 %v4942_v39, %v540_v44  ;;  %v544_v38 = vmul.f32 %v4944_v20, %v535_v0  ;;  %v4945_v21 = vmov %v4944_v20  ;;  %v4946_v39 = vld [vmem:[#allocation28_spill] sm:$0xff]  ;;  %4948 = vst [vmem:[#allocation9_spill] sm:$0xff] %v3067_v27  ;;  %v525_v20 = vsel %vm3015_vm11, %v3019_v16, 0.0 }
 0x13d   :  { %v545_v44 = vmul.f32 %v4945_v21, %v534_v10  ;;  %v569_v24 = vsel %vm562_vm15, %v4947_v1, %v4946_v39  ;;  %v570_v34 = vsel %vm562_vm15, %v4946_v39, %v4947_v1  ;;  %v526_v32 = vsel %vm3036_vm8, %v3021_v19, 0.0  ;;  %v4951_v16 = vld [vmem:[#allocation37_spill] sm:$0xff]  ;;  %v4952_v19 = vld [vmem:[#allocation39_spill] sm:$0xff]  ;;  %vm3181_vm8 = vmand %vm2884_vm5, %vm4783_vm12 }
 0x13e   :  { %v563_v36 = vsel %vm562_vm15, %v4950_v50, %v4949_v13  ;;  %v564_v1 = vsel %vm562_vm15, %v4949_v13, %v4950_v50  ;;  %vm649_vm9 = vcmp.lt.s32.totalorder %v2261_v53, 19  ;;  %v3086_v62 = vadd.f32 %v548_v29, %v544_v38  ;;  %v4955_v38 = vld [vmem:[#allocation45_spill] sm:$0xff]  ;;  %v4957_v50 = vld [vmem:[#allocation47_spill] sm:$0xff]  ;;  %1221 = vrot.lane.b32.xlu1 %v2042_v7, %s1957_s25 }
 0x13f   :  { %v3088_v40 = vadd.f32 %v549_v31, %v545_v44  ;;  %v598_v10 = vsel %vm591_vm0, %v4952_v19, %v4951_v16  ;;  %v599_v0 = vsel %vm591_vm0, %v4951_v16, %v4952_v19  ;;  %v4953_v45 = vstv %s2295_s30  ;;  %v4956_v44 = vld [vmem:[#allocation46_spill] sm:$0xff]  ;;  %v3114_v16 = vpop.permute.xlu1 %792  ;;  %1219 = vrot.lane.b32.xlu0 %v2037_v4, %s1957_s25  ;;  %s1959_s30 = smov 98   ;;  %s4006_s25 = sld [smem:[#allocation2 + $0x20]] }
 0x140   :  { %v577_v21 = vmul.f32 %v4953_v45, %v570_v34  ;;  %v4954_v29 = vmov %v4953_v45  ;;  %v627_v39 = vsel %vm620_vm2, %v4956_v44, %v4955_v38  ;;  %v628_v13 = vsel %vm620_vm2, %v4955_v38, %v4956_v44  ;;  %4958 = vst [vmem:[#allocation14_spill] sm:$0xff] %v3114_v16  ;;  %v4963_v44 = vld [vmem:[#allocation48_spill] sm:$0xff]  ;;  %v3132_v16 = vpop.permute.xlu0 %790 }
 0x141   :  { %v578_v31 = vmul.f32 %v4954_v29, %v569_v24  ;;  %vm203_vm15 = vcmp.ge.s32.totalorder %v4957_v50, 0  ;;  %vm205_vm1 = vcmp.lt.s32.totalorder %v4957_v50, 16  ;;  %v4959_v34 = vstv %s2291_s28  ;;  %v4961_v29 = vld [vmem:[#allocation32_spill] sm:$0xff]  ;;  %4964 = vst [vmem:[#allocation15_spill] sm:$0xff] %v3132_v16  ;;  %s5002_s28 = sld [smem:[#allocation42_spill]] }
 0x142   :  { %v573_v24 = vmul.f32 %v4959_v34, %v564_v1  ;;  %v4960_v19 = vmov %v4959_v34  ;;  %v592_v51 = vsel %vm591_vm0, %v4962_v37, %v4961_v29  ;;  %v593_v38 = vsel %vm591_vm0, %v4961_v29, %v4962_v37 }
 0x143   :  { %v574_v45 = vmul.f32 %v4960_v19, %v563_v36  ;;  %vm204_vm3 = vcmp.ge.s32.totalorder %v4963_v44, 0  ;;  %vm206_vm10 = vcmp.lt.s32.totalorder %v4963_v44, 16  ;;  %v4965_v1 = vstv %s2307_s22  ;;  %s1961_s22 = smov 96  }
 0x144   :  { %v606_v36 = vmul.f32 %v4965_v1, %v599_v0  ;;  %v4966_v34 = vmov %v4965_v1  ;;  %v621_v55 = vsel %vm620_vm2, %v4968_v22, %v4967_v28  ;;  %v622_v37 = vsel %vm620_vm2, %v4967_v28, %v4968_v22 }
 0x145   :  { %v607_v19 = vmul.f32 %v4966_v34, %v598_v10  ;;  %vm678_vm0 = vcmp.lt.s32.totalorder %v2261_v53, 18  ;;  %v498_v0 = vadd.f32 %v496_v11, %v469_v35  ;;  %v499_v29 = vadd.f32 %v497_v33, %v470_v14 }
 0x146   :  { %vm4970_vm13 = vcmp.lt.s32.totalorder %v2354_v60, 16  ;;  %v4973_v1 = vstv %s2325_s4  ;;  %vm4975_vm2 = vcmp.lt.s32.totalorder %v2356_v3, 16  ;;  %v579_v35 = vadd.f32 %v577_v21, %v573_v24  ;;  %v3190_v24 = vpop.permute.xlu0 %797  ;;  %s1958_s4 = smov 99  }
 0x147   :  { %vm3153_vm11 = vmand %vm2884_vm5, %vm4970_vm13  ;;  %v635_v34 = vmul.f32 %v4973_v1, %v628_v13  ;;  %v4974_v22 = vmov %v4973_v1  ;;  %v580_v14 = vadd.f32 %v578_v31, %v574_v45  ;;  %v4978_v11 = vstv %s2300_s13  ;;  %v3175_v13 = vpop.permute.xlu1 %799  ;;  %1243 = vrot.lane.b32.xlu1 %v2027_v58, %s1958_s4  ;;  %1241 = vrot.lane.b32.xlu0 %v2031_v61, %s1958_s4  ;;  %s3492_s13 = sld [smem:[#allocation2 + $0x19]] }
 0x148   :  { %v636_v28 = vmul.f32 %v4974_v22, %v627_v39  ;;  %vm3167_vm7 = vmand %vm2904_vm4, %vm4975_vm2  ;;  %v602_v60 = vmul.f32 %v4978_v11, %v593_v38  ;;  %v4979_v16 = vmov %v4978_v11  ;;  %v527_v39 = vadd.f32 %v525_v20, %v498_v0  ;;  %v4992_v0 = vld [vmem:[#allocation50_spill] sm:$0xff] }
 0x149   :  { %v603_v27 = vmul.f32 %v4979_v16, %v592_v51  ;;  %v528_v1 = vadd.f32 %v526_v32, %v499_v29  ;;  %v4982_v3 = vstv %s4969_s2  ;;  %v554_v51 = vsel %vm2884_vm5, %v3086_v62, 0.0  ;;  %vm3212_vm13 = vmand %vm2884_vm5, %vm181_vm14  ;;  %s1969_s2 = smov 79  }
 0x14a   :  { %v631_v59 = vmul.f32 %v4982_v3, %v622_v37  ;;  %v4983_v21 = vmov %v4982_v3  ;;  %v555_v20 = vsel %vm2904_vm4, %v3088_v40, 0.0  ;;  %vm4984_vm2 = vcmp.lt.s32.totalorder %v2366_v52, 16  ;;  %vm3235_vm5 = vmand %vm2904_vm4, %vm182_vm6  ;;  %v3255_v10 = vpop.permute.xlu0 %819 }
 0x14b   :  { %v632_v31 = vmul.f32 %v4983_v21, %v621_v55  ;;  %vm3202_vm12 = vmand %vm2904_vm4, %vm4984_vm2  ;;  %v608_v55 = vadd.f32 %v606_v36, %v602_v60  ;;  %v609_v32 = vadd.f32 %v607_v19, %v603_v27  ;;  %v656_v60 = vsel %vm649_vm9, %v2583_v18, %v2562_v2  ;;  %1250 = vrot.lane.b32.xlu1 %v2042_v7, %s1958_s4 }
 0x14c   :  { %v637_v40 = vadd.f32 %v635_v34, %v631_v59  ;;  %v657_v27 = vsel %vm649_vm9, %v2562_v2, %v2583_v18  ;;  %vm736_vm2 = vcmp.lt.s32.totalorder %v2261_v53, 16  ;;  %v583_v59 = vsel %vm3153_vm11, %v579_v35, 0.0  ;;  %v3239_v2 = vpop.permute.xlu1 %821  ;;  %1248 = vrot.lane.b32.xlu0 %v2037_v4, %s1958_s4  ;;  %s4029_s4 = sld [smem:[#allocation2 + $0x21]] }
 0x14d   :  { %v638_v16 = vadd.f32 %v636_v28, %v632_v31  ;;  %v584_v47 = vsel %vm3167_vm7, %v580_v14, 0.0  ;;  %v4991_v18 = vstv %s2923_s21  ;;  %v940_v36 = vstv %s3116_s26  ;;  %s4010_s26 = sld [smem:[#allocation2 + $0x51]] }
 0x14e   :  { %v3244_v38 = vmul.f32 %v4991_v18, %v2027_v58  ;;  %v556_v19 = vadd.f32 %v554_v51, %v527_v39  ;;  %v557_v37 = vadd.f32 %v555_v20, %v528_v1  ;;  %v650_v29 = vsel %vm649_vm9, %v2512_v43, %v4992_v0 }
 0x14f   :  { %v651_v63 = vsel %vm649_vm9, %v4992_v0, %v2512_v43  ;;  %v612_v34 = vsel %vm3181_vm8, %v608_v55, 0.0  ;;  %v613_v28 = vsel %vm3202_vm12, %v609_v32, 0.0  ;;  %v4994_v33 = vstv %s2349_s29  ;;  %vm3275_vm12 = vmand %vm203_vm15, %vm205_vm1  ;;  %1272 = vrot.lane.b32.xlu1 %v2027_v58, %s1959_s30  ;;  %s3640_s29 = sld [smem:[#allocation2 + $0x4a]] }
 0x150   :  { %v664_v35 = vmul.f32 %v4994_v33, %v657_v27  ;;  %v4995_v14 = vmov %v4994_v33  ;;  %v585_v39 = vadd.f32 %v583_v59, %v556_v19  ;;  %v586_v1 = vadd.f32 %v584_v47, %v557_v37  ;;  %vm3290_vm9 = vmand %vm204_vm3, %vm206_vm10  ;;  %v3302_v62 = vpop.permute.xlu1 %828  ;;  %1270 = vrot.lane.b32.xlu0 %v2031_v61, %s1959_s30 }
 0x151   :  { %v665_v11 = vmul.f32 %v4995_v14, %v656_v60  ;;  %v641_v43 = vsel %vm3212_vm13, %v637_v40, 0.0  ;;  %v642_v21 = vsel %vm3235_vm5, %v638_v16, 0.0  ;;  %vm765_vm4 = vcmp.lt.s32.totalorder %v2261_v53, 15 }
 0x152   :  { %v4998_v31 = vstv %s4993_s27  ;;  %v685_v50 = vsel %vm678_vm0, %v2698_v17, %v2681_v8  ;;  %v686_v32 = vsel %vm678_vm0, %v2681_v8, %v2698_v17  ;;  %v614_v40 = vadd.f32 %v612_v34, %v585_v39  ;;  %v3313_v8 = vpop.permute.xlu0 %826  ;;  %s4033_s27 = sld [smem:[#allocation2 + $0x52]] }
 0x153   :  { %v660_v51 = vmul.f32 %v4998_v31, %v651_v63  ;;  %v4999_v20 = vmov %v4998_v31  ;;  %v615_v16 = vadd.f32 %v613_v28, %v586_v1  ;;  %v679_v44 = vsel %vm678_vm0, %v2650_v26, %v2637_v23  ;;  %1279 = vrot.lane.b32.xlu1 %v2042_v7, %s1959_s30 }
 0x154   :  { %v661_v3 = vmul.f32 %v4999_v20, %v650_v29  ;;  %v680_v60 = vsel %vm678_vm0, %v2637_v23, %v2650_v26  ;;  %vm794_vm15 = vcmp.lt.s32.totalorder %v2261_v53, 14  ;;  %vm5003_vm1 = vcmp.ge.s32.totalorder %v2318_v56, 0  ;;  %1277 = vrot.lane.b32.xlu0 %v2037_v4, %s1959_s30  ;;  %s4062_s30 = sld [smem:[#allocation2 + $0x22]] }
 0x155   :  { %vm3319_vm3 = vmand %vm3275_vm12, %vm5003_vm1  ;;  %v3323_v27 = vadd.f32 %v664_v35, %v660_v51  ;;  %vm5006_vm10 = vcmp.lt.s32.totalorder %v2261_v53, 17  ;;  %v3336_v47 = vadd.f32 %v641_v43, %v614_v40  ;;  %v3338_v45 = vadd.f32 %v642_v21, %v615_v16  ;;  %v3365_v35 = vpop.permute.xlu1 %850 }
 0x156   :  { %v3325_v59 = vadd.f32 %v665_v11, %v661_v3  ;;  %v714_v23 = vsel %vm5006_vm10, %v2807_v12, %v2785_v30  ;;  %vm5007_vm0 = vmmov %vm5006_vm10  ;;  %vm5008_vm11 = vcmp.ge.s32.totalorder %v2329_v6, 0  ;;  %v5011_v19 = vstv %s2414_s3  ;;  %s1960_s3 = smov 97  }
 0x157   :  { %v715_v26 = vsel %vm5007_vm0, %v2785_v30, %v2807_v12  ;;  %vm3344_vm7 = vmand %vm3290_vm9, %vm5008_vm11  ;;  %v693_v37 = vmul.f32 %v5011_v19, %v686_v32  ;;  %v5012_v0 = vmov %v5011_v19  ;;  %v5013_v30 = vstv %s5002_s28  ;;  %1301 = vrot.lane.b32.xlu1 %v2027_v58, %s1960_s3  ;;  %s1970_s28 = smov 78  }
 0x158   :  { %v694_v29 = vmul.f32 %v5012_v0, %v685_v50  ;;  %v689_v12 = vmul.f32 %v5013_v30, %v680_v60  ;;  %v5014_v63 = vmov %v5013_v30  ;;  %vm5015_vm8 = vmmov %vm5007_vm0  ;;  %v5017_v14 = vstv %s2447_s5  ;;  %s5020_s5 = sld [smem:[#allocation49_spill]]  ;;  %1299 = vrot.lane.b32.xlu0 %v2031_v61, %s1960_s3 }
 0x159   :  { %v690_v34 = vmul.f32 %v5014_v63, %v679_v44  ;;  %v708_v28 = vsel %vm5015_vm8, %v2750_v46, %v2746_v42  ;;  %vm5016_vm13 = vmmov %vm5007_vm0  ;;  %v722_v11 = vmul.f32 %v5017_v14, %v715_v26  ;;  %v5018_v39 = vmov %v5017_v14  ;;  %v3430_v18 = vpop.permute.xlu1 %857  ;;  %v5039_v14 = vld [vmem:[#allocation11_spill] sm:$0xff] }
 0x15a   :  { %v709_v33 = vsel %vm5016_vm13, %v2746_v42, %v2750_v46  ;;  %v723_v1 = vmul.f32 %v5018_v39, %v714_v23  ;;  %v743_v43 = vsel %vm736_vm2, %v2947_v15, %v2925_v41  ;;  %v744_v21 = vsel %vm736_vm2, %v2925_v41, %v2947_v15  ;;  %v3379_v42 = vpop.permute.xlu0 %848 }
 0x15b   :  { %v670_v46 = vsel %vm3319_vm3, %v3323_v27, 0.0  ;;  %v671_v31 = vsel %vm3344_vm7, %v3325_v59, 0.0  ;;  %v737_v51 = vsel %vm736_vm2, %v2874_v25, %v2860_v9  ;;  %v738_v41 = vsel %vm736_vm2, %v2860_v9, %v2874_v25  ;;  %v5030_v27 = vld [vmem:[#allocation8_spill] sm:$0xff]  ;;  %v5031_v59 = vld [vmem:[#allocation9_spill] sm:$0xff]  ;;  %v5047_v9 = vld [vmem:[#allocation15_spill] sm:$0xff]  ;;  %1308 = vrot.lane.b32.xlu1 %v2042_v7, %s1960_s3 }
 0x15c   :  { %vm5019_vm5 = vcmp.ge.s32.totalorder %v2321_v54, 0  ;;  %v695_v20 = vadd.f32 %v693_v37, %v689_v12  ;;  %v696_v3 = vadd.f32 %v694_v29, %v690_v34  ;;  %v5023_v50 = vstv %s2433_s0  ;;  %v5034_v34 = vld [vmem:[#allocation35_spill] sm:$0xff]  ;;  %1306 = vrot.lane.b32.xlu0 %v2037_v4, %s1960_s3  ;;  %s1962_s0 = smov 95   ;;  %s1971_s3 = smov 77  }
 0x15d   :  { %vm3400_vm1 = vmand %vm3275_vm12, %vm5019_vm5  ;;  %v718_v32 = vmul.f32 %v5023_v50, %v709_v33  ;;  %v5024_v40 = vmov %v5023_v50  ;;  %vm823_vm2 = vcmp.lt.s32.totalorder %v2261_v53, 13  ;;  %vm5025_vm3 = vcmp.ge.s32.totalorder %v2331_v5, 0  ;;  %v5038_v33 = vld [vmem:[#allocation10_spill] sm:$0xff] }
 0x15e   :  { %v719_v16 = vmul.f32 %v5024_v40, %v708_v28  ;;  %vm3414_vm10 = vmand %vm3290_vm9, %vm5025_vm3  ;;  %v5028_v25 = vstv %s2546_s6  ;;  %v772_v23 = vsel %vm765_vm4, %v5031_v59, %v5030_v27  ;;  %v773_v26 = vsel %vm765_vm4, %v5030_v27, %v5031_v59  ;;  %v3436_v63 = vpop.permute.xlu0 %855  ;;  %s3752_s6 = sld [smem:[#allocation2 + $0x4b]] }
 0x15f   :  { %v751_v44 = vmul.f32 %v5028_v25, %v744_v21  ;;  %v5029_v60 = vmov %v5028_v25  ;;  %v724_v19 = vadd.f32 %v722_v11, %v718_v32  ;;  %v5032_v0 = vstv %s5020_s5  ;;  %1330 = vrot.lane.b32.xlu1 %v2027_v58, %s1961_s22  ;;  %s4066_s5 = sld [smem:[#allocation2 + $0x53]] }
 0x160   :  { %v752_v17 = vmul.f32 %v5029_v60, %v743_v43  ;;  %v725_v37 = vadd.f32 %v723_v1, %v719_v16  ;;  %v747_v29 = vmul.f32 %v5032_v0, %v738_v41  ;;  %v5033_v30 = vmov %v5032_v0  ;;  %v5040_v41 = vld [vmem:[#allocation36_spill] sm:$0xff]  ;;  %v5046_v16 = vld [vmem:[#allocation14_spill] sm:$0xff]  ;;  %v3490_v60 = vpop.permute.xlu1 %879  ;;  %1328 = vrot.lane.b32.xlu0 %v2031_v61, %s1961_s22 }
 0x161   :  { %v748_v12 = vmul.f32 %v5033_v30, %v737_v51  ;;  %vm5035_vm0 = vcmp.ge.s32.totalorder %v5034_v34, 0  ;;  %v766_v11 = vsel %vm765_vm4, %v5039_v14, %v5038_v33  ;;  %v767_v39 = vsel %vm765_vm4, %v5038_v33, %v5039_v14 }
 0x162   :  { %vm3442_vm11 = vmand %vm3275_vm12, %vm5035_vm0  ;;  %v801_v1 = vsel %vm794_vm15, %v3190_v24, %v3175_v13  ;;  %v802_v43 = vsel %vm794_vm15, %v3175_v13, %v3190_v24  ;;  %v699_v21 = vsel %vm3400_vm1, %v695_v20, 0.0  ;;  %v700_v51 = vsel %vm3414_vm10, %v696_v3, 0.0  ;;  %v3503_v30 = vpop.permute.xlu0 %877 }
 0x163   :  { %vm5041_vm4 = vcmp.ge.s32.totalorder %v5040_v41, 0  ;;  %v5044_v13 = vstv %s2601_s8  ;;  %v753_v15 = vadd.f32 %v751_v44, %v747_v29  ;;  %v754_v20 = vadd.f32 %v752_v17, %v748_v12  ;;  %1337 = vrot.lane.b32.xlu1 %v2042_v7, %s1961_s22  ;;  %s3816_s8 = sld [smem:[#allocation2 + $0x1b]] }
 0x164   :  { %vm3472_vm7 = vmand %vm3290_vm9, %vm5041_vm4  ;;  %v780_v24 = vmul.f32 %v5044_v13, %v773_v26  ;;  %v5045_v32 = vmov %v5044_v13  ;;  %v795_v3 = vsel %vm794_vm15, %v5047_v9, %v5046_v16  ;;  %v796_v25 = vsel %vm794_vm15, %v5046_v16, %v5047_v9  ;;  %1335 = vrot.lane.b32.xlu0 %v2037_v4, %s1961_s22  ;;  %s4099_s22 = sld [smem:[#allocation2 + $0x54]] }
 0x165   :  { %v781_v40 = vmul.f32 %v5045_v32, %v772_v23  ;;  %v5048_v27 = vstv %s2564_s1  ;;  %v5050_v44 = vstv %s2639_s10  ;;  %vm852_vm8 = vcmp.lt.s32.totalorder %v2261_v53, 3  ;;  %v5060_v32 = vld [vmem:[#allocation41_spill] sm:$0xff]  ;;  %s1963_s1 = smov 94   ;;  %s1964_s10 = smov 93  }
 0x166   :  { %v776_v59 = vmul.f32 %v5048_v27, %v767_v39  ;;  %v5049_v23 = vmov %v5048_v27  ;;  %v809_v17 = vmul.f32 %v5050_v44, %v802_v43  ;;  %v5051_v0 = vmov %v5050_v44  ;;  %v5052_v39 = vld [vmem:[#allocation29_spill] sm:$0xff]  ;;  %v5059_v43 = vld [vmem:[#allocation31_spill] sm:$0xff] }
 0x167   :  { %v777_v26 = vmul.f32 %v5049_v23, %v766_v11  ;;  %v810_v29 = vmul.f32 %v5051_v0, %v801_v1  ;;  %v672_v12 = vadd.f32 %v670_v46, %v3336_v47  ;;  %v673_v33 = vadd.f32 %v671_v31, %v3338_v45  ;;  %v5053_v1 = vld [vmem:[#allocation40_spill] sm:$0xff]  ;;  %1359 = vrot.lane.b32.xlu1 %v2027_v58, %s1962_s0 }
 0x168   :  { %v728_v14 = vsel %vm3442_vm11, %v724_v19, 0.0  ;;  %v729_v11 = vsel %vm3472_vm7, %v725_v37, 0.0  ;;  %vm209_vm15 = vcmp.ge.s32.totalorder %v5052_v39, 0  ;;  %vm211_vm13 = vcmp.lt.s32.totalorder %v5052_v39, 16  ;;  %1357 = vrot.lane.b32.xlu0 %v2031_v61, %s1962_s0 }
 0x169   :  { %vm881_vm5 = vcmp.lt.s32.totalorder %v2261_v53, 2  ;;  %vm5054_vm1 = vcmp.lt.s32.totalorder %v5053_v1, 16  ;;  %v782_v45 = vadd.f32 %v780_v24, %v776_v59  ;;  %v783_v46 = vadd.f32 %v781_v40, %v777_v26 }
 0x16a   :  { %vm3520_vm3 = vmand %vm3275_vm12, %vm5054_vm1  ;;  %v5057_v31 = vstv %s2615_s9  ;;  %v701_v50 = vadd.f32 %v699_v21, %v672_v12  ;;  %v702_v13 = vadd.f32 %v700_v51, %v673_v33  ;;  %vm5061_vm11 = vcmp.lt.s32.totalorder %v5060_v32, 16  ;;  %v887_v21 = vpop.permute.xlu1 %886  ;;  %s3820_s9 = sld [smem:[#allocation2 + $0x4c]] }
 0x16b   :  { %v805_v19 = vmul.f32 %v5057_v31, %v796_v25  ;;  %v5058_v37 = vmov %v5057_v31  ;;  %vm3536_vm4 = vmand %vm3290_vm9, %vm5061_vm11  ;;  %v830_v40 = vsel %vm823_vm2, %v3313_v8, %v3302_v62  ;;  %v831_v16 = vsel %vm823_vm2, %v3302_v62, %v3313_v8  ;;  %v885_v62 = vpop.permute.xlu0 %884  ;;  %1366 = vrot.lane.b32.xlu1 %v2042_v7, %s1962_s0 }
 0x16c   :  { %v806_v28 = vmul.f32 %v5058_v37, %v795_v3  ;;  %v757_v51 = vsel %vm3275_vm12, %v753_v15, 0.0  ;;  %v758_v9 = vsel %vm3290_vm9, %v754_v20, 0.0  ;;  %vm5064_vm7 = vcmp.lt.s32.totalorder %v2364_v48, 16  ;;  %1364 = vrot.lane.b32.xlu0 %v2037_v4, %s1962_s0  ;;  %s4134_s0 = sld [smem:[#allocation2 + $0x55]] }
 0x16d   :  { %vm3556_vm1 = vmand %vm3275_vm12, %vm5064_vm7  ;;  %v811_v25 = vadd.f32 %v809_v17, %v805_v19  ;;  %vm910_vm11 = vcmp.lt.s32.totalorder %v2261_v53, 1  ;;  %v730_v8 = vadd.f32 %v728_v14, %v701_v50  ;;  %v731_v15 = vadd.f32 %v729_v11, %v702_v13 }
 0x16e   :  { %v812_v27 = vadd.f32 %v810_v29, %v806_v28  ;;  %vm5067_vm10 = vcmp.lt.s32.totalorder %v2366_v52, 16  ;;  %v824_v59 = vsel %vm823_vm2, %v3255_v10, %v3239_v2  ;;  %v825_v23 = vsel %vm823_vm2, %v3239_v2, %v3255_v10  ;;  %v909_v33 = vpop.permute.xlu1 %908  ;;  %vm3615_vm2 = vmand %vm3275_vm12, %vm181_vm14 }
 0x16f   :  { %vm3565_vm0 = vmand %vm3290_vm9, %vm5067_vm10  ;;  %v786_v26 = vsel %vm3520_vm3, %v782_v45, 0.0  ;;  %v787_v44 = vsel %vm3536_vm4, %v783_v46, 0.0  ;;  %v5070_v17 = vstv %s2665_s14  ;;  %vm955_vm10 = vcmp.lt.s32.totalorder %v2261_v53, 127  ;;  %v907_v28 = vpop.permute.xlu0 %906  ;;  %1388 = vrot.lane.b32.xlu1 %v2027_v58, %s1963_s1  ;;  %s3861_s14 = sld [smem:[#allocation2 + $0x4d]] }
 0x170   :  { %v838_v0 = vmul.f32 %v5070_v17, %v831_v16  ;;  %v5071_v29 = vmov %v5070_v17  ;;  %v759_v2 = vadd.f32 %v757_v51, %v730_v8  ;;  %v760_v10 = vadd.f32 %v758_v9, %v731_v15  ;;  %vm3628_vm12 = vmand %vm3290_vm9, %vm182_vm6  ;;  %1386 = vrot.lane.b32.xlu0 %v2031_v61, %s1963_s1 }
 0x171   :  { %v839_v12 = vmul.f32 %v5071_v29, %v830_v40  ;;  %v965_v14 = vstv %s3492_s13  ;;  %v3592_v11 = vmul.f32 %v940_v36, %v2037_v4  ;;  %v815_v47 = vsel %vm3556_vm1, %v811_v25, 0.0  ;;  %vm3646_vm9 = vmand %vm209_vm15, %vm211_vm13  ;;  %s4095_s13 = sld [smem:[#allocation2 + $0x23]] }
 0x172   :  { %v816_v45 = vsel %vm3565_vm0, %v812_v27, 0.0  ;;  %v5072_v46 = vstv %s2652_s11  ;;  %v788_v50 = vadd.f32 %v786_v26, %v759_v2  ;;  %v789_v13 = vadd.f32 %v787_v44, %v760_v10  ;;  %s3857_s11 = sld [smem:[#allocation2 + $0x1c]] }
 0x173   :  { %v834_v31 = vmul.f32 %v5072_v46, %v825_v23  ;;  %v5073_v19 = vmov %v5072_v46  ;;  %v859_v24 = vsel %vm852_vm8, %v3436_v63, %v3430_v18  ;;  %v860_v40 = vsel %vm852_vm8, %v3430_v18, %v3436_v63  ;;  %v914_v23 = vpop.permute.xlu0 %913  ;;  %1395 = vrot.lane.b32.xlu1 %v2042_v7, %s1963_s1 }
 0x174   :  { %v835_v37 = vmul.f32 %v5073_v19, %v824_v59  ;;  %v888_v3 = vsel %vm881_vm5, %v885_v62, %v887_v21  ;;  %v889_v18 = vsel %vm881_vm5, %v887_v21, %v885_v62  ;;  %v817_v63 = vadd.f32 %v815_v47, %v788_v50  ;;  %v916_v62 = vpop.permute.xlu1 %915  ;;  %1393 = vrot.lane.b32.xlu0 %v2037_v4, %s1963_s1  ;;  %s4180_s1 = sld [smem:[#allocation2 + $0x26]] }
 0x175   :  { %v840_v51 = vadd.f32 %v838_v0, %v834_v31  ;;  %v818_v25 = vadd.f32 %v816_v45, %v789_v13  ;;  %v853_v27 = vsel %vm852_vm8, %v3379_v42, %v3365_v35  ;;  %v854_v21 = vsel %vm852_vm8, %v3365_v35, %v3379_v42 }
 0x176   :  { %v841_v9 = vadd.f32 %v839_v12, %v835_v37  ;;  %v5080_v8 = vstv %s2700_s16  ;;  %v882_v35 = vsel %vm881_vm5, %v3503_v30, %v3490_v60  ;;  %v883_v42 = vsel %vm881_vm5, %v3490_v60, %v3503_v30  ;;  %s1965_s16 = smov 83  }
 0x177   :  { %v867_v15 = vmul.f32 %v5080_v8, %v860_v40  ;;  %v5081_v20 = vmov %v5080_v8  ;;  %vm5082_vm8 = vcmp.lt.s32.totalorder %v5059_v43, 16  ;;  %vm5083_vm15 = vcmp.ge.s32.totalorder %v5059_v43, 0  ;;  %1417 = vrot.lane.b32.xlu1 %v2027_v58, %s1964_s10 }
 0x178   :  { %v868_v59 = vmul.f32 %v5081_v20, %v859_v24  ;;  %vm3666_vm13 = vmand %vm5083_vm15, %vm5082_vm8  ;;  %v5086_v44 = vstv %s2821_s18  ;;  %v917_v12 = vsel %vm910_vm11, %v914_v23, %v916_v62  ;;  %v918_v60 = vsel %vm910_vm11, %v916_v62, %v914_v23  ;;  %v954_v16 = vpop.permute.xlu1 %953  ;;  %v952_v62 = vpop.permute.xlu0 %951  ;;  %1415 = vrot.lane.b32.xlu0 %v2031_v61, %s1964_s10  ;;  %s3940_s18 = sld [smem:[#allocation2 + $0x1e]] }
 0x179   :  { %v896_v17 = vmul.f32 %v5086_v44, %v889_v18  ;;  %v5087_v0 = vmov %v5086_v44  ;;  %v844_v30 = vsel %vm3615_vm2, %v840_v51, 0.0  ;;  %v845_v2 = vsel %vm3628_vm12, %v841_v9, 0.0 }
 0x17a   :  { %v897_v29 = vmul.f32 %v5087_v0, %v888_v3  ;;  %v5088_v10 = vstv %s2678_s15  ;;  %vm5090_vm5 = vcmp.ge.s32.totalorder %v2318_v56, 0  ;;  %v5093_v19 = vstv %s2709_s12  ;;  %s3748_s15 = sld [smem:[#allocation2 + $0x1a]] }
 0x17b   :  { %v863_v47 = vmul.f32 %v5088_v10, %v854_v21  ;;  %v5089_v45 = vmov %v5088_v10  ;;  %vm3692_vm3 = vmand %vm3646_vm9, %vm5090_vm5  ;;  %v892_v37 = vmul.f32 %v5093_v19, %v883_v42  ;;  %v5094_v50 = vmov %v5093_v19  ;;  %1424 = vrot.lane.b32.xlu1 %v2042_v7, %s1964_s10  ;;  %s3907_s12 = sld [smem:[#allocation2 + $0x4e]] }
 0x17c   :  { %v864_v46 = vmul.f32 %v5089_v45, %v853_v27  ;;  %v893_v13 = vmul.f32 %v5094_v50, %v882_v35  ;;  %v911_v24 = vsel %vm910_vm11, %v907_v28, %v909_v33  ;;  %v912_v40 = vsel %vm910_vm11, %v909_v33, %v907_v28  ;;  %v961_v10 = vpop.permute.xlu1 %960  ;;  %1422 = vrot.lane.b32.xlu0 %v2037_v4, %s1964_s10  ;;  %s4236_s10 = sld [smem:[#allocation2 + $0x58]] }
 0x17d   :  { %vm5095_vm0 = vcmp.ge.s32.totalorder %v2329_v6, 0  ;;  %v869_v9 = vadd.f32 %v867_v15, %v863_v47  ;;  %v5098_v18 = vstv %s2898_s19  ;;  %vm5100_vm7 = vcmp.ge.s32.totalorder %v2321_v54, 0  ;;  %s1967_s19 = smov 81  }
 0x17e   :  { %vm3708_vm4 = vmand %vm3666_vm13, %vm5095_vm0  ;;  %v870_v3 = vadd.f32 %v868_v59, %v864_v46  ;;  %v925_v22 = vmul.f32 %v5098_v18, %v918_v60  ;;  %v5099_v27 = vmov %v5098_v18  ;;  %v898_v28 = vadd.f32 %v896_v17, %v892_v37 }
 0x17f   :  { %v926_v21 = vmul.f32 %v5099_v27, %v917_v12  ;;  %vm3720_vm1 = vmand %vm3646_vm9, %vm5100_vm7  ;;  %v899_v8 = vadd.f32 %v897_v29, %v893_v13  ;;  %v956_v15 = vsel %vm955_vm10, %v952_v62, %v954_v16  ;;  %v957_v20 = vsel %vm955_vm10, %v954_v16, %v952_v62  ;;  %1446 = vrot.lane.b32.xlu1 %v2027_v58, %s1965_s16 }
 0x180   :  { %vm5103_vm11 = vcmp.ge.s32.totalorder %v2331_v5, 0  ;;  %v5106_v35 = vstv %s2838_s20  ;;  %v942_v17 = vmul.f32 %v940_v36, %v2042_v7  ;;  %v5108_v0 = vstv %s2923_s21  ;;  %1444 = vrot.lane.b32.xlu0 %v2031_v61, %s1965_s16  ;;  %s3944_s20 = sld [smem:[#allocation2 + $0x4f]] }
 0x181   :  { %vm3733_vm2 = vmand %vm3666_vm13, %vm5103_vm11  ;;  %v921_v42 = vmul.f32 %v5106_v35, %v912_v40  ;;  %v5107_v23 = vmov %v5106_v35  ;;  %v937_v29 = vmul.f32 %v5108_v0, %v2031_v61  ;;  %v846_v12 = vadd.f32 %v844_v30, %v817_v63  ;;  %s3973_s21 = sld [smem:[#allocation2 + $0x1f]] }
 0x182   :  { %v922_v44 = vmul.f32 %v5107_v23, %v911_v24  ;;  %v847_v60 = vadd.f32 %v845_v2, %v818_v25  ;;  %v969_v47 = vstv %s3640_s29  ;;  %vm984_vm12 = vcmp.lt.s32.totalorder %v2261_v53, 126  ;;  %v959_v2 = vpop.permute.xlu0 %958  ;;  %s4126_s29 = sld [smem:[#allocation2 + $0x24]] }
 0x183   :  { %v873_v45 = vsel %vm3692_vm3, %v869_v9, 0.0  ;;  %v874_v36 = vsel %vm3708_vm4, %v870_v3, 0.0  ;;  %vm5109_vm8 = vcmp.ge.s32.totalorder %v5034_v34, 0  ;;  %v927_v25 = vadd.f32 %v925_v22, %v921_v42  ;;  %v983_v22 = vpop.permute.xlu1 %982  ;;  %1453 = vrot.lane.b32.xlu1 %v2042_v7, %s1965_s16 }
 0x184   :  { %vm3762_vm15 = vmand %vm3646_vm9, %vm5109_vm8  ;;  %v928_v30 = vadd.f32 %v926_v21, %v922_v44  ;;  %v902_v46 = vsel %vm3720_vm1, %v898_v28, 0.0  ;;  %v903_v31 = vsel %vm3733_vm2, %v899_v8, 0.0  ;;  %vm5112_vm5 = vcmp.ge.s32.totalorder %v5040_v41, 0  ;;  %1451 = vrot.lane.b32.xlu0 %v2037_v4, %s1965_s16  ;;  %s4244_s16 = sld [smem:[#allocation2 + $0x29]] }
 0x185   :  { %vm3774_vm3 = vmand %vm3666_vm13, %vm5112_vm5  ;;  %v962_v37 = vsel %vm955_vm10, %v959_v2, %v961_v10  ;;  %v963_v50 = vsel %vm955_vm10, %v961_v10, %v959_v2  ;;  %v966_v13 = vmul.f32 %v965_v14, %v956_v15  ;;  %v967_v24 = vmul.f32 %v965_v14, %v957_v20 }
 0x186   :  { %v970_v40 = vmul.f32 %v969_v47, %v962_v37  ;;  %v971_v16 = vmul.f32 %v969_v47, %v963_v50  ;;  %v875_v51 = vadd.f32 %v873_v45, %v846_v12  ;;  %v876_v9 = vadd.f32 %v874_v36, %v847_v60  ;;  %v981_v33 = vpop.permute.xlu0 %980  ;;  %vm3875_vm5 = vmand %vm3646_vm9, %vm181_vm14 }
 0x187   :  { %v944_v3 = vadd.f32 %v942_v17, %v3244_v38  ;;  %v943_v18 = vadd.f32 %v3592_v11, %v937_v29  ;;  %v931_v27 = vsel %vm3762_vm15, %v927_v25, 0.0  ;;  %v932_v21 = vsel %vm3774_vm3, %v928_v30, 0.0  ;;  %v990_v23 = vpop.permute.xlu1 %989  ;;  %vm3884_vm3 = vmand %vm3666_vm13, %vm182_vm6  ;;  %1475 = vrot.lane.b32.xlu1 %v2027_v58, %s1966_s17 }
 0x188   :  { %v972_v62 = vadd.f32 %v970_v40, %v966_v13  ;;  %v973_v14 = vadd.f32 %v971_v16, %v967_v24  ;;  %v904_v28 = vadd.f32 %v902_v46, %v875_v51  ;;  %v905_v8 = vadd.f32 %v903_v31, %v876_v9  ;;  %1473 = vrot.lane.b32.xlu0 %v2031_v61, %s1966_s17 }
 0x189   :  { %vm5115_vm10 = vcmp.lt.s32.totalorder %v5053_v1, 16  ;;  %v985_v11 = vsel %vm984_vm12, %v981_v33, %v983_v22  ;;  %v986_v15 = vsel %vm984_vm12, %v983_v22, %v981_v33  ;;  %vm5118_vm4 = vcmp.lt.s32.totalorder %v5060_v32, 16 }
 0x18a   :  { %vm3798_vm0 = vmand %vm3646_vm9, %vm5115_vm10  ;;  %v933_v59 = vadd.f32 %v931_v27, %v904_v28  ;;  %v934_v35 = vadd.f32 %v932_v21, %v905_v8  ;;  %v994_v42 = vstv %s3748_s15  ;;  %v998_v44 = vstv %s3752_s6  ;;  %v988_v29 = vpop.permute.xlu0 %987  ;;  %s4157_s15 = sld [smem:[#allocation2 + $0x25]] }
 0x18b   :  { %vm3811_vm7 = vmand %vm3666_vm13, %vm5118_vm4  ;;  %v948_v17 = vsel %vm3666_vm13, %v944_v3, 0.0  ;;  %v947_v0 = vsel %vm3646_vm9, %v943_v18, 0.0  ;;  %vm1013_vm1 = vcmp.lt.s32.totalorder %v2261_v53, 125  ;;  %v976_v12 = vsel %vm3798_vm0, %v972_v62, 0.0  ;;  %v1012_v31 = vpop.permute.xlu1 %1011  ;;  %1482 = vrot.lane.b32.xlu1 %v2042_v7, %s1966_s17  ;;  %s4161_s6 = sld [smem:[#allocation2 + $0x56]] }
 0x18c   :  { %v977_v60 = vsel %vm3811_vm7, %v973_v14, 0.0  ;;  %v991_v10 = vsel %vm984_vm12, %v988_v29, %v990_v23  ;;  %v992_v47 = vsel %vm984_vm12, %v990_v23, %v988_v29  ;;  %v995_v45 = vmul.f32 %v994_v42, %v985_v11  ;;  %1480 = vrot.lane.b32.xlu0 %v2037_v4, %s1966_s17  ;;  %s4252_s17 = sld [smem:[#allocation2 + $0x5b]] }
 0x18d   :  { %v996_v36 = vmul.f32 %v994_v42, %v986_v15  ;;  %vm5121_vm11 = vcmp.lt.s32.totalorder %v2364_v48, 16  ;;  %v999_v25 = vmul.f32 %v998_v44, %v991_v10  ;;  %v1000_v30 = vmul.f32 %v998_v44, %v992_v47 }
 0x18e   :  { %vm3840_vm2 = vmand %vm3646_vm9, %vm5121_vm11  ;;  %v950_v2 = vadd.f32 %v948_v17, %v934_v35  ;;  %v949_v46 = vadd.f32 %v947_v0, %v933_v59  ;;  %vm5124_vm12 = vcmp.lt.s32.totalorder %v2366_v52, 16  ;;  %v1010_v50 = vpop.permute.xlu0 %1009  ;;  %v1023_v22 = vstv %s3816_s8  ;;  %s1810_s8 = sld [smem:[#allocation2 + $0x57]] }
 0x18f   :  { %vm1004_vm8 = vmand %vm3666_vm13, %vm5124_vm12  ;;  %v1001_v19 = vadd.f32 %v999_v25, %v995_v45  ;;  %v1002_v37 = vadd.f32 %v1000_v30, %v996_v36  ;;  %v1014_v40 = vsel %vm1013_vm1, %v1010_v50, %v1012_v31  ;;  %v1015_v16 = vsel %vm1013_vm1, %v1012_v31, %v1010_v50  ;;  %v1019_v27 = vpop.permute.xlu1 %1018  ;;  %1504 = vrot.lane.b32.xlu1 %v2027_v58, %s1967_s19 }
 0x190   :  { %v978_v13 = vadd.f32 %v976_v12, %v949_v46  ;;  %v979_v24 = vadd.f32 %v977_v60, %v950_v2  ;;  %v1027_v21 = vstv %s3820_s9  ;;  %v215_v14 = vadd.s32 1, %v5052_v39  ;;  %1502 = vrot.lane.b32.xlu0 %v2031_v61, %s1967_s19  ;;  %s4232_s9 = sld [smem:[#allocation2 + $0x27]] }
 0x191   :  { %v1005_v51 = vsel %vm3840_vm2, %v1001_v19, 0.0  ;;  %v1006_v9 = vsel %vm1004_vm8, %v1002_v37, 0.0  ;;  %vm1042_vm15 = vcmp.lt.s32.totalorder %v2261_v53, 115  ;;  %v216_v8 = vadd.s32 1, %v5059_v43 }
 0x192   :  { %v1007_v3 = vadd.f32 %v1005_v51, %v978_v13  ;;  %v1008_v18 = vadd.f32 %v1006_v9, %v979_v24  ;;  %v1017_v62 = vpop.permute.xlu0 %1016  ;;  %v1024_v38 = vmul.f32 %v1023_v22, %v1014_v40  ;;  %v1025_v11 = vmul.f32 %v1023_v22, %v1015_v16 }
 0x193   :  { %v1020_v33 = vsel %vm1013_vm1, %v1017_v62, %v1019_v27  ;;  %v1021_v28 = vsel %vm1013_vm1, %v1019_v27, %v1017_v62  ;;  %v1041_v42 = vpop.permute.xlu1 %1040  ;;  %vm217_vm9 = vcmp.ge.s32.totalorder %v215_v14, 0  ;;  %vm219_vm10 = vcmp.lt.s32.totalorder %v215_v14, 16  ;;  %1511 = vrot.lane.b32.xlu1 %v2042_v7, %s1967_s19 }
 0x194   :  { %v1028_v20 = vmul.f32 %v1027_v21, %v1020_v33  ;;  %v1029_v59 = vmul.f32 %v1027_v21, %v1021_v28  ;;  %vm218_vm13 = vcmp.ge.s32.totalorder %v216_v8, 0  ;;  %vm220_vm0 = vcmp.lt.s32.totalorder %v216_v8, 16  ;;  %vm3902_vm4 = vmand %vm217_vm9, %vm219_vm10  ;;  %1509 = vrot.lane.b32.xlu0 %v2037_v4, %s1967_s19  ;;  %s4274_s19 = sld [smem:[#allocation2 + $0x2c]] }
 0x195   :  { %v1052_v10 = vstv %s3857_s11  ;;  %v1056_v36 = vstv %s3861_s14  ;;  %vm3909_vm7 = vmand %vm218_vm13, %vm220_vm0  ;;  %vm1071_vm1 = vcmp.lt.s32.totalorder %v2261_v53, 114  ;;  %vm5133_vm11 = vcmp.ge.s32.totalorder %v2318_v56, 0  ;;  %s4238_s11 = sld [smem:[#allocation2 + $0x28]] }
 0x196   :  { %v1030_v23 = vadd.f32 %v1028_v20, %v1024_v38  ;;  %v1031_v55 = vadd.f32 %v1029_v59, %v1025_v11  ;;  %v1039_v44 = vpop.permute.xlu0 %1038  ;;  %vm3923_vm2 = vmand %vm3902_vm4, %vm5133_vm11  ;;  %vm5136_vm12 = vcmp.ge.s32.totalorder %v2329_v6, 0  ;;  %v1081_v21 = vstv %s3898_s7  ;;  %s4240_s14 = sld [smem:[#allocation2 + $0x59]] }
 0x197   :  { %v1043_v17 = vsel %vm1042_vm15, %v1039_v44, %v1041_v42  ;;  %v1044_v0 = vsel %vm1042_vm15, %v1041_v42, %v1039_v44  ;;  %v1048_v47 = vpop.permute.xlu1 %1047  ;;  %vm1062_vm8 = vmand %vm3909_vm7, %vm5136_vm12  ;;  %v1085_v14 = vstv %s3907_s12  ;;  %vm5140_vm9 = vcmp.ge.s32.totalorder %v2331_v5, 0  ;;  %1533 = vrot.lane.b32.xlu1 %v2027_v58, %s1968_s24  ;;  %s4248_s7 = sld [smem:[#allocation2 + $0x5a]] }
 0x198   :  { %v1034_v26 = vsel %vm3875_vm5, %v1030_v23, 0.0  ;;  %v1035_v29 = vsel %vm3884_vm3, %v1031_v55, 0.0  ;;  %v1053_v46 = vmul.f32 %v1052_v10, %v1043_v17  ;;  %v1054_v31 = vmul.f32 %v1052_v10, %v1044_v0  ;;  %vm1091_vm10 = vmand %vm3909_vm7, %vm5140_vm9  ;;  %1531 = vrot.lane.b32.xlu0 %v2031_v61, %s1968_s24  ;;  %s4250_s12 = sld [smem:[#allocation2 + $0x2a]] }
 0x199   :  { %v1036_v12 = vadd.f32 %v1034_v26, %v1007_v3  ;;  %v1037_v60 = vadd.f32 %v1035_v29, %v1008_v18  ;;  %vm5137_vm5 = vcmp.ge.s32.totalorder %v2321_v54, 0  ;;  %vm1129_vm13 = vcmp.lt.s32.totalorder %v2261_v53, 112 }
 0x19a   :  { %v1046_v25 = vpop.permute.xlu0 %1045  ;;  %vm3956_vm3 = vmand %vm3902_vm4, %vm5137_vm5  ;;  %vm5141_vm0 = vcmp.ge.s32.totalorder %v5034_v34, 0  ;;  %vm5144_vm11 = vcmp.ge.s32.totalorder %v5040_v41, 0  ;;  %vm1158_vm12 = vcmp.lt.s32.totalorder %v2261_v53, 111 }
 0x19b   :  { %v1049_v30 = vsel %vm1042_vm15, %v1046_v25, %v1048_v47  ;;  %v1050_v2 = vsel %vm1042_vm15, %v1048_v47, %v1046_v25  ;;  %v1070_v13 = vpop.permute.xlu1 %1069  ;;  %vm1100_vm15 = vcmp.lt.s32.totalorder %v2261_v53, 113  ;;  %v1114_v47 = vstv %s3944_s20  ;;  %1540 = vrot.lane.b32.xlu1 %v2042_v7, %s1968_s24  ;;  %s4264_s20 = sld [smem:[#allocation2 + $0x5c]] }
 0x19c   :  { %v1057_v37 = vmul.f32 %v1056_v36, %v1049_v30  ;;  %v1058_v50 = vmul.f32 %v1056_v36, %v1050_v2  ;;  %1538 = vrot.lane.b32.xlu0 %v2037_v4, %s1968_s24  ;;  %s4311_s24 = sld [smem:[#allocation2 + $0x5e]] }
 0x19e   :  { %v1059_v24 = vadd.f32 %v1057_v37, %v1053_v46  ;;  %v1060_v40 = vadd.f32 %v1058_v50, %v1054_v31  ;;  %v1068_v16 = vpop.permute.xlu0 %1067 }
 0x19f   :  { %v1072_v51 = vsel %vm1071_vm1, %v1068_v16, %v1070_v13  ;;  %v1073_v9 = vsel %vm1071_vm1, %v1070_v13, %v1068_v16  ;;  %v1077_v62 = vpop.permute.xlu1 %1076  ;;  %1562 = vrot.lane.b32.xlu1 %v2027_v58, %s1969_s2 }
 0x1a0   :  { %v1063_v3 = vsel %vm3923_vm2, %v1059_v24, 0.0  ;;  %v1064_v18 = vsel %vm1062_vm8, %v1060_v40, 0.0  ;;  %v1082_v38 = vmul.f32 %v1081_v21, %v1072_v51  ;;  %v1083_v11 = vmul.f32 %v1081_v21, %v1073_v9  ;;  %vm1120_vm2 = vmand %vm3909_vm7, %vm5144_vm11  ;;  %1560 = vrot.lane.b32.xlu0 %v2031_v61, %s1969_s2 }
 0x1a1   :  { %v1065_v22 = vadd.f32 %v1063_v3, %v1036_v12  ;;  %v1066_v27 = vadd.f32 %v1064_v18, %v1037_v60  ;;  %v1110_v60 = vstv %s3940_s18  ;;  %vm1187_vm8 = vcmp.lt.s32.totalorder %v2261_v53, 110  ;;  %s4256_s18 = sld [smem:[#allocation2 + $0x2b]] }
 0x1a2   :  { %v1075_v33 = vpop.permute.xlu0 %1074 }
 0x1a3   :  { %v1078_v28 = vsel %vm1071_vm1, %v1075_v33, %v1077_v62  ;;  %v1079_v8 = vsel %vm1071_vm1, %v1077_v62, %v1075_v33  ;;  %v1099_v35 = vpop.permute.xlu1 %1098  ;;  %vm3989_vm1 = vmand %vm3902_vm4, %vm5141_vm0  ;;  %v1143_v62 = vstv %s3977_s23  ;;  %1569 = vrot.lane.b32.xlu1 %v2042_v7, %s1969_s2  ;;  %s4296_s23 = sld [smem:[#allocation2 + $0x2d]] }
 0x1a4   :  { %v1086_v20 = vmul.f32 %v1085_v14, %v1078_v28  ;;  %v1087_v59 = vmul.f32 %v1085_v14, %v1079_v8  ;;  %1567 = vrot.lane.b32.xlu0 %v2037_v4, %s1969_s2  ;;  %s4450_s2 = sld [smem:[#allocation2 + $0x2f]] }
 0x1a6   :  { %v1088_v42 = vadd.f32 %v1086_v20, %v1082_v38  ;;  %v1089_v23 = vadd.f32 %v1087_v59, %v1083_v11  ;;  %v1097_v55 = vpop.permute.xlu0 %1096 }
 0x1a7   :  { %v1101_v44 = vsel %vm1100_vm15, %v1097_v55, %v1099_v35  ;;  %v1102_v17 = vsel %vm1100_vm15, %v1099_v35, %v1097_v55  ;;  %v1106_v10 = vpop.permute.xlu1 %1105  ;;  %1591 = vrot.lane.b32.xlu1 %v2027_v58, %s1970_s28 }
 0x1a8   :  { %v1092_v0 = vsel %vm3956_vm3, %v1088_v42, 0.0  ;;  %v1093_v26 = vsel %vm1091_vm10, %v1089_v23, 0.0  ;;  %v1111_v2 = vmul.f32 %v1110_v60, %v1101_v44  ;;  %v1112_v46 = vmul.f32 %v1110_v60, %v1102_v17  ;;  %1589 = vrot.lane.b32.xlu0 %v2031_v61, %s1970_s28 }
 0x1a9   :  { %v1094_v29 = vadd.f32 %v1092_v0, %v1065_v22  ;;  %v1095_v12 = vadd.f32 %v1093_v26, %v1066_v27  ;;  %v1139_v27 = vstv %s3973_s21  ;;  %v1172_v60 = vstv %s4010_s26  ;;  %s4288_s21 = sld [smem:[#allocation2 + $0x5d]] }
 0x1aa   :  { %v1104_v36 = vpop.permute.xlu0 %1103  ;;  %vm5148_vm3 = vcmp.lt.s32.totalorder %v5060_v32, 16  ;;  %vm1216_vm10 = vcmp.lt.s32.totalorder %v2261_v53, 109  ;;  %s4389_s26 = sld [smem:[#allocation2 + $0x5f]] }
 0x1ab   :  { %v1107_v25 = vsel %vm1100_vm15, %v1104_v36, %v1106_v10  ;;  %v1108_v30 = vsel %vm1100_vm15, %v1106_v10, %v1104_v36  ;;  %v1128_v50 = vpop.permute.xlu1 %1127  ;;  %vm5145_vm15 = vcmp.lt.s32.totalorder %v5053_v1, 16  ;;  %vm1178_vm9 = vmand %vm3909_vm7, %vm5148_vm3  ;;  %1598 = vrot.lane.b32.xlu1 %v2042_v7, %s1970_s28 }
 0x1ac   :  { %v1115_v19 = vmul.f32 %v1114_v47, %v1107_v25  ;;  %v1116_v37 = vmul.f32 %v1114_v47, %v1108_v30  ;;  %vm4045_vm5 = vmand %vm3902_vm4, %vm5145_vm15  ;;  %1596 = vrot.lane.b32.xlu0 %v2037_v4, %s1970_s28  ;;  %s4584_s28 = sld [smem:[#allocation2 + $0x61]] }
 0x1ae   :  { %v1117_v13 = vadd.f32 %v1115_v19, %v1111_v2  ;;  %v1118_v24 = vadd.f32 %v1116_v37, %v1112_v46  ;;  %v1126_v40 = vpop.permute.xlu0 %1125 }
 0x1af   :  { %v1130_v16 = vsel %vm1129_vm13, %v1126_v40, %v1128_v50  ;;  %v1131_v51 = vsel %vm1129_vm13, %v1128_v50, %v1126_v40  ;;  %v1135_v21 = vpop.permute.xlu1 %1134  ;;  %1620 = vrot.lane.b32.xlu1 %v2027_v58, %s1971_s3 }
 0x1b0   :  { %v1121_v9 = vsel %vm3989_vm1, %v1117_v13, 0.0  ;;  %v1122_v3 = vsel %vm1120_vm2, %v1118_v24, 0.0  ;;  %v1140_v8 = vmul.f32 %v1139_v27, %v1130_v16  ;;  %v1141_v38 = vmul.f32 %v1139_v27, %v1131_v51  ;;  %1618 = vrot.lane.b32.xlu0 %v2031_v61, %s1971_s3 }
 0x1b1   :  { %v1123_v18 = vadd.f32 %v1121_v9, %v1094_v29  ;;  %v1124_v22 = vadd.f32 %v1122_v3, %v1095_v12  ;;  %v1168_v29 = vstv %s4006_s25  ;;  %v1201_v27 = vstv %s4033_s27  ;;  %s4322_s25 = sld [smem:[#allocation2 + $0x2e]] }
 0x1b2   :  { %v1133_v14 = vpop.permute.xlu0 %1132  ;;  %vm5152_vm1 = vcmp.lt.s32.totalorder %v2366_v52, 16  ;;  %vm1245_vm2 = vcmp.lt.s32.totalorder %v2261_v53, 99  ;;  %s4564_s27 = sld [smem:[#allocation2 + $0x30]] }
 0x1b3   :  { %v1136_v33 = vsel %vm1129_vm13, %v1133_v14, %v1135_v21  ;;  %v1137_v28 = vsel %vm1129_vm13, %v1135_v21, %v1133_v14  ;;  %v1157_v20 = vpop.permute.xlu1 %1156  ;;  %vm5149_vm13 = vcmp.lt.s32.totalorder %v2364_v48, 16  ;;  %vm1207_vm11 = vmand %vm3909_vm7, %vm5152_vm1  ;;  %1627 = vrot.lane.b32.xlu1 %v2042_v7, %s1971_s3  ;;  %vm5160_vm1 = vcmp.ge.s32.totalorder %v2329_v6, 0 }
 0x1b4   :  { %v1144_v11 = vmul.f32 %v1143_v62, %v1136_v33  ;;  %v1145_v15 = vmul.f32 %v1143_v62, %v1137_v28  ;;  %vm4078_vm0 = vmand %vm3902_vm4, %vm5149_vm13  ;;  %1625 = vrot.lane.b32.xlu0 %v2037_v4, %s1971_s3  ;;  %v224_v4 = vadd.s32 2, %v5059_v43  ;;  %vm5159_vm13 = vcmp.ge.s32.totalorder %v2318_v56, 0 }
 0x1b6   :  { %v1146_v59 = vadd.f32 %v1144_v11, %v1140_v8  ;;  %v1147_v35 = vadd.f32 %v1145_v15, %v1141_v38  ;;  %v1155_v42 = vpop.permute.xlu0 %1154  ;;  %vm228_vm3 = vcmp.lt.s32.totalorder %v224_v4, 16 }
 0x1b7   :  { %v1159_v23 = vsel %vm1158_vm12, %v1155_v42, %v1157_v20  ;;  %v1160_v55 = vsel %vm1158_vm12, %v1157_v20, %v1155_v42  ;;  %v1164_v12 = vpop.permute.xlu1 %1163 }
 0x1b8   :  { %v1150_v44 = vsel %vm3902_vm4, %v1146_v59, 0.0  ;;  %v1151_v17 = vsel %vm3909_vm7, %v1147_v35, 0.0  ;;  %v1169_v25 = vmul.f32 %v1168_v29, %v1159_v23  ;;  %v1170_v30 = vmul.f32 %v1168_v29, %v1160_v55 }
 0x1b9   :  { %v1152_v0 = vadd.f32 %v1150_v44, %v1123_v18  ;;  %v1153_v26 = vadd.f32 %v1151_v17, %v1124_v22  ;;  %v1197_v18 = vstv %s4029_s4  ;;  %v1226_v17 = vstv %s4062_s30  ;;  %s4460_s4 = sld [smem:[#allocation2 + $0x60]] }
 0x1ba   :  { %v1162_v10 = vpop.permute.xlu0 %1161 }
 0x1bb   :  { %v1165_v47 = vsel %vm1158_vm12, %v1162_v10, %v1164_v12  ;;  %v1166_v36 = vsel %vm1158_vm12, %v1164_v12, %v1162_v10  ;;  %v1186_v19 = vpop.permute.xlu1 %1185  ;;  %v223_v12 = vadd.s32 2, %v5052_v39  ;;  %vm4112_vm12 = vmand %vm3902_vm4, %vm181_vm14  ;;  %vm226_vm4 = vcmp.ge.s32.totalorder %v224_v4, 0 }
 0x1bc   :  { %v1173_v46 = vmul.f32 %v1172_v60, %v1165_v47  ;;  %v1174_v31 = vmul.f32 %v1172_v60, %v1166_v36 }
 0x1bd   :  { %vm225_vm15 = vcmp.ge.s32.totalorder %v223_v12, 0 }
 0x1be   :  { %v1175_v37 = vadd.f32 %v1173_v46, %v1169_v25  ;;  %v1176_v50 = vadd.f32 %v1174_v31, %v1170_v30  ;;  %v1184_v13 = vpop.permute.xlu0 %1183 }
 0x1bf   :  { %v1188_v24 = vsel %vm1187_vm8, %v1184_v13, %v1186_v19  ;;  %v1189_v40 = vsel %vm1187_vm8, %v1186_v19, %v1184_v13  ;;  %v1193_v22 = vpop.permute.xlu1 %1192 }
 0x1c0   :  { %v1179_v16 = vsel %vm4045_vm5, %v1175_v37, 0.0  ;;  %v1180_v51 = vsel %vm1178_vm9, %v1176_v50, 0.0  ;;  %v1198_v33 = vmul.f32 %v1197_v18, %v1188_v24  ;;  %v1199_v28 = vmul.f32 %v1197_v18, %v1189_v40  ;;  %vm4136_vm9 = vmand %vm226_vm4, %vm228_vm3 }
 0x1c1   :  { %v1181_v9 = vadd.f32 %v1179_v16, %v1152_v0  ;;  %v1182_v3 = vadd.f32 %v1180_v51, %v1153_v26  ;;  %v1230_v26 = vstv %s4066_s5  ;;  %vm227_vm5 = vcmp.lt.s32.totalorder %v223_v12, 16 }
 0x1c2   :  { %v1191_v21 = vpop.permute.xlu0 %1190  ;;  %v1255_v40 = vstv %s4095_s13  ;;  %vm1332_vm4 = vcmp.lt.s32.totalorder %v2261_v53, 96  ;;  %vm5163_vm3 = vcmp.ge.s32.totalorder %v5034_v34, 0 }
 0x1c3   :  { %v1194_v62 = vsel %vm1187_vm8, %v1191_v21, %v1193_v22  ;;  %v1195_v14 = vsel %vm1187_vm8, %v1193_v22, %v1191_v21  ;;  %v1215_v58 = vpop.permute.xlu1 %1214  ;;  %vm1236_vm8 = vmand %vm3909_vm7, %vm182_vm6 }
 0x1c4   :  { %v1202_v38 = vmul.f32 %v1201_v27, %v1194_v62  ;;  %v1203_v11 = vmul.f32 %v1201_v27, %v1195_v14  ;;  %vm4129_vm7 = vmand %vm225_vm15, %vm227_vm5  ;;  %vm5162_vm15 = vcmp.ge.s32.totalorder %v2331_v5, 0 }
 0x1c5   :  { %vm1294_vm5 = vmand %vm4136_vm9, %vm5162_vm15 }
 0x1c6   :  { %v1204_v15 = vadd.f32 %v1202_v38, %v1198_v33  ;;  %v1205_v20 = vadd.f32 %v1203_v11, %v1199_v28  ;;  %v1213_v59 = vpop.permute.xlu0 %1212 }
 0x1c7   :  { %v1217_v35 = vsel %vm1216_vm10, %v1213_v59, %v1215_v58  ;;  %v1218_v42 = vsel %vm1216_vm10, %v1215_v58, %v1213_v59  ;;  %v1222_v0 = vpop.permute.xlu1 %1221 }
 0x1c8   :  { %v1208_v61 = vsel %vm4078_vm0, %v1204_v15, 0.0  ;;  %v1209_v23 = vsel %vm1207_vm11, %v1205_v20, 0.0  ;;  %v1227_v10 = vmul.f32 %v1226_v17, %v1217_v35  ;;  %v1228_v47 = vmul.f32 %v1226_v17, %v1218_v42  ;;  %vm1264_vm0 = vmand %vm4129_vm7, %vm5159_vm13 }
 0x1c9   :  { %v1210_v55 = vadd.f32 %v1208_v61, %v1181_v9  ;;  %v1211_v44 = vadd.f32 %v1209_v23, %v1182_v3  ;;  %v1259_v9 = vstv %s4099_s22  ;;  %vm1265_vm11 = vmand %vm4136_vm9, %vm5160_vm1  ;;  %v1284_v61 = vstv %s4126_s29 }
 0x1ca   :  { %v1220_v29 = vpop.permute.xlu0 %1219  ;;  %vm5164_vm13 = vcmp.ge.s32.totalorder %v5040_v41, 0  ;;  %vm1361_vm1 = vcmp.lt.s32.totalorder %v2261_v53, 95  ;;  %v1549_v3 = vstv %s4311_s24 }
 0x1cb   :  { %v1223_v7 = vsel %vm1216_vm10, %v1220_v29, %v1222_v0  ;;  %v1224_v60 = vsel %vm1216_vm10, %v1222_v0, %v1220_v29  ;;  %v1244_v2 = vpop.permute.xlu1 %1243  ;;  %vm1274_vm10 = vcmp.lt.s32.totalorder %v2261_v53, 98 }
 0x1cc   :  { %v1231_v25 = vmul.f32 %v1230_v26, %v1223_v7  ;;  %v1232_v30 = vmul.f32 %v1230_v26, %v1224_v60 }
 0x1ce   :  { %v1233_v46 = vadd.f32 %v1231_v25, %v1227_v10  ;;  %v1234_v31 = vadd.f32 %v1232_v30, %v1228_v47  ;;  %v1242_v19 = vpop.permute.xlu0 %1241 }
 0x1cf   :  { %v1246_v45 = vsel %vm1245_vm2, %v1242_v19, %v1244_v2  ;;  %v1247_v37 = vsel %vm1245_vm2, %v1244_v2, %v1242_v19  ;;  %v1251_v16 = vpop.permute.xlu1 %1250  ;;  %v1313_v19 = vstv %s4157_s15  ;;  %s1682_s15 = sld [smem:[#allocation4]] }
 0x1d0   :  { %v1237_v63 = vsel %vm4112_vm12, %v1233_v46, 0.0  ;;  %v1238_v50 = vsel %vm1236_vm8, %v1234_v31, 0.0  ;;  %v1256_v21 = vmul.f32 %v1255_v40, %v1246_v45  ;;  %v1257_v62 = vmul.f32 %v1255_v40, %v1247_v37 }
 0x1d1   :  { %v1239_v13 = vadd.f32 %v1237_v63, %v1210_v55  ;;  %v1240_v24 = vadd.f32 %v1238_v50, %v1211_v44  ;;  %v1288_v55 = vstv %s4134_s0  ;;  %vm5161_vm12 = vcmp.ge.s32.totalorder %v2321_v54, 0 }
 0x1d2   :  { %v1249_v18 = vpop.permute.xlu0 %1248  ;;  %vm1293_vm8 = vmand %vm4129_vm7, %vm5161_vm12  ;;  %v1317_v37 = vstv %s4161_s6  ;;  %vm1448_vm12 = vcmp.lt.s32.totalorder %v2261_v53, 83  ;;  %s1831_s6 = sld [smem:[#allocation4 + $0x1]] }
 0x1d3   :  { %v1252_v22 = vsel %vm1245_vm2, %v1249_v18, %v1251_v16  ;;  %v1253_v27 = vsel %vm1245_vm2, %v1251_v16, %v1249_v18  ;;  %v1273_v28 = vpop.permute.xlu1 %1272  ;;  %vm1303_vm2 = vcmp.lt.s32.totalorder %v2261_v53, 97 }
 0x1d4   :  { %v1260_v14 = vmul.f32 %v1259_v9, %v1252_v22  ;;  %v1261_v33 = vmul.f32 %v1259_v9, %v1253_v27 }
 0x1d6   :  { %v1262_v8 = vadd.f32 %v1260_v14, %v1256_v21  ;;  %v1263_v38 = vadd.f32 %v1261_v33, %v1257_v62  ;;  %v1271_v11 = vpop.permute.xlu0 %1270 }
 0x1d7   :  { %v1275_v58 = vsel %vm1274_vm10, %v1271_v11, %v1273_v28  ;;  %v1276_v15 = vsel %vm1274_vm10, %v1273_v28, %v1271_v11  ;;  %v1280_v23 = vpop.permute.xlu1 %1279  ;;  %v1342_v11 = vstv %s4180_s1 }
 0x1d8   :  { %v1266_v20 = vsel %vm1264_vm0, %v1262_v8, 0.0  ;;  %v1267_v59 = vsel %vm1265_vm11, %v1263_v38, 0.0  ;;  %v1285_v26 = vmul.f32 %v1284_v61, %v1275_v58  ;;  %v1286_v29 = vmul.f32 %v1284_v61, %v1276_v15  ;;  %vm1323_vm0 = vmand %vm4136_vm9, %vm5164_vm13 }
 0x1d9   :  { %v1268_v35 = vadd.f32 %v1266_v20, %v1239_v13  ;;  %v1269_v42 = vadd.f32 %v1267_v59, %v1240_v24  ;;  %v1346_v15 = vstv %s1810_s8  ;;  %vm1390_vm11 = vcmp.lt.s32.totalorder %v2261_v53, 94 }
 0x1da   :  { %v1278_v44 = vpop.permute.xlu0 %1277 }
 0x1db   :  { %v1281_v17 = vsel %vm1274_vm10, %v1278_v44, %v1280_v23  ;;  %v1282_v0 = vsel %vm1274_vm10, %v1280_v23, %v1278_v44  ;;  %v1302_v60 = vpop.permute.xlu1 %1301  ;;  %vm1322_vm10 = vmand %vm4129_vm7, %vm5163_vm3  ;;  %vm1477_vm3 = vcmp.lt.s32.totalorder %v2261_v53, 82 }
 0x1dc   :  { %v1289_v12 = vmul.f32 %v1288_v55, %v1281_v17  ;;  %v1290_v7 = vmul.f32 %v1288_v55, %v1282_v0 }
 0x1de   :  { %v1291_v4 = vadd.f32 %v1289_v12, %v1285_v26  ;;  %v1292_v10 = vadd.f32 %v1290_v7, %v1286_v29  ;;  %v1300_v47 = vpop.permute.xlu0 %1299 }
 0x1df   :  { %v1304_v36 = vsel %vm1303_vm2, %v1300_v47, %v1302_v60  ;;  %v1305_v25 = vsel %vm1303_vm2, %v1302_v60, %v1300_v47  ;;  %v1309_v45 = vpop.permute.xlu1 %1308 }
 0x1e0   :  { %v1295_v30 = vsel %vm1293_vm8, %v1291_v4, 0.0  ;;  %v1296_v2 = vsel %vm1294_vm5, %v1292_v10, 0.0  ;;  %v1314_v24 = vmul.f32 %v1313_v19, %v1304_v36  ;;  %v1315_v40 = vmul.f32 %v1313_v19, %v1305_v25 }
 0x1e1   :  { %v1297_v46 = vadd.f32 %v1295_v30, %v1268_v35  ;;  %v1298_v31 = vadd.f32 %v1296_v2, %v1269_v42 }
 0x1e2   :  { %v1307_v63 = vpop.permute.xlu0 %1306 }
 0x1e3   :  { %v1310_v50 = vsel %vm1303_vm2, %v1307_v63, %v1309_v45  ;;  %v1311_v13 = vsel %vm1303_vm2, %v1309_v45, %v1307_v63  ;;  %v1331_v18 = vpop.permute.xlu1 %1330  ;;  %vm1419_vm2 = vcmp.lt.s32.totalorder %v2261_v53, 93 }
 0x1e4   :  { %v1318_v16 = vmul.f32 %v1317_v37, %v1310_v50  ;;  %v1319_v9 = vmul.f32 %v1317_v37, %v1311_v13 }
 0x1e6   :  { %v1320_v22 = vadd.f32 %v1318_v16, %v1314_v24  ;;  %v1321_v27 = vadd.f32 %v1319_v9, %v1315_v40  ;;  %v1329_v21 = vpop.permute.xlu0 %1328  ;;  %v4262_v9 = vadd.s32 3, %v5052_v39 }
 0x1e7   :  { %v1333_v62 = vsel %vm1332_vm4, %v1329_v21, %v1331_v18  ;;  %v1334_v14 = vsel %vm1332_vm4, %v1331_v18, %v1329_v21  ;;  %v1338_v58 = vpop.permute.xlu1 %1337  ;;  %v1371_v18 = vstv %s4232_s9 }
 0x1e8   :  { %v1324_v33 = vsel %vm1322_vm10, %v1320_v22, 0.0  ;;  %v1325_v28 = vsel %vm1323_vm0, %v1321_v27, 0.0  ;;  %v1343_v42 = vmul.f32 %v1342_v11, %v1333_v62  ;;  %v1344_v61 = vmul.f32 %v1342_v11, %v1334_v14 }
 0x1e9   :  { %v1326_v8 = vadd.f32 %v1324_v33, %v1297_v46  ;;  %v1327_v38 = vadd.f32 %v1325_v28, %v1298_v31  ;;  %v1375_v22 = vstv %s4236_s10  ;;  %v4270_v27 = vadd.s32 3, %v5059_v43 }
 0x1ea   :  { %v1336_v20 = vpop.permute.xlu0 %1335  ;;  %v1400_v14 = vstv %s4238_s11  ;;  %v1404_v33 = vstv %s4240_s14  ;;  %vm233_vm8 = vcmp.ge.s32.totalorder %v4262_v9, 0  ;;  %vm235_vm5 = vcmp.lt.s32.totalorder %v4262_v9, 16  ;;  %s5218_s11 = sld [smem:[#allocation51_spill]] }
 0x1eb   :  { %v1339_v59 = vsel %vm1332_vm4, %v1336_v20, %v1338_v58  ;;  %v1340_v35 = vsel %vm1332_vm4, %v1338_v58, %v1336_v20  ;;  %v1360_v44 = vpop.permute.xlu1 %1359  ;;  %v1458_v58 = vstv %s4250_s12  ;;  %vm234_vm15 = vcmp.ge.s32.totalorder %v4270_v27, 0 }
 0x1ec   :  { %v1347_v23 = vmul.f32 %v1346_v15, %v1339_v59  ;;  %v1348_v55 = vmul.f32 %v1346_v15, %v1340_v35  ;;  %vm236_vm4 = vcmp.lt.s32.totalorder %v4270_v27, 16  ;;  %vm5165_vm10 = vcmp.lt.s32.totalorder %v5053_v1, 16 }
 0x1ed   :  { %vm4336_vm13 = vmand %vm4129_vm7, %vm5165_vm10  ;;  %vm5168_vm0 = vcmp.lt.s32.totalorder %v5060_v32, 16 }
 0x1ee   :  { %v1349_v17 = vadd.f32 %v1347_v23, %v1343_v42  ;;  %v1350_v0 = vadd.f32 %v1348_v55, %v1344_v61  ;;  %v1358_v26 = vpop.permute.xlu0 %1357  ;;  %v1462_v61 = vstv %s4252_s17  ;;  %v1487_v23 = vstv %s4256_s18  ;;  %s5219_s17 = sld [smem:[#allocation52_spill]] }
 0x1ef   :  { %v1367_v4 = vpop.permute.xlu1 %1366  ;;  %v1362_v43 = vsel %vm1361_vm1, %v1358_v26, %v1360_v44  ;;  %v1363_v11 = vsel %vm1361_vm1, %v1360_v44, %v1358_v26 }
 0x1f0   :  { %v1353_v29 = vsel %vm4129_vm7, %v1349_v17, 0.0  ;;  %v1354_v12 = vsel %vm4136_vm9, %v1350_v0, 0.0  ;;  %v1372_v44 = vmul.f32 %v1371_v18, %v1362_v43  ;;  %v1373_v17 = vmul.f32 %v1371_v18, %v1363_v11 }
 0x1f1   :  { %v4210_v7 = vadd.f32 %v1353_v29, %v1326_v8  ;;  %v4212_v60 = vadd.f32 %v1354_v12, %v1327_v38  ;;  %v1429_v8 = vstv %s4244_s16  ;;  %v1433_v38 = vstv %s4248_s7 }
 0x1f2   :  { %v1365_v10 = vpop.permute.xlu0 %1364  ;;  %v1516_v18 = vstv %s4274_s19 }
 0x1f3   :  { %v4214_v47 = vpop.permute.xlu1 %1388  ;;  %v1368_v62 = vsel %vm1361_vm1, %v1365_v10, %v1367_v4  ;;  %v1369_v39 = vsel %vm1361_vm1, %v1367_v4, %v1365_v10  ;;  %vm4348_vm1 = vmand %vm4136_vm9, %vm5168_vm0 }
 0x1f4   :  { %v1376_v15 = vmul.f32 %v1375_v22, %v1368_v62  ;;  %v1377_v20 = vmul.f32 %v1375_v22, %v1369_v39 }
 0x1f6   :  { %v4216_v36 = vpop.permute.xlu0 %1386 }
 0x1f7   :  { %v1396_v25 = vpop.permute.xlu1 %1395  ;;  %v1391_v0 = vsel %vm1390_vm11, %v4216_v36, %v4214_v47  ;;  %v1392_v26 = vsel %vm1390_vm11, %v4214_v47, %v4216_v36  ;;  %v1378_v36 = vadd.f32 %v1376_v15, %v1372_v44  ;;  %v1545_v44 = vstv %s4296_s23  ;;  %s5220_s23 = sld [smem:[#allocation53_spill]] }
 0x1f8   :  { %v1402_v62 = vmul.f32 %v1400_v14, %v1392_v26  ;;  %v1574_v47 = vstv %s4322_s25 }
 0x1f9   :  { %v1382_v51 = vsel %vm4336_vm13, %v1378_v36, 0.0  ;;  %vm1535_vm13 = vcmp.lt.s32.totalorder %v2261_v53, 80 }
 0x1fa   :  { %v1394_v30 = vpop.permute.xlu0 %1393 }
 0x1fb   :  { %v4218_v2 = vpop.permute.xlu1 %1417  ;;  %v1397_v59 = vsel %vm1390_vm11, %v1394_v30, %v1396_v25  ;;  %v1398_v35 = vsel %vm1390_vm11, %v1396_v25, %v1394_v30  ;;  %v1379_v25 = vadd.f32 %v1377_v20, %v1373_v17  ;;  %v1491_v30 = vstv %s4264_s20 }
 0x1fc   :  { %v1405_v29 = vmul.f32 %v1404_v33, %v1397_v59  ;;  %v1406_v12 = vmul.f32 %v1404_v33, %v1398_v35  ;;  %vm5171_vm11 = vcmp.lt.s32.totalorder %v2364_v48, 16  ;;  %v1520_v35 = vstv %s4288_s21 }
 0x1fd   :  { %vm4366_vm10 = vmand %vm4129_vm7, %vm5171_vm11  ;;  %vm1506_vm11 = vcmp.lt.s32.totalorder %v2261_v53, 81 }
 0x1fe   :  { %v4220_v46 = vpop.permute.xlu0 %1415 }
 0x1ff   :  { %v4222_v31 = vpop.permute.xlu1 %1424  ;;  %v1420_v39 = vsel %vm1419_vm2, %v4220_v46, %v4218_v2  ;;  %v1421_v33 = vsel %vm1419_vm2, %v4218_v2, %v4220_v46 }
 0x200   :  { %v1430_v17 = vmul.f32 %v1429_v8, %v1420_v39 }
 0x202   :  { %v4224_v19 = vpop.permute.xlu0 %1422 }
 0x203   :  { %v4226_v45 = vpop.permute.xlu1 %1446  ;;  %v1426_v4 = vsel %vm1419_vm2, %v4224_v19, %v4222_v31  ;;  %v1427_v10 = vsel %vm1419_vm2, %v4222_v31, %v4224_v19  ;;  %v1401_v19 = vmul.f32 %v1400_v14, %v1391_v0  ;;  %vm5174_vm2 = vcmp.lt.s32.totalorder %v2366_v52, 16 }
 0x204   :  { %v1434_v14 = vmul.f32 %v1433_v38, %v1426_v4  ;;  %v1435_v15 = vmul.f32 %v1433_v38, %v1427_v10  ;;  %vm4382_vm0 = vmand %vm4136_vm9, %vm5174_vm2  ;;  %v1408_v38 = vadd.f32 %v1406_v12, %v1402_v62  ;;  %v1431_v0 = vmul.f32 %v1429_v8, %v1421_v33 }
 0x205   :  { %v1407_v59 = vadd.f32 %v1405_v29, %v1401_v19  ;;  %vm4395_vm2 = vmand %vm4129_vm7, %vm181_vm14  ;;  %v1383_v29 = vsel %vm4348_vm1, %v1379_v25, 0.0 }
 0x206   :  { %v4228_v37 = vpop.permute.xlu0 %1444  ;;  %vm4415_vm7 = vmand %vm4136_vm9, %vm182_vm6  ;;  %v1436_v62 = vadd.f32 %v1434_v14, %v1430_v17  ;;  %v1385_v27 = vadd.f32 %v1383_v29, %v4212_v60  ;;  %v1412_v33 = vsel %vm4382_vm0, %v1408_v38, 0.0  ;;  %v1578_v38 = vstv %s4389_s26 }
 0x207   :  { %v4230_v63 = vpop.permute.xlu1 %1453  ;;  %v1450_v8 = vsel %vm1448_vm12, %v4226_v45, %v4228_v37  ;;  %vm4438_vm9 = vmand %vm234_vm15, %vm236_vm4  ;;  %v1411_v39 = vsel %vm4366_vm10, %v1407_v59, 0.0  ;;  %vm5188_vm4 = vcmp.ge.s32.totalorder %v2329_v6, 0  ;;  %vm5191_vm10 = vcmp.ge.s32.totalorder %v2321_v54, 0 }
 0x208   :  { %v1460_v25 = vmul.f32 %v1458_v58, %v1450_v8  ;;  %vm4487_vm1 = vmand %vm4438_vm9, %vm5188_vm4  ;;  %v1632_v54 = vstv %s4564_s27 }
 0x20a   :  { %v4234_v50 = vpop.permute.xlu0 %1451 }
 0x20b   :  { %v4242_v13 = vpop.permute.xlu1 %1475  ;;  %v1455_v20 = vsel %vm1448_vm12, %v4234_v50, %v4230_v63  ;;  %v1456_v2 = vsel %vm1448_vm12, %v4230_v63, %v4234_v50  ;;  %v1449_v50 = vsel %vm1448_vm12, %v4228_v37, %v4226_v45  ;;  %v1437_v45 = vadd.f32 %v1435_v15, %v1431_v0  ;;  %vm4423_vm12 = vmand %vm233_vm8, %vm235_vm5 }
 0x20c   :  { %v1463_v4 = vmul.f32 %v1462_v61, %v1455_v20  ;;  %v1464_v10 = vmul.f32 %v1462_v61, %v1456_v2  ;;  %v1459_v36 = vmul.f32 %v1458_v58, %v1449_v50  ;;  %v1384_v58 = vadd.f32 %v1382_v51, %v4210_v7  ;;  %vm4521_vm0 = vmand %vm4423_vm12, %vm5191_vm10 }
 0x20d   :  { %vm5185_vm8 = vcmp.ge.s32.totalorder %v2318_v56, 0  ;;  %vm1564_vm5 = vcmp.lt.s32.totalorder %v2261_v53, 79  ;;  %v1440_v15 = vsel %vm4395_vm2, %v1436_v62, 0.0  ;;  %v1441_v20 = vsel %vm4415_vm7, %v1437_v45, 0.0 }
 0x20e   :  { %v4246_v24 = vpop.permute.xlu0 %1473  ;;  %vm4466_vm15 = vmand %vm4423_vm12, %vm5185_vm8  ;;  %v1465_v7 = vadd.f32 %v1463_v4, %v1459_v36  ;;  %v1466_v60 = vadd.f32 %v1464_v10, %v1460_v25  ;;  %vm1622_vm7 = vcmp.lt.s32.totalorder %v2261_v53, 77 }
 0x20f   :  { %v4254_v40 = vpop.permute.xlu1 %1482  ;;  %v1479_v56 = vsel %vm1477_vm3, %v4242_v13, %v4246_v24 }
 0x210   :  { %v1489_v0 = vmul.f32 %v1487_v23, %v1479_v56  ;;  %v1469_v51 = vsel %vm4466_vm15, %v1465_v7, 0.0  ;;  %vm5200_vm15 = vcmp.ge.s32.totalorder %v5040_v41, 0 }
 0x211   :  { %vm4590_vm4 = vmand %vm4438_vm9, %vm5200_vm15 }
 0x212   :  { %v4258_v16 = vpop.permute.xlu0 %1480  ;;  %vm1642_vm15 = vmand %vm4438_vm9, %vm182_vm6 }
 0x213   :  { %v4272_v21 = vpop.permute.xlu1 %1504  ;;  %v1484_v9 = vsel %vm1477_vm3, %v4258_v16, %v4254_v40  ;;  %v1485_v31 = vsel %vm1477_vm3, %v4254_v40, %v4258_v16  ;;  %v1478_v16 = vsel %vm1477_vm3, %v4246_v24, %v4242_v13  ;;  %v1413_v13 = vadd.f32 %v1411_v39, %v1384_v58 }
 0x214   :  { %v1492_v46 = vmul.f32 %v1491_v30, %v1484_v9  ;;  %v1493_v59 = vmul.f32 %v1491_v30, %v1485_v31  ;;  %v1414_v24 = vadd.f32 %v1412_v33, %v1385_v27  ;;  %vm1593_vm3 = vcmp.lt.s32.totalorder %v2261_v53, 78 }
 0x215   :  { %v1488_v17 = vmul.f32 %v1487_v23, %v1478_v16  ;;  %v1442_v50 = vadd.f32 %v1440_v15, %v1413_v13  ;;  %v1470_v23 = vsel %vm4487_vm1, %v1466_v60, 0.0  ;;  %v1603_v31 = vstv %s4450_s2 }
 0x216   :  { %v4282_v28 = vpop.permute.xlu0 %1502  ;;  %v1443_v8 = vadd.f32 %v1441_v20, %v1414_v24  ;;  %v1495_v4 = vadd.f32 %v1493_v59, %v1489_v0  ;;  %v1607_v58 = vstv %s4460_s4  ;;  %s5221_s4 = sld [smem:[#allocation54_spill]] }
 0x217   :  { %v4303_v42 = vpop.permute.xlu1 %1511  ;;  %v1494_v12 = vadd.f32 %v1492_v46, %v1488_v17  ;;  %v1471_v9 = vadd.f32 %v1469_v51, %v1442_v50 }
 0x219   :  { %v1498_v7 = vsel %vm4521_vm0, %v1494_v12, 0.0  ;;  %vm5209_vm0 = vcmp.lt.s32.totalorder %v2364_v48, 16 }
 0x21a   :  { %v4309_v55 = vpop.permute.xlu0 %1509 }
 0x21b   :  { %v4342_v22 = vpop.permute.xlu1 %1533  ;;  %v1513_v6 = vsel %vm1506_vm11, %v4309_v55, %v4303_v42  ;;  %v1514_v30 = vsel %vm1506_vm11, %v4303_v42, %v4309_v55  ;;  %v1507_v42 = vsel %vm1506_vm11, %v4282_v28, %v4272_v21  ;;  %v1508_v55 = vsel %vm1506_vm11, %v4272_v21, %v4282_v28 }
 0x21c   :  { %v1521_v62 = vmul.f32 %v1520_v35, %v1513_v6  ;;  %v1522_v45 = vmul.f32 %v1520_v35, %v1514_v30  ;;  %v1472_v21 = vadd.f32 %v1470_v23, %v1443_v8  ;;  %vm5194_vm11 = vcmp.ge.s32.totalorder %v2331_v5, 0 }
 0x21d   :  { %vm4537_vm2 = vmand %vm4438_vm9, %vm5194_vm11  ;;  %v1517_v35 = vmul.f32 %v1516_v18, %v1507_v42  ;;  %v1518_v27 = vmul.f32 %v1516_v18, %v1508_v55 }
 0x21e   :  { %v4360_v43 = vpop.permute.xlu0 %1531  ;;  %v1499_v60 = vsel %vm4537_vm2, %v1495_v4, 0.0  ;;  %vm4634_vm11 = vmand %vm4423_vm12, %vm5209_vm0  ;;  %vm5212_vm2 = vcmp.lt.s32.totalorder %v2366_v52, 16 }
 0x21f   :  { %v1541_v26 = vpop.permute.xlu1 %1540  ;;  %v1536_v5 = vsel %vm1535_vm13, %v4360_v43, %v4342_v22  ;;  %v1523_v16 = vadd.f32 %v1521_v62, %v1517_v35  ;;  %v1524_v56 = vadd.f32 %v1522_v45, %v1518_v27  ;;  %v1501_v12 = vadd.f32 %v1499_v60, %v1472_v21 }
 0x221   :  { %v1528_v50 = vsel %vm4590_vm4, %v1524_v56, 0.0 }
 0x222   :  { %v1539_v19 = vpop.permute.xlu0 %1538 }
 0x223   :  { %v4458_v14 = vpop.permute.xlu1 %1562  ;;  %v1542_v36 = vsel %vm1535_vm13, %v1539_v19, %v1541_v26  ;;  %v1543_v25 = vsel %vm1535_vm13, %v1541_v26, %v1539_v19  ;;  %v1537_v26 = vsel %vm1535_vm13, %v4342_v22, %v4360_v43  ;;  %vm5197_vm13 = vcmp.ge.s32.totalorder %v5034_v34, 0 }
 0x224   :  { %v1550_v39 = vmul.f32 %v1549_v3, %v1542_v36  ;;  %v1551_v33 = vmul.f32 %v1549_v3, %v1543_v25  ;;  %vm4570_vm8 = vmand %vm4423_vm12, %vm5197_vm13  ;;  %v1546_v43 = vmul.f32 %v1545_v44, %v1536_v5  ;;  %v1547_v3 = vmul.f32 %v1545_v44, %v1537_v26 }
 0x225   :  { %vm4642_vm13 = vmand %vm4438_vm9, %vm5212_vm2 }
 0x226   :  { %v1561_v11 = vpop.permute.xlu0 %1560  ;;  %v1553_v24 = vadd.f32 %v1551_v33, %v1547_v3 }
 0x227   :  { %v1570_v63 = vpop.permute.xlu1 %1569  ;;  %v1565_v15 = vsel %vm1564_vm5, %v1561_v11, %v4458_v14  ;;  %v1566_v34 = vsel %vm1564_vm5, %v4458_v14, %v1561_v11  ;;  %v1552_v11 = vadd.f32 %v1550_v39, %v1546_v43 }
 0x228   :  { %v1575_v0 = vmul.f32 %v1574_v47, %v1565_v15  ;;  %v1576_v6 = vmul.f32 %v1574_v47, %v1566_v34  ;;  %v1557_v62 = vsel %vm4438_vm9, %v1553_v24, 0.0 }
 0x229   :  { %v1556_v10 = vsel %vm4423_vm12, %v1552_v11, 0.0 }
 0x22a   :  { %v1568_v29 = vpop.permute.xlu0 %1567 }
 0x22b   :  { %v1592_v28 = vpop.permute.xlu1 %1591  ;;  %v1571_v40 = vsel %vm1564_vm5, %v1568_v29, %v1570_v63  ;;  %v1572_v18 = vsel %vm1564_vm5, %v1570_v63, %v1568_v29  ;;  %v1527_v63 = vsel %vm4570_vm8, %v1523_v16, 0.0  ;;  %vm5203_vm5 = vcmp.lt.s32.totalorder %v5053_v1, 16  ;;  %vm1641_vm8 = vmand %vm4423_vm12, %vm181_vm14 }
 0x22c   :  { %v1579_v44 = vmul.f32 %v1578_v38, %v1571_v40  ;;  %v1580_v46 = vmul.f32 %v1578_v38, %v1572_v18  ;;  %vm4614_vm1 = vmand %vm4423_vm12, %vm5203_vm5  ;;  %v1500_v29 = vadd.f32 %v1498_v7, %v1471_v9  ;;  %v1530_v9 = vadd.f32 %v1528_v50, %v1501_v12 }
 0x22d   :  { %vm5216_vm14 = vcmask 1043456  }
 0x22e   :  { %v1590_v19 = vpop.permute.xlu0 %1589  ;;  %v1581_v1 = vadd.f32 %v1579_v44, %v1575_v0  ;;  %v1582_v42 = vadd.f32 %v1580_v46, %v1576_v6  ;;  %v1529_v25 = vadd.f32 %v1527_v63, %v1500_v29  ;;  %v1559_v27 = vadd.f32 %v1557_v62, %v1530_v9  ;;  %vm5217_vm6 = vmmov %vm5216_vm14 }
 0x22f   :  { %v1599_v20 = vpop.permute.xlu1 %1598  ;;  %v1594_v59 = vsel %vm1593_vm3, %v1590_v19, %v1592_v28  ;;  %v1595_v13 = vsel %vm1593_vm3, %v1592_v28, %v1590_v19 }
 0x230   :  { %v1604_v51 = vmul.f32 %v1603_v31, %v1594_v59  ;;  %v1605_v23 = vmul.f32 %v1603_v31, %v1595_v13  ;;  %v1558_v35 = vadd.f32 %v1556_v10, %v1529_v25  ;;  %v1585_v52 = vsel %vm4614_vm1, %v1581_v1, 0.0 }
 0x231   :  { %v5215_v1 = vlaneseq }
 0x232   :  { %v1597_v14 = vpop.permute.xlu0 %1596  ;;  %v1587_v56 = vadd.f32 %v1585_v52, %v1558_v35  ;;  %v1890_v52 = vld [vmem:[%s5218_s11] sm:$0xff] }
 0x233   :  { %v1600_v41 = vsel %vm1593_vm3, %v1597_v14, %v1599_v20  ;;  %v1601_v17 = vsel %vm1593_vm3, %v1599_v20, %v1597_v14  ;;  %v1621_v47 = vpop.permute.xlu1 %1620  ;;  %vm5206_vm3 = vcmp.lt.s32.totalorder %v5060_v32, 16  ;;  %v1695_v32 = vstv %s1831_s6 }
 0x234   :  { %v1608_v38 = vmul.f32 %v1607_v58, %v1600_v41  ;;  %v1609_v30 = vmul.f32 %v1607_v58, %v1601_v17  ;;  %vm4622_vm10 = vmand %vm4438_vm9, %vm5206_vm3  ;;  %v1636_v58 = vstv %s4584_s28 }
 0x235   :  { %v1586_v5 = vsel %vm4622_vm10, %v1582_v42, 0.0  ;;  %v1699_v42 = vshrl.u32 %v5215_v1, 7 }
 0x236   :  { %v1619_v55 = vpop.permute.xlu0 %1618  ;;  %v1610_v45 = vadd.f32 %v1608_v38, %v1604_v51  ;;  %v1611_v36 = vadd.f32 %v1609_v30, %v1605_v23  ;;  %v1588_v22 = vadd.f32 %v1586_v5, %v1559_v27 }
 0x237   :  { %v1623_v48 = vsel %vm1622_vm7, %v1619_v55, %v1621_v47  ;;  %v1624_v28 = vsel %vm1622_vm7, %v1621_v47, %v1619_v55  ;;  %v1628_v31 = vpop.permute.xlu1 %1627  ;;  %v1700_v25 = vsub.s32 0, %v1699_v42  ;;  %v1708_v9 = vsub.s32 1, %v1699_v42 }
 0x238   :  { %v1614_v19 = vsel %vm4634_vm11, %v1610_v45, 0.0  ;;  %v1615_v39 = vsel %vm4642_vm13, %v1611_v36, 0.0  ;;  %v1633_v18 = vmul.f32 %v1632_v54, %v1623_v48  ;;  %v1634_v7 = vmul.f32 %v1632_v54, %v1624_v28 }
 0x239   :  { %v1616_v53 = vadd.f32 %v1614_v19, %v1587_v56  ;;  %v1617_v15 = vadd.f32 %v1615_v39, %v1588_v22  ;;  %v1892_v39 = vld [vmem:[%s5219_s17] sm:$0xff] }
 0x23a   :  { %v1626_v26 = vpop.permute.xlu0 %1625 }
 0x23b   :  { %v1629_v33 = vsel %vm1622_vm7, %v1626_v26, %v1628_v31  ;;  %v1630_v40 = vsel %vm1622_vm7, %v1628_v31, %v1626_v26  ;;  %vm1647_vm7 = vcmask 1041408   ;;  %v1891_v26 = vld [vmem:[%s5218_s11 + $0x8] sm:$0xff] }
 0x23c   :  { %v1637_v60 = vmul.f32 %v1636_v58, %v1629_v33  ;;  %v1638_v16 = vmul.f32 %v1636_v58, %v1630_v40  ;;  %v1893_v40 = vld [vmem:[%s5219_s17 + $0x8] sm:$0xff] }
 0x23e   :  { %v1639_v43 = vadd.f32 %v1637_v60, %v1633_v18  ;;  %v1640_v3 = vadd.f32 %v1638_v16, %v1634_v7 }
 0x240   :  { %v1643_v34 = vsel %vm1641_vm8, %v1639_v43, 0.0  ;;  %v1644_v20 = vsel %vm1642_vm15, %v1640_v3, 0.0 }
 0x241   :  { %v1645_v49 = vadd.f32 %v1643_v34, %v1616_v53  ;;  %v1646_v2 = vadd.f32 %v1644_v20, %v1617_v15 }
 0x243   :  { %v1648_v37 = vsel %vm1647_vm7, %v1645_v49, 0.0  ;;  %v1649_v44 = vsel %vm1647_vm7, %v1646_v2, 0.0  ;;  %v1660_v46 = vmul.f32 %v1645_v49, %v1645_v49  ;;  %v1661_v59 = vmul.f32 %v1646_v2, %v1646_v2 }
 0x244   :  { %v1650_v13 = vadd.f32 %v1649_v44, %v1648_v37 }
 0x245   :  { %v1662_v14 = vsel %vm1647_vm7, %v1660_v46, 0.0  ;;  %v1663_v11 = vsel %vm1647_vm7, %v1661_v59, 0.0 }
 0x246   :  { %1651 = vadd.xlane.f32.xlu0 %v1650_v13  ;;  %v1664_v57 = vadd.f32 %v1663_v11, %v1662_v14 }
 0x248   :  { %1665 = vadd.xlane.f32.xlu1 %v1664_v57 }
 0x2cf   :  { %v1652_v61 = vpop.xlane.xlu0 %1651 }
 0x2d0   :  { %v1653_v24 = vrot.slane %v1652_v61, 4 }
 0x2d1   :  { %v1666_v41 = vpop.xlane.xlu1 %1665 }
 0x2d2   :  { %v1654_v17 = vadd.f32 %v1653_v24, %v1652_v61  ;;  %v1667_v0 = vrot.slane %v1666_v41, 4 }
 0x2d4   :  { %v1655_v6 = vrot.slane %v1654_v17, 2  ;;  %v1668_v38 = vadd.f32 %v1667_v0, %v1666_v41 }
 0x2d6   :  { %v1669_v30 = vrot.slane %v1668_v38, 2  ;;  %v1656_v63 = vadd.f32 %v1655_v6, %v1654_v17 }
 0x2d8   :  { %v1670_v50 = vadd.f32 %v1669_v30, %v1668_v38  ;;  %v1657_v8 = vrot.slane %v1656_v63, 1 }
 0x2da   :  { %v1658_v51 = vadd.f32 %v1657_v8, %v1656_v63  ;;  %v1671_v23 = vrot.slane %v1670_v50, 1 }
 0x2dc   :  { %1832 = vpush %v1658_v51  ;;  %v1672_v47 = vadd.f32 %v1671_v23, %v1670_v50 }
 0x2de   :  { %1834 = vpush %v1672_v47 }
 0x30d   :  { %s1833_s30 = spop %1832 }
 0x30e   :  { %s1676_s5 = smul.f32 0.001953125, %s1833_s30 }
 0x30f   :  { %s1835_s3 = spop %1834 }
 0x310   :  { %s1680_s13 = smul.f32 %s1676_s5, %s1676_s5  ;;  %v1688_v4 = vstv %s1676_s5 }
 0x311   :  { %s1679_s22 = smul.f32 0.001953125, %s1835_s3  ;;  %v1689_v55 = vsub.f32 %v1645_v49, %v1688_v4  ;;  %v1690_v10 = vsub.f32 %v1646_v2, %v1688_v4 }
 0x313   :  { %s1681_s29 = ssub.f32 %s1679_s22, %s1680_s13 }
 0x315   :  { %s1683_s0 = sadd.f32 1e-05, %s1681_s29 }
 0x317   :  { %v1684_v29 = vstv %s1683_s0 }
 0x318   :  { %1888 = vrsqrt.f32 %v1684_v29 }
 0x325   :  { %v1889_v12 = vpop.eup %1888 }
 0x326   :  { %1836 = vpush %v1889_v12 }
 0x357   :  { %s1837_s1 = spop %1836 }
 0x358   :  { %s1687_s8 = smul.f32 %s1837_s1, %s1682_s15 }
 0x35a   :  { %v1691_v62 = vstv %s1687_s8 }
 0x35b   :  { %v1692_v45 = vmul.f32 %v1691_v62, %v1689_v55  ;;  %v1693_v36 = vmul.f32 %v1691_v62, %v1690_v10 }
 0x35d   :  { %v1696_v21 = vadd.f32 %v1695_v32, %v1692_v45  ;;  %v1697_v54 = vadd.f32 %v1695_v32, %v1693_v36 }
 0x35f   :  { %v1701_v48 = vrot.slane %v1696_v21, %v1700_v25  ;;  %v1705_v28 = vrot.slane %v1697_v54, %v1700_v25  ;;  %v1709_v31 = vrot.slane %v1696_v21, %v1708_v9  ;;  %v1713_v58 = vrot.slane %v1697_v54, %v1708_v9 }
 0x361   :  { %v1714_v35 = vsel %vm5216_vm14, %v1701_v48, %v1709_v31  ;;  %v1715_v27 = vsel %vm5217_vm6, %v1705_v28, %v1713_v58 }
 0x362   :  { %v1716_v5 = vadd.f32 %v1890_v52, %v1714_v35  ;;  %v1717_v19 = vadd.f32 %v1891_v26, %v1715_v27  ;;  %v1720_v33 = vadd.f32 %v1892_v39, %v1714_v35  ;;  %v1721_v18 = vadd.f32 %v1893_v40, %v1715_v27 }
 0x364   :  { %1718 = vst [vmem:[%s5220_s23] sm:$0xff] %v1716_v5  ;;  %1719 = vst [vmem:[%s5220_s23 + $0x8] sm:$0xff] %v1717_v19 }
 0x365   :  { %1722 = vst [vmem:[%s5221_s4] sm:$0xff] %v1720_v33  ;;  %1723 = vst [vmem:[%s5221_s4 + $0x8] sm:$0xff] %v1721_v18 }
 0x366   :  { %1732 = vsyncpa [#allocation3], 1 }
 0x367   :  { %1733 = vsyncpa [#allocation5], 1 }

</bundles_post_ra>
